<compile_context>
chip_gen: v6e
topology: v6e:2x2x1
jax: 0.10.0
libtpu: 0.0.40
codegen_flags: <defaults>
</compile_context>

<pallas_src>
import math

import jax
import jax.numpy as jnp
from jax import lax
from jax.experimental import pallas as pl
from jax.experimental.pallas import tpu as pltpu

# ---- model hyper-parameters (small, consistent with LSTMATTN.__init__) ----
B = 2                     # batch
S = 8                     # max_seq_len
HD = 32                   # hidden_dim
RESIZE = 2                # args.resize_factor
INTD = HD // RESIZE       # per-feature embedding dim = 16
HALF = HD // 2            # comb_proj / cont_proj output width = 16
N_CAT = 6                 # testId, assessmentItemID, KnowledgeTag, interaction, question_N, bigclass
N_CONT = 3
N_HEADS = 2
HEAD_DIM = HD // N_HEADS
EPS_PROJ = 1e-6           # nn.LayerNorm eps in comb_proj / cont_proj
EPS_BERT = 1e-12          # transformers BertConfig.layer_norm_eps default

VOCABS = dict(testId=1538 + 1, assessmentItemID=9455 + 1, KnowledgeTag=913 + 1,
              interaction=3, question_N=13 + 1, bigclass=9 + 1)
CAT_ORDER = ("testId", "assessmentItemID", "KnowledgeTag", "interaction",
             "question_N", "bigclass")


# ------------------------- small in-kernel helpers -------------------------
def _layernorm(x, gamma, beta, eps):
    mu = jnp.mean(x, axis=-1, keepdims=True)
    var = jnp.mean((x - mu) ** 2, axis=-1, keepdims=True)
    return (x - mu) * lax.rsqrt(var + eps) * gamma + beta


def _gelu_tanh(x):
    # tanh-approximation GELU (EUP tanh); ~1e-3 max abs delta vs exact erf GELU.
    c = math.sqrt(2.0 / math.pi)
    return 0.5 * x * (1.0 + jnp.tanh(c * (x + 0.044715 * x * x * x)))


def _lstm_cell(g, c):
    """One LSTM cell update; gate columns pre-permuted offline to (i|f|o|g)."""
    ifo = jax.nn.sigmoid(g[:, :3 * HD])        # contiguous sigmoid slab
    gg = jnp.tanh(g[:, 3 * HD:])               # contiguous tanh slab
    c_new = ifo[:, HD:2 * HD] * c + ifo[:, :HD] * gg
    h_new = ifo[:, 2 * HD:3 * HD] * jnp.tanh(c_new)
    return h_new, c_new


# ------------------------------ fused kernel -------------------------------
def lstmattn_kernel(idx_ref,                                  # SMEM scalar prefetch
                    emb_t_ref, emb_q_ref, emb_k_ref, emb_i_ref, emb_n_ref, emb_b_ref,
                    cont_ref, mask_ref,
                    wcomb_ref, bcomb_ref, lncomb_ref,
                    wcont_ref, bcont_ref, lncont_ref,
                    wih0_ref, b0_ref, whhf_ref, b1_ref,
                    wqkv_ref, bqkv_ref, wo_ref, bo_ref, ln1_ref,
                    wi_ref, bi_ref, wout_ref, bout_ref, ln2_ref,
                    wfc_ref, bfc_ref, out_ref):
    f32 = jnp.float32
    emb_refs = (emb_t_ref, emb_q_ref, emb_k_ref, emb_i_ref, emb_n_ref, emb_b_ref)

    # ---- 1) in-kernel embedding gather + comb_proj / cont_proj ----
    # Rows are gathered directly in TIME-major order (row = t*B + b) so the
    # LSTM recurrence slices contiguous rows.  The 6-feature lane concat is
    # avoided by splitting w_comb per feature (x @ W == sum_f x_f @ W_f).
    xc = None
    for fi in range(N_CAT):
        rows = []
        for t in range(S):
            for b in range(B):
                idx = idx_ref[fi * (B * S) + b * S + t]       # SMEM scalar read
                rows.append(emb_refs[fi][pl.ds(idx, 1), :])   # (1, INTD) dynamic row load
        g_f = jnp.concatenate(rows, axis=0)                   # (S*B, INTD) time-major
        part = jnp.dot(g_f, wcomb_ref[fi * INTD:(fi + 1) * INTD, :],
                       preferred_element_type=f32)
        xc = part if xc is None else xc + part
    xc = xc + bcomb_ref[...]
    xc = _layernorm(xc, lncomb_ref[0:1, :], lncomb_ref[1:2, :], EPS_PROJ)

    xk = jnp.dot(cont_ref[...], wcont_ref[...],
                 preferred_element_type=f32) + bcont_ref[...]
    xk = _layernorm(xk, lncont_ref[0:1, :], lncont_ref[1:2, :], EPS_PROJ)

    # ---- 2) 2-layer LSTM, skew-interleaved ----
    # Layer-0 input projection hoisted over all steps; the comb|cont lane
    # concat is removed by splitting W_ih0 into its two 16-row halves.
    gates0 = (jnp.dot(xc, wih0_ref[:HALF, :], preferred_element_type=f32)
              + jnp.dot(xk, wih0_ref[HALF:, :], preferred_element_type=f32)
              + b0_ref[...])                                   # (S*B, 4*HD) time-major

    whh_fused = whhf_ref[...]                                  # (2*HD, 8*HD) = [[Whh0,Wih1],[0,Whh1]]
    b1 = b1_ref[...]

    h1 = jnp.zeros((B, HD), f32)
    c0 = jnp.zeros((B, HD), f32)
    c1 = jnp.zeros((B, HD), f32)
    outs1 = []

    h0, c0 = _lstm_cell(gates0[0:B, :], c0)                    # layer0, t = 0
    for k in range(1, S):                                      # static unroll (S=8)
        # one fused (B,64)@(64,256) push gives: cols [0:4HD]  = h0_{k-1} @ Whh0
        #                                       cols [4HD:8HD]= h0_{k-1}@Wih1 + h1_{k-2}@Whh1
        both = jnp.dot(jnp.concatenate([h0, h1], axis=-1), whh_fused,
                       preferred_element_type=f32)             # (B, 8*HD)
        h1, c1 = _lstm_cell(both[:, 4 * HD:] + b1, c1)         # layer1, t = k-1
        outs1.append(h1)
        h0, c0 = _lstm_cell(gates0[k * B:(k + 1) * B, :] + both[:, :4 * HD], c0)  # layer0, t = k
    # tail: layer1, t = S-1 (only the right half of the fused weight is needed)
    g1 = jnp.dot(jnp.concatenate([h0, h1], axis=-1), whhf_ref[:, 4 * HD:],
                 preferred_element_type=f32) + b1
    h1, c1 = _lstm_cell(g1, c1)
    outs1.append(h1)

    # time-major (S,B,HD) -> batch-major (B*S, HD) in 4 ops (stack + B slices + concat)
    lstm_tm3 = jnp.stack(outs1, axis=0)                        # (S, B, HD)
    lstm_all = jnp.concatenate([lstm_tm3[:, b, :] for b in range(B)], axis=0)  # (B*S, HD)

    # ---- 3) BertLayer: multi-head self-attention (eval mode) ----
    # 1/sqrt(head_dim) already folded into the Q columns of w_qkv/b_qkv offline.
    qkv = jnp.dot(lstm_all, wqkv_ref[...],
                  preferred_element_type=f32) + bqkv_ref[...]  # (B*S, 3*HD)
    dense_rows = []
    for b in range(B):                                         # static, B=2
        qkv_b = qkv[b * S:(b + 1) * S, :]                      # (S, 3*HD)
        neg = (1.0 - mask_ref[b:b + 1, :]) * -10000.0          # (1, S) extended mask
        d_b = jnp.zeros((S, HD), f32)
        for h in range(N_HEADS):                               # static, 2 heads
            lo, hi = h * HEAD_DIM, (h + 1) * HEAD_DIM
            q_h = qkv_b[:, lo:hi]
            k_h = qkv_b[:, HD + lo:HD + hi]
            v_h = qkv_b[:, 2 * HD + lo:2 * HD + hi]
            s = jnp.dot(q_h, k_h.T, preferred_element_type=f32) + neg
            s = s - jnp.max(s, axis=-1, keepdims=True)
            prob = jnp.exp(s)
            prob = prob * pl.reciprocal(jnp.sum(prob, axis=-1, keepdims=True),
                                        approx=True)
            ctx_h = jnp.dot(prob, v_h, preferred_element_type=f32)
            # fold "concat heads -> output dense" into per-head partial matmuls
            d_b = d_b + jnp.dot(ctx_h, wo_ref[lo:hi, :], preferred_element_type=f32)
        dense_rows.append(d_b)
    attn_dense = jnp.concatenate(dense_rows, axis=0) + bo_ref[...]       # (B*S, HD)
    attn_out = _layernorm(attn_dense + lstm_all,
                          ln1_ref[0:1, :], ln1_ref[1:2, :], EPS_BERT)

    # ---- 4) BertLayer: FFN ----
    inter = _gelu_tanh(jnp.dot(attn_out, wi_ref[...],
                               preferred_element_type=f32) + bi_ref[...])
    ffn = jnp.dot(inter, wout_ref[...],
                  preferred_element_type=f32) + bout_ref[...]
    seq_out = _layernorm(ffn + attn_out, ln2_ref[0:1, :], ln2_ref[1:2, :], EPS_BERT)

    # ---- 5) fc on cat([sequence_output, lstm_out], -1): VPU mul + lane reduce ----
    prod = seq_out * wfc_ref[0:1, :] + lstm_all * wfc_ref[1:2, :]        # (B*S, HD)
    logits = jnp.sum(prod.reshape(B, S, HD), axis=-1) + bfc_ref[...]     # (B, S)
    out_ref[...] = logits


# ----------------------------- pallas wrapper ------------------------------
def _full_spec(a):
    n = a.ndim
    return pl.BlockSpec(a.shape, lambda *_, n=n: (0,) * n)


def lstmattn_forward(cat_inputs, cont_inputs, mask, p):
    # Only tiny glue remains outside the kernel: pack the 6 (B,S) index arrays
    # into one flat int32 scalar-prefetch vector (layout [feature][b][s]) and
    # flatten the continuous features to time-major rows.
    cat_idx = jnp.stack([cat_inputs[f].astype(jnp.int32) for f in CAT_ORDER]
                        ).reshape(-1)                               # (N_CAT*B*S,)
    cont_tm = jnp.transpose(cont_inputs, (1, 0, 2)).reshape(S * B, N_CONT)
    mask_f = jnp.asarray(mask, jnp.float32)

    vmem_args = ([p["emb_" + f] for f in CAT_ORDER]
                 + [cont_tm, mask_f,
                    p["w_comb"], p["b_comb"], p["ln_comb"],
                    p["w_cont"], p["b_cont"], p["ln_cont"],
                    p["w_ih0"], p["b_lstm0"], p["w_hh_fused"], p["b_lstm1"],
                    p["w_qkv"], p["b_qkv"], p["w_attn_o"], p["b_attn_o"], p["ln_attn"],
                    p["w_inter"], p["b_inter"], p["w_ffn_o"], p["b_ffn_o"], p["ln_ffn"],
                    p["w_fc"], p["b_fc"]])

    grid_spec = pltpu.PrefetchScalarGridSpec(
        num_scalar_prefetch=1,
        grid=(1,),
        in_specs=[_full_spec(a) for a in vmem_args],
        out_specs=pl.BlockSpec((B, S), lambda i, *_: (0, 0)),
    )

    return pl.pallas_call(
        lstmattn_kernel,
        out_shape=jax.ShapeDtypeStruct((B, S), jnp.float32),
        grid_spec=grid_spec,
        compiler_params=pltpu.CompilerParams(
            dimension_semantics=("arbitrary",),
            vmem_limit_bytes=48 * 1024 * 1024),
    )(cat_idx, *vmem_args)                                          # (B, S)


# --------------------------- deterministic params ---------------------------
def init_params(key):
    ks = iter(jax.random.split(key, 64))

    def nrm(shape, scale=0.1):
        return scale * jax.random.normal(next(ks), shape, dtype=jnp.float32)

    p = {}
    for f in CAT_ORDER:
        p["emb_" + f] = nrm((VOCABS[f], INTD))
    # comb_proj: Linear(N_CAT*INTD -> HD//2) + LayerNorm(HD//2, eps=1e-6)
    p["w_comb"] = nrm((N_CAT * INTD, HALF)); p["b_comb"] = nrm((1, HALF))
    p["ln_comb"] = jnp.concatenate([1.0 + nrm((1, HALF)), nrm((1, HALF))], 0)
    # cont_proj: Linear(N_CONT -> HD//2) + LayerNorm(HD//2, eps=1e-6)
    p["w_cont"] = nrm((N_CONT, HALF)); p["b_cont"] = nrm((1, HALF))
    p["ln_cont"] = jnp.concatenate([1.0 + nrm((1, HALF)), nrm((1, HALF))], 0)
    # 2-layer LSTM, PyTorch gate order (i,f,g,o); weights stored transposed; b = b_ih + b_hh
    p["w_ih0"] = nrm((HD, 4 * HD)); p["w_hh0"] = nrm((HD, 4 * HD)); p["b_lstm0"] = nrm((1, 4 * HD))
    p["w_ih1"] = nrm((HD, 4 * HD)); p["w_hh1"] = nrm((HD, 4 * HD)); p["b_lstm1"] = nrm((1, 4 * HD))
    # BertLayer (hidden=HD, heads=2, intermediate=HD)
    p["w_qkv"] = nrm((HD, 3 * HD)); p["b_qkv"] = nrm((1, 3 * HD))
    p["w_attn_o"] = nrm((HD, HD)); p["b_attn_o"] = nrm((1, HD))
    p["ln_attn"] = jnp.concatenate([1.0 + nrm((1, HD)), nrm((1, HD))], 0)
    p["w_inter"] = nrm((HD, HD)); p["b_inter"] = nrm((1, HD))
    p["w_ffn_o"] = nrm((HD, HD)); p["b_ffn_o"] = nrm((1, HD))
    p["ln_ffn"] = jnp.concatenate([1.0 + nrm((1, HD)), nrm((1, HD))], 0)
    # fc: Linear(2*HD -> 1); row 0 multiplies sequence_output, row 1 the LSTM out
    p["w_fc"] = nrm((2, HD))
    p["b_fc"] = nrm((1, 1))
    return p


def prep_params(p):
    """Offline weight prep (zero runtime cost):
      * LSTM gate columns (i|f|g|o) -> (i|f|o|g) so sigmoid/tanh hit contiguous slabs,
      * fused per-step recurrence weight [[Whh0, Wih1], [0, Whh1]]  (2*HD, 8*HD),
      * fold 1/sqrt(head_dim) into the Q columns of w_qkv / b_qkv."""
    q = dict(p)

    def perm(w):
        return jnp.concatenate([w[..., :2 * HD], w[..., 3 * HD:], w[..., 2 * HD:3 * HD]],
                               axis=-1)

    q["w_ih0"] = perm(p["w_ih0"])
    q["b_lstm0"] = perm(p["b_lstm0"])
    q["b_lstm1"] = perm(p["b_lstm1"])
    top = jnp.concatenate([perm(p["w_hh0"]), perm(p["w_ih1"])], axis=1)            # (HD, 8*HD)
    bot = jnp.concatenate([jnp.zeros((HD, 4 * HD), jnp.float32), perm(p["w_hh1"])],
                          axis=1)                                                   # (HD, 8*HD)
    q["w_hh_fused"] = jnp.concatenate([top, bot], axis=0)                           # (2*HD, 8*HD)

    scale = 1.0 / math.sqrt(HEAD_DIM)
    q["w_qkv"] = p["w_qkv"].at[:, :HD].multiply(scale)
    q["b_qkv"] = p["b_qkv"].at[:, :HD].multiply(scale)
    return q


if __name__ == "__main__":
    key = jax.random.PRNGKey(0)
    pkey, dkey = jax.random.split(key)
    params = prep_params(init_params(pkey))

    dks = jax.random.split(dkey, len(CAT_ORDER) + 1)
    cat_inputs = {f: jax.random.randint(dks[i], (B, S), 0, VOCABS[f])
                  for i, f in enumerate(CAT_ORDER)}
    cont_inputs = jax.random.normal(dks[-1], (B, S, N_CONT), dtype=jnp.float32)
    # left-padded attention mask (1 = attend)
    mask = jnp.array([[0, 0, 0, 1, 1, 1, 1, 1],
                      [1, 1, 1, 1, 1, 1, 1, 1]], dtype=jnp.float32)

    fwd = jax.jit(lambda c, x, m: lstmattn_forward(c, x, m, params))
    logits = fwd(cat_inputs, cont_inputs, mask)
    jax.block_until_ready(logits)
    assert logits.shape == (B, S) and bool(jnp.all(jnp.isfinite(logits)))
    print("KERNEL_OK")
</pallas_src>

<mosaic_0001>
module attributes {stable_mosaic.version = 11 : i64} {
  func.func @lstmattn_kernel(%arg0: i32, %arg1: memref<96xi32, #tpu.memory_space<smem>>, %arg2: memref<1539x16xf32, #tpu.memory_space<vmem>>, %arg3: memref<9456x16xf32, #tpu.memory_space<vmem>>, %arg4: memref<914x16xf32, #tpu.memory_space<vmem>>, %arg5: memref<3x16xf32, #tpu.memory_space<vmem>>, %arg6: memref<14x16xf32, #tpu.memory_space<vmem>>, %arg7: memref<10x16xf32, #tpu.memory_space<vmem>>, %arg8: memref<16x3xf32, #tpu.memory_space<vmem>>, %arg9: memref<2x8xf32, #tpu.memory_space<vmem>>, %arg10: memref<96x16xf32, #tpu.memory_space<vmem>>, %arg11: memref<1x16xf32, #tpu.memory_space<vmem>>, %arg12: memref<2x16xf32, #tpu.memory_space<vmem>>, %arg13: memref<3x16xf32, #tpu.memory_space<vmem>>, %arg14: memref<1x16xf32, #tpu.memory_space<vmem>>, %arg15: memref<2x16xf32, #tpu.memory_space<vmem>>, %arg16: memref<32x128xf32, #tpu.memory_space<vmem>>, %arg17: memref<1x128xf32, #tpu.memory_space<vmem>>, %arg18: memref<64x256xf32, #tpu.memory_space<vmem>>, %arg19: memref<1x128xf32, #tpu.memory_space<vmem>>, %arg20: memref<32x96xf32, #tpu.memory_space<vmem>>, %arg21: memref<1x96xf32, #tpu.memory_space<vmem>>, %arg22: memref<32x32xf32, #tpu.memory_space<vmem>>, %arg23: memref<1x32xf32, #tpu.memory_space<vmem>>, %arg24: memref<2x32xf32, #tpu.memory_space<vmem>>, %arg25: memref<32x32xf32, #tpu.memory_space<vmem>>, %arg26: memref<1x32xf32, #tpu.memory_space<vmem>>, %arg27: memref<32x32xf32, #tpu.memory_space<vmem>>, %arg28: memref<1x32xf32, #tpu.memory_space<vmem>>, %arg29: memref<2x32xf32, #tpu.memory_space<vmem>>, %arg30: memref<2x32xf32, #tpu.memory_space<vmem>>, %arg31: memref<1x1xf32, #tpu.memory_space<vmem>>, %arg32: memref<2x8xf32, #tpu.memory_space<vmem>>) attributes {dimension_semantics = [#tpu.dimension_semantics<arbitrary>], iteration_bounds = array<i64: 1>, scalar_prefetch = 1 : i64, scratch_operands = 0 : i64, tpu.core_type = #tpu.core_type<tc>, window_params = [{pipeline_mode = #tpu.pipeline_mode<synchronous>, transform_indices = @transform_0, window_bounds = array<i64: 1539, 16>}, {pipeline_mode = #tpu.pipeline_mode<synchronous>, transform_indices = @transform_1, window_bounds = array<i64: 9456, 16>}, {pipeline_mode = #tpu.pipeline_mode<synchronous>, transform_indices = @transform_2, window_bounds = array<i64: 914, 16>}, {pipeline_mode = #tpu.pipeline_mode<synchronous>, transform_indices = @transform_3, window_bounds = array<i64: 3, 16>}, {pipeline_mode = #tpu.pipeline_mode<synchronous>, transform_indices = @transform_4, window_bounds = array<i64: 14, 16>}, {pipeline_mode = #tpu.pipeline_mode<synchronous>, transform_indices = @transform_5, window_bounds = array<i64: 10, 16>}, {pipeline_mode = #tpu.pipeline_mode<synchronous>, transform_indices = @transform_6, window_bounds = array<i64: 16, 3>}, {pipeline_mode = #tpu.pipeline_mode<synchronous>, transform_indices = @transform_7, window_bounds = array<i64: 2, 8>}, {pipeline_mode = #tpu.pipeline_mode<synchronous>, transform_indices = @transform_8, window_bounds = array<i64: 96, 16>}, {pipeline_mode = #tpu.pipeline_mode<synchronous>, transform_indices = @transform_9, window_bounds = array<i64: 1, 16>}, {pipeline_mode = #tpu.pipeline_mode<synchronous>, transform_indices = @transform_10, window_bounds = array<i64: 2, 16>}, {pipeline_mode = #tpu.pipeline_mode<synchronous>, transform_indices = @transform_11, window_bounds = array<i64: 3, 16>}, {pipeline_mode = #tpu.pipeline_mode<synchronous>, transform_indices = @transform_12, window_bounds = array<i64: 1, 16>}, {pipeline_mode = #tpu.pipeline_mode<synchronous>, transform_indices = @transform_13, window_bounds = array<i64: 2, 16>}, {pipeline_mode = #tpu.pipeline_mode<synchronous>, transform_indices = @transform_14, window_bounds = array<i64: 32, 128>}, {pipeline_mode = #tpu.pipeline_mode<synchronous>, transform_indices = @transform_15, window_bounds = array<i64: 1, 128>}, {pipeline_mode = #tpu.pipeline_mode<synchronous>, transform_indices = @transform_16, window_bounds = array<i64: 64, 256>}, {pipeline_mode = #tpu.pipeline_mode<synchronous>, transform_indices = @transform_17, window_bounds = array<i64: 1, 128>}, {pipeline_mode = #tpu.pipeline_mode<synchronous>, transform_indices = @transform_18, window_bounds = array<i64: 32, 96>}, {pipeline_mode = #tpu.pipeline_mode<synchronous>, transform_indices = @transform_19, window_bounds = array<i64: 1, 96>}, {pipeline_mode = #tpu.pipeline_mode<synchronous>, transform_indices = @transform_20, window_bounds = array<i64: 32, 32>}, {pipeline_mode = #tpu.pipeline_mode<synchronous>, transform_indices = @transform_21, window_bounds = array<i64: 1, 32>}, {pipeline_mode = #tpu.pipeline_mode<synchronous>, transform_indices = @transform_22, window_bounds = array<i64: 2, 32>}, {pipeline_mode = #tpu.pipeline_mode<synchronous>, transform_indices = @transform_23, window_bounds = array<i64: 32, 32>}, {pipeline_mode = #tpu.pipeline_mode<synchronous>, transform_indices = @transform_24, window_bounds = array<i64: 1, 32>}, {pipeline_mode = #tpu.pipeline_mode<synchronous>, transform_indices = @transform_25, window_bounds = array<i64: 32, 32>}, {pipeline_mode = #tpu.pipeline_mode<synchronous>, transform_indices = @transform_26, window_bounds = array<i64: 1, 32>}, {pipeline_mode = #tpu.pipeline_mode<synchronous>, transform_indices = @transform_27, window_bounds = array<i64: 2, 32>}, {pipeline_mode = #tpu.pipeline_mode<synchronous>, transform_indices = @transform_28, window_bounds = array<i64: 2, 32>}, {pipeline_mode = #tpu.pipeline_mode<synchronous>, transform_indices = @transform_29, window_bounds = array<i64: 1, 1>}, {pipeline_mode = #tpu.pipeline_mode<synchronous>, transform_indices = @transform_30, window_bounds = array<i64: 2, 8>}]} {
    %c0 = arith.constant 0 : index
    %0 = memref.load %arg1[%c0] : memref<96xi32, #tpu.memory_space<smem>>
    %1 = arith.index_cast %0 : i32 to index
    %c0_0 = arith.constant 0 : index
    %2 = vector.load %arg2[%1, %c0_0] : memref<1539x16xf32, #tpu.memory_space<vmem>>, vector<1x16xf32>
    %c8 = arith.constant 8 : index
    %3 = memref.load %arg1[%c8] : memref<96xi32, #tpu.memory_space<smem>>
    %4 = arith.index_cast %3 : i32 to index
    %c0_1 = arith.constant 0 : index
    %5 = vector.load %arg2[%4, %c0_1] : memref<1539x16xf32, #tpu.memory_space<vmem>>, vector<1x16xf32>
    %c1 = arith.constant 1 : index
    %6 = memref.load %arg1[%c1] : memref<96xi32, #tpu.memory_space<smem>>
    %7 = arith.index_cast %6 : i32 to index
    %c0_2 = arith.constant 0 : index
    %8 = vector.load %arg2[%7, %c0_2] : memref<1539x16xf32, #tpu.memory_space<vmem>>, vector<1x16xf32>
    %c9 = arith.constant 9 : index
    %9 = memref.load %arg1[%c9] : memref<96xi32, #tpu.memory_space<smem>>
    %10 = arith.index_cast %9 : i32 to index
    %c0_3 = arith.constant 0 : index
    %11 = vector.load %arg2[%10, %c0_3] : memref<1539x16xf32, #tpu.memory_space<vmem>>, vector<1x16xf32>
    %c2 = arith.constant 2 : index
    %12 = memref.load %arg1[%c2] : memref<96xi32, #tpu.memory_space<smem>>
    %13 = arith.index_cast %12 : i32 to index
    %c0_4 = arith.constant 0 : index
    %14 = vector.load %arg2[%13, %c0_4] : memref<1539x16xf32, #tpu.memory_space<vmem>>, vector<1x16xf32>
    %c10 = arith.constant 10 : index
    %15 = memref.load %arg1[%c10] : memref<96xi32, #tpu.memory_space<smem>>
    %16 = arith.index_cast %15 : i32 to index
    %c0_5 = arith.constant 0 : index
    %17 = vector.load %arg2[%16, %c0_5] : memref<1539x16xf32, #tpu.memory_space<vmem>>, vector<1x16xf32>
    %c3 = arith.constant 3 : index
    %18 = memref.load %arg1[%c3] : memref<96xi32, #tpu.memory_space<smem>>
    %19 = arith.index_cast %18 : i32 to index
    %c0_6 = arith.constant 0 : index
    %20 = vector.load %arg2[%19, %c0_6] : memref<1539x16xf32, #tpu.memory_space<vmem>>, vector<1x16xf32>
    %c11 = arith.constant 11 : index
    %21 = memref.load %arg1[%c11] : memref<96xi32, #tpu.memory_space<smem>>
    %22 = arith.index_cast %21 : i32 to index
    %c0_7 = arith.constant 0 : index
    %23 = vector.load %arg2[%22, %c0_7] : memref<1539x16xf32, #tpu.memory_space<vmem>>, vector<1x16xf32>
    %c4 = arith.constant 4 : index
    %24 = memref.load %arg1[%c4] : memref<96xi32, #tpu.memory_space<smem>>
    %25 = arith.index_cast %24 : i32 to index
    %c0_8 = arith.constant 0 : index
    %26 = vector.load %arg2[%25, %c0_8] : memref<1539x16xf32, #tpu.memory_space<vmem>>, vector<1x16xf32>
    %c12 = arith.constant 12 : index
    %27 = memref.load %arg1[%c12] : memref<96xi32, #tpu.memory_space<smem>>
    %28 = arith.index_cast %27 : i32 to index
    %c0_9 = arith.constant 0 : index
    %29 = vector.load %arg2[%28, %c0_9] : memref<1539x16xf32, #tpu.memory_space<vmem>>, vector<1x16xf32>
    %c5 = arith.constant 5 : index
    %30 = memref.load %arg1[%c5] : memref<96xi32, #tpu.memory_space<smem>>
    %31 = arith.index_cast %30 : i32 to index
    %c0_10 = arith.constant 0 : index
    %32 = vector.load %arg2[%31, %c0_10] : memref<1539x16xf32, #tpu.memory_space<vmem>>, vector<1x16xf32>
    %c13 = arith.constant 13 : index
    %33 = memref.load %arg1[%c13] : memref<96xi32, #tpu.memory_space<smem>>
    %34 = arith.index_cast %33 : i32 to index
    %c0_11 = arith.constant 0 : index
    %35 = vector.load %arg2[%34, %c0_11] : memref<1539x16xf32, #tpu.memory_space<vmem>>, vector<1x16xf32>
    %c6 = arith.constant 6 : index
    %36 = memref.load %arg1[%c6] : memref<96xi32, #tpu.memory_space<smem>>
    %37 = arith.index_cast %36 : i32 to index
    %c0_12 = arith.constant 0 : index
    %38 = vector.load %arg2[%37, %c0_12] : memref<1539x16xf32, #tpu.memory_space<vmem>>, vector<1x16xf32>
    %c14 = arith.constant 14 : index
    %39 = memref.load %arg1[%c14] : memref<96xi32, #tpu.memory_space<smem>>
    %40 = arith.index_cast %39 : i32 to index
    %c0_13 = arith.constant 0 : index
    %41 = vector.load %arg2[%40, %c0_13] : memref<1539x16xf32, #tpu.memory_space<vmem>>, vector<1x16xf32>
    %c7 = arith.constant 7 : index
    %42 = memref.load %arg1[%c7] : memref<96xi32, #tpu.memory_space<smem>>
    %43 = arith.index_cast %42 : i32 to index
    %c0_14 = arith.constant 0 : index
    %44 = vector.load %arg2[%43, %c0_14] : memref<1539x16xf32, #tpu.memory_space<vmem>>, vector<1x16xf32>
    %c15 = arith.constant 15 : index
    %45 = memref.load %arg1[%c15] : memref<96xi32, #tpu.memory_space<smem>>
    %46 = arith.index_cast %45 : i32 to index
    %c0_15 = arith.constant 0 : index
    %47 = vector.load %arg2[%46, %c0_15] : memref<1539x16xf32, #tpu.memory_space<vmem>>, vector<1x16xf32>
    %48 = tpu.concatenate %2, %5, %8, %11, %14, %17, %20, %23, %26, %29, %32, %35, %38, %41, %44, %47 in 0 : vector<1x16xf32>, vector<1x16xf32>, vector<1x16xf32>, vector<1x16xf32>, vector<1x16xf32>, vector<1x16xf32>, vector<1x16xf32>, vector<1x16xf32>, vector<1x16xf32>, vector<1x16xf32>, vector<1x16xf32>, vector<1x16xf32>, vector<1x16xf32>, vector<1x16xf32>, vector<1x16xf32>, vector<1x16xf32> -> vector<16x16xf32>
    %c0_16 = arith.constant 0 : index
    %c0_17 = arith.constant 0 : index
    %49 = vector.load %arg10[%c0_16, %c0_17] : memref<96x16xf32, #tpu.memory_space<vmem>>, vector<16x16xf32>
    %cst = arith.constant dense<0.000000e+00> : vector<16x16xf32>
    %50 = tpu.matmul %48, %49, %cst {dimension_numbers = #tpu.dot_dimension_numbers<[1], [0], [0], [1], [0, 0, 1, 1], [], []>} : vector<16x16xf32>, vector<16x16xf32>, vector<16x16xf32> -> vector<16x16xf32>
    %c16 = arith.constant 16 : index
    %51 = memref.load %arg1[%c16] : memref<96xi32, #tpu.memory_space<smem>>
    %52 = arith.index_cast %51 : i32 to index
    %c0_18 = arith.constant 0 : index
    %53 = vector.load %arg3[%52, %c0_18] : memref<9456x16xf32, #tpu.memory_space<vmem>>, vector<1x16xf32>
    %c24 = arith.constant 24 : index
    %54 = memref.load %arg1[%c24] : memref<96xi32, #tpu.memory_space<smem>>
    %55 = arith.index_cast %54 : i32 to index
    %c0_19 = arith.constant 0 : index
    %56 = vector.load %arg3[%55, %c0_19] : memref<9456x16xf32, #tpu.memory_space<vmem>>, vector<1x16xf32>
    %c17 = arith.constant 17 : index
    %57 = memref.load %arg1[%c17] : memref<96xi32, #tpu.memory_space<smem>>
    %58 = arith.index_cast %57 : i32 to index
    %c0_20 = arith.constant 0 : index
    %59 = vector.load %arg3[%58, %c0_20] : memref<9456x16xf32, #tpu.memory_space<vmem>>, vector<1x16xf32>
    %c25 = arith.constant 25 : index
    %60 = memref.load %arg1[%c25] : memref<96xi32, #tpu.memory_space<smem>>
    %61 = arith.index_cast %60 : i32 to index
    %c0_21 = arith.constant 0 : index
    %62 = vector.load %arg3[%61, %c0_21] : memref<9456x16xf32, #tpu.memory_space<vmem>>, vector<1x16xf32>
    %c18 = arith.constant 18 : index
    %63 = memref.load %arg1[%c18] : memref<96xi32, #tpu.memory_space<smem>>
    %64 = arith.index_cast %63 : i32 to index
    %c0_22 = arith.constant 0 : index
    %65 = vector.load %arg3[%64, %c0_22] : memref<9456x16xf32, #tpu.memory_space<vmem>>, vector<1x16xf32>
    %c26 = arith.constant 26 : index
    %66 = memref.load %arg1[%c26] : memref<96xi32, #tpu.memory_space<smem>>
    %67 = arith.index_cast %66 : i32 to index
    %c0_23 = arith.constant 0 : index
    %68 = vector.load %arg3[%67, %c0_23] : memref<9456x16xf32, #tpu.memory_space<vmem>>, vector<1x16xf32>
    %c19 = arith.constant 19 : index
    %69 = memref.load %arg1[%c19] : memref<96xi32, #tpu.memory_space<smem>>
    %70 = arith.index_cast %69 : i32 to index
    %c0_24 = arith.constant 0 : index
    %71 = vector.load %arg3[%70, %c0_24] : memref<9456x16xf32, #tpu.memory_space<vmem>>, vector<1x16xf32>
    %c27 = arith.constant 27 : index
    %72 = memref.load %arg1[%c27] : memref<96xi32, #tpu.memory_space<smem>>
    %73 = arith.index_cast %72 : i32 to index
    %c0_25 = arith.constant 0 : index
    %74 = vector.load %arg3[%73, %c0_25] : memref<9456x16xf32, #tpu.memory_space<vmem>>, vector<1x16xf32>
    %c20 = arith.constant 20 : index
    %75 = memref.load %arg1[%c20] : memref<96xi32, #tpu.memory_space<smem>>
    %76 = arith.index_cast %75 : i32 to index
    %c0_26 = arith.constant 0 : index
    %77 = vector.load %arg3[%76, %c0_26] : memref<9456x16xf32, #tpu.memory_space<vmem>>, vector<1x16xf32>
    %c28 = arith.constant 28 : index
    %78 = memref.load %arg1[%c28] : memref<96xi32, #tpu.memory_space<smem>>
    %79 = arith.index_cast %78 : i32 to index
    %c0_27 = arith.constant 0 : index
    %80 = vector.load %arg3[%79, %c0_27] : memref<9456x16xf32, #tpu.memory_space<vmem>>, vector<1x16xf32>
    %c21 = arith.constant 21 : index
    %81 = memref.load %arg1[%c21] : memref<96xi32, #tpu.memory_space<smem>>
    %82 = arith.index_cast %81 : i32 to index
    %c0_28 = arith.constant 0 : index
    %83 = vector.load %arg3[%82, %c0_28] : memref<9456x16xf32, #tpu.memory_space<vmem>>, vector<1x16xf32>
    %c29 = arith.constant 29 : index
    %84 = memref.load %arg1[%c29] : memref<96xi32, #tpu.memory_space<smem>>
    %85 = arith.index_cast %84 : i32 to index
    %c0_29 = arith.constant 0 : index
    %86 = vector.load %arg3[%85, %c0_29] : memref<9456x16xf32, #tpu.memory_space<vmem>>, vector<1x16xf32>
    %c22 = arith.constant 22 : index
    %87 = memref.load %arg1[%c22] : memref<96xi32, #tpu.memory_space<smem>>
    %88 = arith.index_cast %87 : i32 to index
    %c0_30 = arith.constant 0 : index
    %89 = vector.load %arg3[%88, %c0_30] : memref<9456x16xf32, #tpu.memory_space<vmem>>, vector<1x16xf32>
    %c30 = arith.constant 30 : index
    %90 = memref.load %arg1[%c30] : memref<96xi32, #tpu.memory_space<smem>>
    %91 = arith.index_cast %90 : i32 to index
    %c0_31 = arith.constant 0 : index
    %92 = vector.load %arg3[%91, %c0_31] : memref<9456x16xf32, #tpu.memory_space<vmem>>, vector<1x16xf32>
    %c23 = arith.constant 23 : index
    %93 = memref.load %arg1[%c23] : memref<96xi32, #tpu.memory_space<smem>>
    %94 = arith.index_cast %93 : i32 to index
    %c0_32 = arith.constant 0 : index
    %95 = vector.load %arg3[%94, %c0_32] : memref<9456x16xf32, #tpu.memory_space<vmem>>, vector<1x16xf32>
    %c31 = arith.constant 31 : index
    %96 = memref.load %arg1[%c31] : memref<96xi32, #tpu.memory_space<smem>>
    %97 = arith.index_cast %96 : i32 to index
    %c0_33 = arith.constant 0 : index
    %98 = vector.load %arg3[%97, %c0_33] : memref<9456x16xf32, #tpu.memory_space<vmem>>, vector<1x16xf32>
    %99 = tpu.concatenate %53, %56, %59, %62, %65, %68, %71, %74, %77, %80, %83, %86, %89, %92, %95, %98 in 0 : vector<1x16xf32>, vector<1x16xf32>, vector<1x16xf32>, vector<1x16xf32>, vector<1x16xf32>, vector<1x16xf32>, vector<1x16xf32>, vector<1x16xf32>, vector<1x16xf32>, vector<1x16xf32>, vector<1x16xf32>, vector<1x16xf32>, vector<1x16xf32>, vector<1x16xf32>, vector<1x16xf32>, vector<1x16xf32> -> vector<16x16xf32>
    %c16_34 = arith.constant 16 : index
    %c0_35 = arith.constant 0 : index
    %100 = vector.load %arg10[%c16_34, %c0_35] : memref<96x16xf32, #tpu.memory_space<vmem>>, vector<16x16xf32>
    %cst_36 = arith.constant dense<0.000000e+00> : vector<16x16xf32>
    %101 = tpu.matmul %99, %100, %cst_36 {dimension_numbers = #tpu.dot_dimension_numbers<[1], [0], [0], [1], [0, 0, 1, 1], [], []>} : vector<16x16xf32>, vector<16x16xf32>, vector<16x16xf32> -> vector<16x16xf32>
    %102 = arith.addf %50, %101 : vector<16x16xf32>
    %c32 = arith.constant 32 : index
    %103 = memref.load %arg1[%c32] : memref<96xi32, #tpu.memory_space<smem>>
    %104 = arith.index_cast %103 : i32 to index
    %c0_37 = arith.constant 0 : index
    %105 = vector.load %arg4[%104, %c0_37] : memref<914x16xf32, #tpu.memory_space<vmem>>, vector<1x16xf32>
    %c40 = arith.constant 40 : index
    %106 = memref.load %arg1[%c40] : memref<96xi32, #tpu.memory_space<smem>>
    %107 = arith.index_cast %106 : i32 to index
    %c0_38 = arith.constant 0 : index
    %108 = vector.load %arg4[%107, %c0_38] : memref<914x16xf32, #tpu.memory_space<vmem>>, vector<1x16xf32>
    %c33 = arith.constant 33 : index
    %109 = memref.load %arg1[%c33] : memref<96xi32, #tpu.memory_space<smem>>
    %110 = arith.index_cast %109 : i32 to index
    %c0_39 = arith.constant 0 : index
    %111 = vector.load %arg4[%110, %c0_39] : memref<914x16xf32, #tpu.memory_space<vmem>>, vector<1x16xf32>
    %c41 = arith.constant 41 : index
    %112 = memref.load %arg1[%c41] : memref<96xi32, #tpu.memory_space<smem>>
    %113 = arith.index_cast %112 : i32 to index
    %c0_40 = arith.constant 0 : index
    %114 = vector.load %arg4[%113, %c0_40] : memref<914x16xf32, #tpu.memory_space<vmem>>, vector<1x16xf32>
    %c34 = arith.constant 34 : index
    %115 = memref.load %arg1[%c34] : memref<96xi32, #tpu.memory_space<smem>>
    %116 = arith.index_cast %115 : i32 to index
    %c0_41 = arith.constant 0 : index
    %117 = vector.load %arg4[%116, %c0_41] : memref<914x16xf32, #tpu.memory_space<vmem>>, vector<1x16xf32>
    %c42 = arith.constant 42 : index
    %118 = memref.load %arg1[%c42] : memref<96xi32, #tpu.memory_space<smem>>
    %119 = arith.index_cast %118 : i32 to index
    %c0_42 = arith.constant 0 : index
    %120 = vector.load %arg4[%119, %c0_42] : memref<914x16xf32, #tpu.memory_space<vmem>>, vector<1x16xf32>
    %c35 = arith.constant 35 : index
    %121 = memref.load %arg1[%c35] : memref<96xi32, #tpu.memory_space<smem>>
    %122 = arith.index_cast %121 : i32 to index
    %c0_43 = arith.constant 0 : index
    %123 = vector.load %arg4[%122, %c0_43] : memref<914x16xf32, #tpu.memory_space<vmem>>, vector<1x16xf32>
    %c43 = arith.constant 43 : index
    %124 = memref.load %arg1[%c43] : memref<96xi32, #tpu.memory_space<smem>>
    %125 = arith.index_cast %124 : i32 to index
    %c0_44 = arith.constant 0 : index
    %126 = vector.load %arg4[%125, %c0_44] : memref<914x16xf32, #tpu.memory_space<vmem>>, vector<1x16xf32>
    %c36 = arith.constant 36 : index
    %127 = memref.load %arg1[%c36] : memref<96xi32, #tpu.memory_space<smem>>
    %128 = arith.index_cast %127 : i32 to index
    %c0_45 = arith.constant 0 : index
    %129 = vector.load %arg4[%128, %c0_45] : memref<914x16xf32, #tpu.memory_space<vmem>>, vector<1x16xf32>
    %c44 = arith.constant 44 : index
    %130 = memref.load %arg1[%c44] : memref<96xi32, #tpu.memory_space<smem>>
    %131 = arith.index_cast %130 : i32 to index
    %c0_46 = arith.constant 0 : index
    %132 = vector.load %arg4[%131, %c0_46] : memref<914x16xf32, #tpu.memory_space<vmem>>, vector<1x16xf32>
    %c37 = arith.constant 37 : index
    %133 = memref.load %arg1[%c37] : memref<96xi32, #tpu.memory_space<smem>>
    %134 = arith.index_cast %133 : i32 to index
    %c0_47 = arith.constant 0 : index
    %135 = vector.load %arg4[%134, %c0_47] : memref<914x16xf32, #tpu.memory_space<vmem>>, vector<1x16xf32>
    %c45 = arith.constant 45 : index
    %136 = memref.load %arg1[%c45] : memref<96xi32, #tpu.memory_space<smem>>
    %137 = arith.index_cast %136 : i32 to index
    %c0_48 = arith.constant 0 : index
    %138 = vector.load %arg4[%137, %c0_48] : memref<914x16xf32, #tpu.memory_space<vmem>>, vector<1x16xf32>
    %c38 = arith.constant 38 : index
    %139 = memref.load %arg1[%c38] : memref<96xi32, #tpu.memory_space<smem>>
    %140 = arith.index_cast %139 : i32 to index
    %c0_49 = arith.constant 0 : index
    %141 = vector.load %arg4[%140, %c0_49] : memref<914x16xf32, #tpu.memory_space<vmem>>, vector<1x16xf32>
    %c46 = arith.constant 46 : index
    %142 = memref.load %arg1[%c46] : memref<96xi32, #tpu.memory_space<smem>>
    %143 = arith.index_cast %142 : i32 to index
    %c0_50 = arith.constant 0 : index
    %144 = vector.load %arg4[%143, %c0_50] : memref<914x16xf32, #tpu.memory_space<vmem>>, vector<1x16xf32>
    %c39 = arith.constant 39 : index
    %145 = memref.load %arg1[%c39] : memref<96xi32, #tpu.memory_space<smem>>
    %146 = arith.index_cast %145 : i32 to index
    %c0_51 = arith.constant 0 : index
    %147 = vector.load %arg4[%146, %c0_51] : memref<914x16xf32, #tpu.memory_space<vmem>>, vector<1x16xf32>
    %c47 = arith.constant 47 : index
    %148 = memref.load %arg1[%c47] : memref<96xi32, #tpu.memory_space<smem>>
    %149 = arith.index_cast %148 : i32 to index
    %c0_52 = arith.constant 0 : index
    %150 = vector.load %arg4[%149, %c0_52] : memref<914x16xf32, #tpu.memory_space<vmem>>, vector<1x16xf32>
    %151 = tpu.concatenate %105, %108, %111, %114, %117, %120, %123, %126, %129, %132, %135, %138, %141, %144, %147, %150 in 0 : vector<1x16xf32>, vector<1x16xf32>, vector<1x16xf32>, vector<1x16xf32>, vector<1x16xf32>, vector<1x16xf32>, vector<1x16xf32>, vector<1x16xf32>, vector<1x16xf32>, vector<1x16xf32>, vector<1x16xf32>, vector<1x16xf32>, vector<1x16xf32>, vector<1x16xf32>, vector<1x16xf32>, vector<1x16xf32> -> vector<16x16xf32>
    %c32_53 = arith.constant 32 : index
    %c0_54 = arith.constant 0 : index
    %152 = vector.load %arg10[%c32_53, %c0_54] : memref<96x16xf32, #tpu.memory_space<vmem>>, vector<16x16xf32>
    %cst_55 = arith.constant dense<0.000000e+00> : vector<16x16xf32>
    %153 = tpu.matmul %151, %152, %cst_55 {dimension_numbers = #tpu.dot_dimension_numbers<[1], [0], [0], [1], [0, 0, 1, 1], [], []>} : vector<16x16xf32>, vector<16x16xf32>, vector<16x16xf32> -> vector<16x16xf32>
    %154 = arith.addf %102, %153 : vector<16x16xf32>
    %c48 = arith.constant 48 : index
    %155 = memref.load %arg1[%c48] : memref<96xi32, #tpu.memory_space<smem>>
    %156 = arith.index_cast %155 : i32 to index
    %c0_56 = arith.constant 0 : index
    %157 = vector.load %arg5[%156, %c0_56] : memref<3x16xf32, #tpu.memory_space<vmem>>, vector<1x16xf32>
    %c56 = arith.constant 56 : index
    %158 = memref.load %arg1[%c56] : memref<96xi32, #tpu.memory_space<smem>>
    %159 = arith.index_cast %158 : i32 to index
    %c0_57 = arith.constant 0 : index
    %160 = vector.load %arg5[%159, %c0_57] : memref<3x16xf32, #tpu.memory_space<vmem>>, vector<1x16xf32>
    %c49 = arith.constant 49 : index
    %161 = memref.load %arg1[%c49] : memref<96xi32, #tpu.memory_space<smem>>
    %162 = arith.index_cast %161 : i32 to index
    %c0_58 = arith.constant 0 : index
    %163 = vector.load %arg5[%162, %c0_58] : memref<3x16xf32, #tpu.memory_space<vmem>>, vector<1x16xf32>
    %c57 = arith.constant 57 : index
    %164 = memref.load %arg1[%c57] : memref<96xi32, #tpu.memory_space<smem>>
    %165 = arith.index_cast %164 : i32 to index
    %c0_59 = arith.constant 0 : index
    %166 = vector.load %arg5[%165, %c0_59] : memref<3x16xf32, #tpu.memory_space<vmem>>, vector<1x16xf32>
    %c50 = arith.constant 50 : index
    %167 = memref.load %arg1[%c50] : memref<96xi32, #tpu.memory_space<smem>>
    %168 = arith.index_cast %167 : i32 to index
    %c0_60 = arith.constant 0 : index
    %169 = vector.load %arg5[%168, %c0_60] : memref<3x16xf32, #tpu.memory_space<vmem>>, vector<1x16xf32>
    %c58 = arith.constant 58 : index
    %170 = memref.load %arg1[%c58] : memref<96xi32, #tpu.memory_space<smem>>
    %171 = arith.index_cast %170 : i32 to index
    %c0_61 = arith.constant 0 : index
    %172 = vector.load %arg5[%171, %c0_61] : memref<3x16xf32, #tpu.memory_space<vmem>>, vector<1x16xf32>
    %c51 = arith.constant 51 : index
    %173 = memref.load %arg1[%c51] : memref<96xi32, #tpu.memory_space<smem>>
    %174 = arith.index_cast %173 : i32 to index
    %c0_62 = arith.constant 0 : index
    %175 = vector.load %arg5[%174, %c0_62] : memref<3x16xf32, #tpu.memory_space<vmem>>, vector<1x16xf32>
    %c59 = arith.constant 59 : index
    %176 = memref.load %arg1[%c59] : memref<96xi32, #tpu.memory_space<smem>>
    %177 = arith.index_cast %176 : i32 to index
    %c0_63 = arith.constant 0 : index
    %178 = vector.load %arg5[%177, %c0_63] : memref<3x16xf32, #tpu.memory_space<vmem>>, vector<1x16xf32>
    %c52 = arith.constant 52 : index
    %179 = memref.load %arg1[%c52] : memref<96xi32, #tpu.memory_space<smem>>
    %180 = arith.index_cast %179 : i32 to index
    %c0_64 = arith.constant 0 : index
    %181 = vector.load %arg5[%180, %c0_64] : memref<3x16xf32, #tpu.memory_space<vmem>>, vector<1x16xf32>
    %c60 = arith.constant 60 : index
    %182 = memref.load %arg1[%c60] : memref<96xi32, #tpu.memory_space<smem>>
    %183 = arith.index_cast %182 : i32 to index
    %c0_65 = arith.constant 0 : index
    %184 = vector.load %arg5[%183, %c0_65] : memref<3x16xf32, #tpu.memory_space<vmem>>, vector<1x16xf32>
    %c53 = arith.constant 53 : index
    %185 = memref.load %arg1[%c53] : memref<96xi32, #tpu.memory_space<smem>>
    %186 = arith.index_cast %185 : i32 to index
    %c0_66 = arith.constant 0 : index
    %187 = vector.load %arg5[%186, %c0_66] : memref<3x16xf32, #tpu.memory_space<vmem>>, vector<1x16xf32>
    %c61 = arith.constant 61 : index
    %188 = memref.load %arg1[%c61] : memref<96xi32, #tpu.memory_space<smem>>
    %189 = arith.index_cast %188 : i32 to index
    %c0_67 = arith.constant 0 : index
    %190 = vector.load %arg5[%189, %c0_67] : memref<3x16xf32, #tpu.memory_space<vmem>>, vector<1x16xf32>
    %c54 = arith.constant 54 : index
    %191 = memref.load %arg1[%c54] : memref<96xi32, #tpu.memory_space<smem>>
    %192 = arith.index_cast %191 : i32 to index
    %c0_68 = arith.constant 0 : index
    %193 = vector.load %arg5[%192, %c0_68] : memref<3x16xf32, #tpu.memory_space<vmem>>, vector<1x16xf32>
    %c62 = arith.constant 62 : index
    %194 = memref.load %arg1[%c62] : memref<96xi32, #tpu.memory_space<smem>>
    %195 = arith.index_cast %194 : i32 to index
    %c0_69 = arith.constant 0 : index
    %196 = vector.load %arg5[%195, %c0_69] : memref<3x16xf32, #tpu.memory_space<vmem>>, vector<1x16xf32>
    %c55 = arith.constant 55 : index
    %197 = memref.load %arg1[%c55] : memref<96xi32, #tpu.memory_space<smem>>
    %198 = arith.index_cast %197 : i32 to index
    %c0_70 = arith.constant 0 : index
    %199 = vector.load %arg5[%198, %c0_70] : memref<3x16xf32, #tpu.memory_space<vmem>>, vector<1x16xf32>
    %c63 = arith.constant 63 : index
    %200 = memref.load %arg1[%c63] : memref<96xi32, #tpu.memory_space<smem>>
    %201 = arith.index_cast %200 : i32 to index
    %c0_71 = arith.constant 0 : index
    %202 = vector.load %arg5[%201, %c0_71] : memref<3x16xf32, #tpu.memory_space<vmem>>, vector<1x16xf32>
    %203 = tpu.concatenate %157, %160, %163, %166, %169, %172, %175, %178, %181, %184, %187, %190, %193, %196, %199, %202 in 0 : vector<1x16xf32>, vector<1x16xf32>, vector<1x16xf32>, vector<1x16xf32>, vector<1x16xf32>, vector<1x16xf32>, vector<1x16xf32>, vector<1x16xf32>, vector<1x16xf32>, vector<1x16xf32>, vector<1x16xf32>, vector<1x16xf32>, vector<1x16xf32>, vector<1x16xf32>, vector<1x16xf32>, vector<1x16xf32> -> vector<16x16xf32>
    %c48_72 = arith.constant 48 : index
    %c0_73 = arith.constant 0 : index
    %204 = vector.load %arg10[%c48_72, %c0_73] : memref<96x16xf32, #tpu.memory_space<vmem>>, vector<16x16xf32>
    %cst_74 = arith.constant dense<0.000000e+00> : vector<16x16xf32>
    %205 = tpu.matmul %203, %204, %cst_74 {dimension_numbers = #tpu.dot_dimension_numbers<[1], [0], [0], [1], [0, 0, 1, 1], [], []>} : vector<16x16xf32>, vector<16x16xf32>, vector<16x16xf32> -> vector<16x16xf32>
    %206 = arith.addf %154, %205 : vector<16x16xf32>
    %c64 = arith.constant 64 : index
    %207 = memref.load %arg1[%c64] : memref<96xi32, #tpu.memory_space<smem>>
    %208 = arith.index_cast %207 : i32 to index
    %c0_75 = arith.constant 0 : index
    %209 = vector.load %arg6[%208, %c0_75] : memref<14x16xf32, #tpu.memory_space<vmem>>, vector<1x16xf32>
    %c72 = arith.constant 72 : index
    %210 = memref.load %arg1[%c72] : memref<96xi32, #tpu.memory_space<smem>>
    %211 = arith.index_cast %210 : i32 to index
    %c0_76 = arith.constant 0 : index
    %212 = vector.load %arg6[%211, %c0_76] : memref<14x16xf32, #tpu.memory_space<vmem>>, vector<1x16xf32>
    %c65 = arith.constant 65 : index
    %213 = memref.load %arg1[%c65] : memref<96xi32, #tpu.memory_space<smem>>
    %214 = arith.index_cast %213 : i32 to index
    %c0_77 = arith.constant 0 : index
    %215 = vector.load %arg6[%214, %c0_77] : memref<14x16xf32, #tpu.memory_space<vmem>>, vector<1x16xf32>
    %c73 = arith.constant 73 : index
    %216 = memref.load %arg1[%c73] : memref<96xi32, #tpu.memory_space<smem>>
    %217 = arith.index_cast %216 : i32 to index
    %c0_78 = arith.constant 0 : index
    %218 = vector.load %arg6[%217, %c0_78] : memref<14x16xf32, #tpu.memory_space<vmem>>, vector<1x16xf32>
    %c66 = arith.constant 66 : index
    %219 = memref.load %arg1[%c66] : memref<96xi32, #tpu.memory_space<smem>>
    %220 = arith.index_cast %219 : i32 to index
    %c0_79 = arith.constant 0 : index
    %221 = vector.load %arg6[%220, %c0_79] : memref<14x16xf32, #tpu.memory_space<vmem>>, vector<1x16xf32>
    %c74 = arith.constant 74 : index
    %222 = memref.load %arg1[%c74] : memref<96xi32, #tpu.memory_space<smem>>
    %223 = arith.index_cast %222 : i32 to index
    %c0_80 = arith.constant 0 : index
    %224 = vector.load %arg6[%223, %c0_80] : memref<14x16xf32, #tpu.memory_space<vmem>>, vector<1x16xf32>
    %c67 = arith.constant 67 : index
    %225 = memref.load %arg1[%c67] : memref<96xi32, #tpu.memory_space<smem>>
    %226 = arith.index_cast %225 : i32 to index
    %c0_81 = arith.constant 0 : index
    %227 = vector.load %arg6[%226, %c0_81] : memref<14x16xf32, #tpu.memory_space<vmem>>, vector<1x16xf32>
    %c75 = arith.constant 75 : index
    %228 = memref.load %arg1[%c75] : memref<96xi32, #tpu.memory_space<smem>>
    %229 = arith.index_cast %228 : i32 to index
    %c0_82 = arith.constant 0 : index
    %230 = vector.load %arg6[%229, %c0_82] : memref<14x16xf32, #tpu.memory_space<vmem>>, vector<1x16xf32>
    %c68 = arith.constant 68 : index
    %231 = memref.load %arg1[%c68] : memref<96xi32, #tpu.memory_space<smem>>
    %232 = arith.index_cast %231 : i32 to index
    %c0_83 = arith.constant 0 : index
    %233 = vector.load %arg6[%232, %c0_83] : memref<14x16xf32, #tpu.memory_space<vmem>>, vector<1x16xf32>
    %c76 = arith.constant 76 : index
    %234 = memref.load %arg1[%c76] : memref<96xi32, #tpu.memory_space<smem>>
    %235 = arith.index_cast %234 : i32 to index
    %c0_84 = arith.constant 0 : index
    %236 = vector.load %arg6[%235, %c0_84] : memref<14x16xf32, #tpu.memory_space<vmem>>, vector<1x16xf32>
    %c69 = arith.constant 69 : index
    %237 = memref.load %arg1[%c69] : memref<96xi32, #tpu.memory_space<smem>>
    %238 = arith.index_cast %237 : i32 to index
    %c0_85 = arith.constant 0 : index
    %239 = vector.load %arg6[%238, %c0_85] : memref<14x16xf32, #tpu.memory_space<vmem>>, vector<1x16xf32>
    %c77 = arith.constant 77 : index
    %240 = memref.load %arg1[%c77] : memref<96xi32, #tpu.memory_space<smem>>
    %241 = arith.index_cast %240 : i32 to index
    %c0_86 = arith.constant 0 : index
    %242 = vector.load %arg6[%241, %c0_86] : memref<14x16xf32, #tpu.memory_space<vmem>>, vector<1x16xf32>
    %c70 = arith.constant 70 : index
    %243 = memref.load %arg1[%c70] : memref<96xi32, #tpu.memory_space<smem>>
    %244 = arith.index_cast %243 : i32 to index
    %c0_87 = arith.constant 0 : index
    %245 = vector.load %arg6[%244, %c0_87] : memref<14x16xf32, #tpu.memory_space<vmem>>, vector<1x16xf32>
    %c78 = arith.constant 78 : index
    %246 = memref.load %arg1[%c78] : memref<96xi32, #tpu.memory_space<smem>>
    %247 = arith.index_cast %246 : i32 to index
    %c0_88 = arith.constant 0 : index
    %248 = vector.load %arg6[%247, %c0_88] : memref<14x16xf32, #tpu.memory_space<vmem>>, vector<1x16xf32>
    %c71 = arith.constant 71 : index
    %249 = memref.load %arg1[%c71] : memref<96xi32, #tpu.memory_space<smem>>
    %250 = arith.index_cast %249 : i32 to index
    %c0_89 = arith.constant 0 : index
    %251 = vector.load %arg6[%250, %c0_89] : memref<14x16xf32, #tpu.memory_space<vmem>>, vector<1x16xf32>
    %c79 = arith.constant 79 : index
    %252 = memref.load %arg1[%c79] : memref<96xi32, #tpu.memory_space<smem>>
    %253 = arith.index_cast %252 : i32 to index
    %c0_90 = arith.constant 0 : index
    %254 = vector.load %arg6[%253, %c0_90] : memref<14x16xf32, #tpu.memory_space<vmem>>, vector<1x16xf32>
    %255 = tpu.concatenate %209, %212, %215, %218, %221, %224, %227, %230, %233, %236, %239, %242, %245, %248, %251, %254 in 0 : vector<1x16xf32>, vector<1x16xf32>, vector<1x16xf32>, vector<1x16xf32>, vector<1x16xf32>, vector<1x16xf32>, vector<1x16xf32>, vector<1x16xf32>, vector<1x16xf32>, vector<1x16xf32>, vector<1x16xf32>, vector<1x16xf32>, vector<1x16xf32>, vector<1x16xf32>, vector<1x16xf32>, vector<1x16xf32> -> vector<16x16xf32>
    %c64_91 = arith.constant 64 : index
    %c0_92 = arith.constant 0 : index
    %256 = vector.load %arg10[%c64_91, %c0_92] : memref<96x16xf32, #tpu.memory_space<vmem>>, vector<16x16xf32>
    %cst_93 = arith.constant dense<0.000000e+00> : vector<16x16xf32>
    %257 = tpu.matmul %255, %256, %cst_93 {dimension_numbers = #tpu.dot_dimension_numbers<[1], [0], [0], [1], [0, 0, 1, 1], [], []>} : vector<16x16xf32>, vector<16x16xf32>, vector<16x16xf32> -> vector<16x16xf32>
    %258 = arith.addf %206, %257 : vector<16x16xf32>
    %c80 = arith.constant 80 : index
    %259 = memref.load %arg1[%c80] : memref<96xi32, #tpu.memory_space<smem>>
    %260 = arith.index_cast %259 : i32 to index
    %c0_94 = arith.constant 0 : index
    %261 = vector.load %arg7[%260, %c0_94] : memref<10x16xf32, #tpu.memory_space<vmem>>, vector<1x16xf32>
    %c88 = arith.constant 88 : index
    %262 = memref.load %arg1[%c88] : memref<96xi32, #tpu.memory_space<smem>>
    %263 = arith.index_cast %262 : i32 to index
    %c0_95 = arith.constant 0 : index
    %264 = vector.load %arg7[%263, %c0_95] : memref<10x16xf32, #tpu.memory_space<vmem>>, vector<1x16xf32>
    %c81 = arith.constant 81 : index
    %265 = memref.load %arg1[%c81] : memref<96xi32, #tpu.memory_space<smem>>
    %266 = arith.index_cast %265 : i32 to index
    %c0_96 = arith.constant 0 : index
    %267 = vector.load %arg7[%266, %c0_96] : memref<10x16xf32, #tpu.memory_space<vmem>>, vector<1x16xf32>
    %c89 = arith.constant 89 : index
    %268 = memref.load %arg1[%c89] : memref<96xi32, #tpu.memory_space<smem>>
    %269 = arith.index_cast %268 : i32 to index
    %c0_97 = arith.constant 0 : index
    %270 = vector.load %arg7[%269, %c0_97] : memref<10x16xf32, #tpu.memory_space<vmem>>, vector<1x16xf32>
    %c82 = arith.constant 82 : index
    %271 = memref.load %arg1[%c82] : memref<96xi32, #tpu.memory_space<smem>>
    %272 = arith.index_cast %271 : i32 to index
    %c0_98 = arith.constant 0 : index
    %273 = vector.load %arg7[%272, %c0_98] : memref<10x16xf32, #tpu.memory_space<vmem>>, vector<1x16xf32>
    %c90 = arith.constant 90 : index
    %274 = memref.load %arg1[%c90] : memref<96xi32, #tpu.memory_space<smem>>
    %275 = arith.index_cast %274 : i32 to index
    %c0_99 = arith.constant 0 : index
    %276 = vector.load %arg7[%275, %c0_99] : memref<10x16xf32, #tpu.memory_space<vmem>>, vector<1x16xf32>
    %c83 = arith.constant 83 : index
    %277 = memref.load %arg1[%c83] : memref<96xi32, #tpu.memory_space<smem>>
    %278 = arith.index_cast %277 : i32 to index
    %c0_100 = arith.constant 0 : index
    %279 = vector.load %arg7[%278, %c0_100] : memref<10x16xf32, #tpu.memory_space<vmem>>, vector<1x16xf32>
    %c91 = arith.constant 91 : index
    %280 = memref.load %arg1[%c91] : memref<96xi32, #tpu.memory_space<smem>>
    %281 = arith.index_cast %280 : i32 to index
    %c0_101 = arith.constant 0 : index
    %282 = vector.load %arg7[%281, %c0_101] : memref<10x16xf32, #tpu.memory_space<vmem>>, vector<1x16xf32>
    %c84 = arith.constant 84 : index
    %283 = memref.load %arg1[%c84] : memref<96xi32, #tpu.memory_space<smem>>
    %284 = arith.index_cast %283 : i32 to index
    %c0_102 = arith.constant 0 : index
    %285 = vector.load %arg7[%284, %c0_102] : memref<10x16xf32, #tpu.memory_space<vmem>>, vector<1x16xf32>
    %c92 = arith.constant 92 : index
    %286 = memref.load %arg1[%c92] : memref<96xi32, #tpu.memory_space<smem>>
    %287 = arith.index_cast %286 : i32 to index
    %c0_103 = arith.constant 0 : index
    %288 = vector.load %arg7[%287, %c0_103] : memref<10x16xf32, #tpu.memory_space<vmem>>, vector<1x16xf32>
    %c85 = arith.constant 85 : index
    %289 = memref.load %arg1[%c85] : memref<96xi32, #tpu.memory_space<smem>>
    %290 = arith.index_cast %289 : i32 to index
    %c0_104 = arith.constant 0 : index
    %291 = vector.load %arg7[%290, %c0_104] : memref<10x16xf32, #tpu.memory_space<vmem>>, vector<1x16xf32>
    %c93 = arith.constant 93 : index
    %292 = memref.load %arg1[%c93] : memref<96xi32, #tpu.memory_space<smem>>
    %293 = arith.index_cast %292 : i32 to index
    %c0_105 = arith.constant 0 : index
    %294 = vector.load %arg7[%293, %c0_105] : memref<10x16xf32, #tpu.memory_space<vmem>>, vector<1x16xf32>
    %c86 = arith.constant 86 : index
    %295 = memref.load %arg1[%c86] : memref<96xi32, #tpu.memory_space<smem>>
    %296 = arith.index_cast %295 : i32 to index
    %c0_106 = arith.constant 0 : index
    %297 = vector.load %arg7[%296, %c0_106] : memref<10x16xf32, #tpu.memory_space<vmem>>, vector<1x16xf32>
    %c94 = arith.constant 94 : index
    %298 = memref.load %arg1[%c94] : memref<96xi32, #tpu.memory_space<smem>>
    %299 = arith.index_cast %298 : i32 to index
    %c0_107 = arith.constant 0 : index
    %300 = vector.load %arg7[%299, %c0_107] : memref<10x16xf32, #tpu.memory_space<vmem>>, vector<1x16xf32>
    %c87 = arith.constant 87 : index
    %301 = memref.load %arg1[%c87] : memref<96xi32, #tpu.memory_space<smem>>
    %302 = arith.index_cast %301 : i32 to index
    %c0_108 = arith.constant 0 : index
    %303 = vector.load %arg7[%302, %c0_108] : memref<10x16xf32, #tpu.memory_space<vmem>>, vector<1x16xf32>
    %c95 = arith.constant 95 : index
    %304 = memref.load %arg1[%c95] : memref<96xi32, #tpu.memory_space<smem>>
    %305 = arith.index_cast %304 : i32 to index
    %c0_109 = arith.constant 0 : index
    %306 = vector.load %arg7[%305, %c0_109] : memref<10x16xf32, #tpu.memory_space<vmem>>, vector<1x16xf32>
    %307 = tpu.concatenate %261, %264, %267, %270, %273, %276, %279, %282, %285, %288, %291, %294, %297, %300, %303, %306 in 0 : vector<1x16xf32>, vector<1x16xf32>, vector<1x16xf32>, vector<1x16xf32>, vector<1x16xf32>, vector<1x16xf32>, vector<1x16xf32>, vector<1x16xf32>, vector<1x16xf32>, vector<1x16xf32>, vector<1x16xf32>, vector<1x16xf32>, vector<1x16xf32>, vector<1x16xf32>, vector<1x16xf32>, vector<1x16xf32> -> vector<16x16xf32>
    %c80_110 = arith.constant 80 : index
    %c0_111 = arith.constant 0 : index
    %308 = vector.load %arg10[%c80_110, %c0_111] : memref<96x16xf32, #tpu.memory_space<vmem>>, vector<16x16xf32>
    %cst_112 = arith.constant dense<0.000000e+00> : vector<16x16xf32>
    %309 = tpu.matmul %307, %308, %cst_112 {dimension_numbers = #tpu.dot_dimension_numbers<[1], [0], [0], [1], [0, 0, 1, 1], [], []>} : vector<16x16xf32>, vector<16x16xf32>, vector<16x16xf32> -> vector<16x16xf32>
    %310 = arith.addf %258, %309 : vector<16x16xf32>
    %c0_113 = arith.constant 0 : index
    %c0_114 = arith.constant 0 : index
    %311 = vector.load %arg11[%c0_113, %c0_114] : memref<1x16xf32, #tpu.memory_space<vmem>>, vector<1x16xf32>
    %312 = vector.broadcast %311 : vector<1x16xf32> to vector<16x16xf32>
    %313 = arith.addf %310, %312 : vector<16x16xf32>
    %c0_115 = arith.constant 0 : index
    %c0_116 = arith.constant 0 : index
    %314 = vector.load %arg12[%c0_115, %c0_116] : memref<2x16xf32, #tpu.memory_space<vmem>>, vector<1x16xf32>
    %c1_117 = arith.constant 1 : index
    %c0_118 = arith.constant 0 : index
    %315 = vector.load %arg12[%c1_117, %c0_118] : memref<2x16xf32, #tpu.memory_space<vmem>>, vector<1x16xf32>
    %cst_119 = arith.constant dense<0.000000e+00> : vector<16xf32>
    %316 = vector.multi_reduction <add>, %313, %cst_119 [1] : vector<16x16xf32> to vector<16xf32>
    %317 = vector.shape_cast %316 : vector<16xf32> to vector<16x1xf32>
    %cst_120 = arith.constant 1.600000e+01 : f32
    %318 = vector.broadcast %cst_120 : f32 to vector<16x1xf32>
    %319 = arith.divf %317, %318 : vector<16x1xf32>
    %320 = vector.broadcast %319 : vector<16x1xf32> to vector<16x16xf32>
    %321 = arith.subf %313, %320 : vector<16x16xf32>
    %322 = arith.mulf %321, %321 : vector<16x16xf32>
    %cst_121 = arith.constant dense<0.000000e+00> : vector<16xf32>
    %323 = vector.multi_reduction <add>, %322, %cst_121 [1] : vector<16x16xf32> to vector<16xf32>
    %324 = vector.shape_cast %323 : vector<16xf32> to vector<16x1xf32>
    %cst_122 = arith.constant 1.600000e+01 : f32
    %325 = vector.broadcast %cst_122 : f32 to vector<16x1xf32>
    %326 = arith.divf %324, %325 : vector<16x1xf32>
    %327 = vector.broadcast %319 : vector<16x1xf32> to vector<16x16xf32>
    %328 = arith.subf %313, %327 : vector<16x16xf32>
    %cst_123 = arith.constant 9.99999997E-7 : f32
    %329 = vector.broadcast %cst_123 : f32 to vector<16x1xf32>
    %330 = arith.addf %326, %329 : vector<16x1xf32>
    %331 = math.rsqrt %330 : vector<16x1xf32>
    %332 = vector.broadcast %331 : vector<16x1xf32> to vector<16x16xf32>
    %333 = arith.mulf %328, %332 : vector<16x16xf32>
    %334 = vector.broadcast %314 : vector<1x16xf32> to vector<16x16xf32>
    %335 = arith.mulf %333, %334 : vector<16x16xf32>
    %336 = vector.broadcast %315 : vector<1x16xf32> to vector<16x16xf32>
    %337 = arith.addf %335, %336 : vector<16x16xf32>
    %c0_124 = arith.constant 0 : index
    %c0_125 = arith.constant 0 : index
    %338 = vector.load %arg8[%c0_124, %c0_125] : memref<16x3xf32, #tpu.memory_space<vmem>>, vector<16x3xf32>
    %c0_126 = arith.constant 0 : index
    %c0_127 = arith.constant 0 : index
    %339 = vector.load %arg13[%c0_126, %c0_127] : memref<3x16xf32, #tpu.memory_space<vmem>>, vector<3x16xf32>
    %cst_128 = arith.constant dense<0.000000e+00> : vector<16x16xf32>
    %340 = tpu.matmul %338, %339, %cst_128 {dimension_numbers = #tpu.dot_dimension_numbers<[1], [0], [0], [1], [0, 0, 1, 1], [], []>} : vector<16x3xf32>, vector<3x16xf32>, vector<16x16xf32> -> vector<16x16xf32>
    %c0_129 = arith.constant 0 : index
    %c0_130 = arith.constant 0 : index
    %341 = vector.load %arg14[%c0_129, %c0_130] : memref<1x16xf32, #tpu.memory_space<vmem>>, vector<1x16xf32>
    %342 = vector.broadcast %341 : vector<1x16xf32> to vector<16x16xf32>
    %343 = arith.addf %340, %342 : vector<16x16xf32>
    %c0_131 = arith.constant 0 : index
    %c0_132 = arith.constant 0 : index
    %344 = vector.load %arg15[%c0_131, %c0_132] : memref<2x16xf32, #tpu.memory_space<vmem>>, vector<1x16xf32>
    %c1_133 = arith.constant 1 : index
    %c0_134 = arith.constant 0 : index
    %345 = vector.load %arg15[%c1_133, %c0_134] : memref<2x16xf32, #tpu.memory_space<vmem>>, vector<1x16xf32>
    %cst_135 = arith.constant dense<0.000000e+00> : vector<16xf32>
    %346 = vector.multi_reduction <add>, %343, %cst_135 [1] : vector<16x16xf32> to vector<16xf32>
    %347 = vector.shape_cast %346 : vector<16xf32> to vector<16x1xf32>
    %cst_136 = arith.constant 1.600000e+01 : f32
    %348 = vector.broadcast %cst_136 : f32 to vector<16x1xf32>
    %349 = arith.divf %347, %348 : vector<16x1xf32>
    %350 = vector.broadcast %349 : vector<16x1xf32> to vector<16x16xf32>
    %351 = arith.subf %343, %350 : vector<16x16xf32>
    %352 = arith.mulf %351, %351 : vector<16x16xf32>
    %cst_137 = arith.constant dense<0.000000e+00> : vector<16xf32>
    %353 = vector.multi_reduction <add>, %352, %cst_137 [1] : vector<16x16xf32> to vector<16xf32>
    %354 = vector.shape_cast %353 : vector<16xf32> to vector<16x1xf32>
    %cst_138 = arith.constant 1.600000e+01 : f32
    %355 = vector.broadcast %cst_138 : f32 to vector<16x1xf32>
    %356 = arith.divf %354, %355 : vector<16x1xf32>
    %357 = vector.broadcast %349 : vector<16x1xf32> to vector<16x16xf32>
    %358 = arith.subf %343, %357 : vector<16x16xf32>
    %cst_139 = arith.constant 9.99999997E-7 : f32
    %359 = vector.broadcast %cst_139 : f32 to vector<16x1xf32>
    %360 = arith.addf %356, %359 : vector<16x1xf32>
    %361 = math.rsqrt %360 : vector<16x1xf32>
    %362 = vector.broadcast %361 : vector<16x1xf32> to vector<16x16xf32>
    %363 = arith.mulf %358, %362 : vector<16x16xf32>
    %364 = vector.broadcast %344 : vector<1x16xf32> to vector<16x16xf32>
    %365 = arith.mulf %363, %364 : vector<16x16xf32>
    %366 = vector.broadcast %345 : vector<1x16xf32> to vector<16x16xf32>
    %367 = arith.addf %365, %366 : vector<16x16xf32>
    %c0_140 = arith.constant 0 : index
    %c0_141 = arith.constant 0 : index
    %368 = vector.load %arg16[%c0_140, %c0_141] : memref<32x128xf32, #tpu.memory_space<vmem>>, vector<16x128xf32>
    %cst_142 = arith.constant dense<0.000000e+00> : vector<16x128xf32>
    %369 = tpu.matmul %337, %368, %cst_142 {dimension_numbers = #tpu.dot_dimension_numbers<[1], [0], [0], [1], [0, 0, 1, 1], [], []>} : vector<16x16xf32>, vector<16x128xf32>, vector<16x128xf32> -> vector<16x128xf32>
    %c16_143 = arith.constant 16 : index
    %c0_144 = arith.constant 0 : index
    %370 = vector.load %arg16[%c16_143, %c0_144] : memref<32x128xf32, #tpu.memory_space<vmem>>, vector<16x128xf32>
    %cst_145 = arith.constant dense<0.000000e+00> : vector<16x128xf32>
    %371 = tpu.matmul %367, %370, %cst_145 {dimension_numbers = #tpu.dot_dimension_numbers<[1], [0], [0], [1], [0, 0, 1, 1], [], []>} : vector<16x16xf32>, vector<16x128xf32>, vector<16x128xf32> -> vector<16x128xf32>
    %372 = arith.addf %369, %371 : vector<16x128xf32>
    %c0_146 = arith.constant 0 : index
    %c0_147 = arith.constant 0 : index
    %373 = vector.load %arg17[%c0_146, %c0_147] : memref<1x128xf32, #tpu.memory_space<vmem>>, vector<1x128xf32>
    %374 = vector.broadcast %373 : vector<1x128xf32> to vector<16x128xf32>
    %375 = arith.addf %372, %374 : vector<16x128xf32>
    %c0_148 = arith.constant 0 : index
    %c0_149 = arith.constant 0 : index
    %376 = vector.load %arg18[%c0_148, %c0_149] : memref<64x256xf32, #tpu.memory_space<vmem>>, vector<64x256xf32>
    %c0_150 = arith.constant 0 : index
    %c0_151 = arith.constant 0 : index
    %377 = vector.load %arg19[%c0_150, %c0_151] : memref<1x128xf32, #tpu.memory_space<vmem>>, vector<1x128xf32>
    %cst_152 = arith.constant 0.000000e+00 : f32
    %378 = vector.broadcast %cst_152 : f32 to vector<2x32xf32>
    %cst_153 = arith.constant 0.000000e+00 : f32
    %379 = vector.broadcast %cst_153 : f32 to vector<2x32xf32>
    %cst_154 = arith.constant 0.000000e+00 : f32
    %380 = vector.broadcast %cst_154 : f32 to vector<2x32xf32>
    %381 = vector.extract_strided_slice %375 {offsets = [0, 0], sizes = [2, 128], strides = [1, 1]} : vector<16x128xf32> to vector<2x128xf32>
    %382 = vector.extract_strided_slice %381 {offsets = [0, 0], sizes = [2, 96], strides = [1, 1]} : vector<2x128xf32> to vector<2x96xf32>
    %383 = arith.negf %382 : vector<2x96xf32>
    %384 = math.exp %383 : vector<2x96xf32>
    %cst_155 = arith.constant 1.000000e+00 : f32
    %385 = vector.broadcast %cst_155 : f32 to vector<2x96xf32>
    %386 = arith.addf %385, %384 : vector<2x96xf32>
    %387 = arith.divf %385, %386 : vector<2x96xf32>
    %388 = vector.extract_strided_slice %381 {offsets = [0, 96], sizes = [2, 32], strides = [1, 1]} : vector<2x128xf32> to vector<2x32xf32>
    %389 = math.tanh %388 : vector<2x32xf32>
    %390 = vector.extract_strided_slice %387 {offsets = [0, 32], sizes = [2, 32], strides = [1, 1]} : vector<2x96xf32> to vector<2x32xf32>
    %391 = arith.mulf %390, %379 : vector<2x32xf32>
    %392 = vector.extract_strided_slice %387 {offsets = [0, 0], sizes = [2, 32], strides = [1, 1]} : vector<2x96xf32> to vector<2x32xf32>
    %393 = arith.mulf %392, %389 : vector<2x32xf32>
    %394 = arith.addf %391, %393 : vector<2x32xf32>
    %395 = vector.extract_strided_slice %387 {offsets = [0, 64], sizes = [2, 32], strides = [1, 1]} : vector<2x96xf32> to vector<2x32xf32>
    %396 = math.tanh %394 : vector<2x32xf32>
    %397 = arith.mulf %395, %396 : vector<2x32xf32>
    %398 = tpu.concatenate %397, %378 in 1 : vector<2x32xf32>, vector<2x32xf32> -> vector<2x64xf32>
    %cst_156 = arith.constant dense<0.000000e+00> : vector<2x256xf32>
    %399 = tpu.matmul %398, %376, %cst_156 {dimension_numbers = #tpu.dot_dimension_numbers<[1], [0], [0], [1], [0, 0, 1, 1], [], []>} : vector<2x64xf32>, vector<64x256xf32>, vector<2x256xf32> -> vector<2x256xf32>
    %400 = vector.extract_strided_slice %399 {offsets = [0, 128], sizes = [2, 128], strides = [1, 1]} : vector<2x256xf32> to vector<2x128xf32>
    %401 = vector.broadcast %377 : vector<1x128xf32> to vector<2x128xf32>
    %402 = arith.addf %400, %401 : vector<2x128xf32>
    %403 = vector.extract_strided_slice %402 {offsets = [0, 0], sizes = [2, 96], strides = [1, 1]} : vector<2x128xf32> to vector<2x96xf32>
    %404 = arith.negf %403 : vector<2x96xf32>
    %405 = math.exp %404 : vector<2x96xf32>
    %cst_157 = arith.constant 1.000000e+00 : f32
    %406 = vector.broadcast %cst_157 : f32 to vector<2x96xf32>
    %407 = arith.addf %406, %405 : vector<2x96xf32>
    %408 = arith.divf %406, %407 : vector<2x96xf32>
    %409 = vector.extract_strided_slice %402 {offsets = [0, 96], sizes = [2, 32], strides = [1, 1]} : vector<2x128xf32> to vector<2x32xf32>
    %410 = math.tanh %409 : vector<2x32xf32>
    %411 = vector.extract_strided_slice %408 {offsets = [0, 32], sizes = [2, 32], strides = [1, 1]} : vector<2x96xf32> to vector<2x32xf32>
    %412 = arith.mulf %411, %380 : vector<2x32xf32>
    %413 = vector.extract_strided_slice %408 {offsets = [0, 0], sizes = [2, 32], strides = [1, 1]} : vector<2x96xf32> to vector<2x32xf32>
    %414 = arith.mulf %413, %410 : vector<2x32xf32>
    %415 = arith.addf %412, %414 : vector<2x32xf32>
    %416 = vector.extract_strided_slice %408 {offsets = [0, 64], sizes = [2, 32], strides = [1, 1]} : vector<2x96xf32> to vector<2x32xf32>
    %417 = math.tanh %415 : vector<2x32xf32>
    %418 = arith.mulf %416, %417 : vector<2x32xf32>
    %419 = vector.extract_strided_slice %375 {offsets = [2, 0], sizes = [2, 128], strides = [1, 1]} : vector<16x128xf32> to vector<2x128xf32>
    %420 = vector.extract_strided_slice %399 {offsets = [0, 0], sizes = [2, 128], strides = [1, 1]} : vector<2x256xf32> to vector<2x128xf32>
    %421 = arith.addf %419, %420 : vector<2x128xf32>
    %422 = vector.extract_strided_slice %421 {offsets = [0, 0], sizes = [2, 96], strides = [1, 1]} : vector<2x128xf32> to vector<2x96xf32>
    %423 = arith.negf %422 : vector<2x96xf32>
    %424 = math.exp %423 : vector<2x96xf32>
    %cst_158 = arith.constant 1.000000e+00 : f32
    %425 = vector.broadcast %cst_158 : f32 to vector<2x96xf32>
    %426 = arith.addf %425, %424 : vector<2x96xf32>
    %427 = arith.divf %425, %426 : vector<2x96xf32>
    %428 = vector.extract_strided_slice %421 {offsets = [0, 96], sizes = [2, 32], strides = [1, 1]} : vector<2x128xf32> to vector<2x32xf32>
    %429 = math.tanh %428 : vector<2x32xf32>
    %430 = vector.extract_strided_slice %427 {offsets = [0, 32], sizes = [2, 32], strides = [1, 1]} : vector<2x96xf32> to vector<2x32xf32>
    %431 = arith.mulf %430, %394 : vector<2x32xf32>
    %432 = vector.extract_strided_slice %427 {offsets = [0, 0], sizes = [2, 32], strides = [1, 1]} : vector<2x96xf32> to vector<2x32xf32>
    %433 = arith.mulf %432, %429 : vector<2x32xf32>
    %434 = arith.addf %431, %433 : vector<2x32xf32>
    %435 = vector.extract_strided_slice %427 {offsets = [0, 64], sizes = [2, 32], strides = [1, 1]} : vector<2x96xf32> to vector<2x32xf32>
    %436 = math.tanh %434 : vector<2x32xf32>
    %437 = arith.mulf %435, %436 : vector<2x32xf32>
    %438 = tpu.concatenate %437, %418 in 1 : vector<2x32xf32>, vector<2x32xf32> -> vector<2x64xf32>
    %cst_159 = arith.constant dense<0.000000e+00> : vector<2x256xf32>
    %439 = tpu.matmul %438, %376, %cst_159 {dimension_numbers = #tpu.dot_dimension_numbers<[1], [0], [0], [1], [0, 0, 1, 1], [], []>} : vector<2x64xf32>, vector<64x256xf32>, vector<2x256xf32> -> vector<2x256xf32>
    %440 = vector.extract_strided_slice %439 {offsets = [0, 128], sizes = [2, 128], strides = [1, 1]} : vector<2x256xf32> to vector<2x128xf32>
    %441 = vector.broadcast %377 : vector<1x128xf32> to vector<2x128xf32>
    %442 = arith.addf %440, %441 : vector<2x128xf32>
    %443 = vector.extract_strided_slice %442 {offsets = [0, 0], sizes = [2, 96], strides = [1, 1]} : vector<2x128xf32> to vector<2x96xf32>
    %444 = arith.negf %443 : vector<2x96xf32>
    %445 = math.exp %444 : vector<2x96xf32>
    %cst_160 = arith.constant 1.000000e+00 : f32
    %446 = vector.broadcast %cst_160 : f32 to vector<2x96xf32>
    %447 = arith.addf %446, %445 : vector<2x96xf32>
    %448 = arith.divf %446, %447 : vector<2x96xf32>
    %449 = vector.extract_strided_slice %442 {offsets = [0, 96], sizes = [2, 32], strides = [1, 1]} : vector<2x128xf32> to vector<2x32xf32>
    %450 = math.tanh %449 : vector<2x32xf32>
    %451 = vector.extract_strided_slice %448 {offsets = [0, 32], sizes = [2, 32], strides = [1, 1]} : vector<2x96xf32> to vector<2x32xf32>
    %452 = arith.mulf %451, %415 : vector<2x32xf32>
    %453 = vector.extract_strided_slice %448 {offsets = [0, 0], sizes = [2, 32], strides = [1, 1]} : vector<2x96xf32> to vector<2x32xf32>
    %454 = arith.mulf %453, %450 : vector<2x32xf32>
    %455 = arith.addf %452, %454 : vector<2x32xf32>
    %456 = vector.extract_strided_slice %448 {offsets = [0, 64], sizes = [2, 32], strides = [1, 1]} : vector<2x96xf32> to vector<2x32xf32>
    %457 = math.tanh %455 : vector<2x32xf32>
    %458 = arith.mulf %456, %457 : vector<2x32xf32>
    %459 = vector.extract_strided_slice %375 {offsets = [4, 0], sizes = [2, 128], strides = [1, 1]} : vector<16x128xf32> to vector<2x128xf32>
    %460 = vector.extract_strided_slice %439 {offsets = [0, 0], sizes = [2, 128], strides = [1, 1]} : vector<2x256xf32> to vector<2x128xf32>
    %461 = arith.addf %459, %460 : vector<2x128xf32>
    %462 = vector.extract_strided_slice %461 {offsets = [0, 0], sizes = [2, 96], strides = [1, 1]} : vector<2x128xf32> to vector<2x96xf32>
    %463 = arith.negf %462 : vector<2x96xf32>
    %464 = math.exp %463 : vector<2x96xf32>
    %cst_161 = arith.constant 1.000000e+00 : f32
    %465 = vector.broadcast %cst_161 : f32 to vector<2x96xf32>
    %466 = arith.addf %465, %464 : vector<2x96xf32>
    %467 = arith.divf %465, %466 : vector<2x96xf32>
    %468 = vector.extract_strided_slice %461 {offsets = [0, 96], sizes = [2, 32], strides = [1, 1]} : vector<2x128xf32> to vector<2x32xf32>
    %469 = math.tanh %468 : vector<2x32xf32>
    %470 = vector.extract_strided_slice %467 {offsets = [0, 32], sizes = [2, 32], strides = [1, 1]} : vector<2x96xf32> to vector<2x32xf32>
    %471 = arith.mulf %470, %434 : vector<2x32xf32>
    %472 = vector.extract_strided_slice %467 {offsets = [0, 0], sizes = [2, 32], strides = [1, 1]} : vector<2x96xf32> to vector<2x32xf32>
    %473 = arith.mulf %472, %469 : vector<2x32xf32>
    %474 = arith.addf %471, %473 : vector<2x32xf32>
    %475 = vector.extract_strided_slice %467 {offsets = [0, 64], sizes = [2, 32], strides = [1, 1]} : vector<2x96xf32> to vector<2x32xf32>
    %476 = math.tanh %474 : vector<2x32xf32>
    %477 = arith.mulf %475, %476 : vector<2x32xf32>
    %478 = tpu.concatenate %477, %458 in 1 : vector<2x32xf32>, vector<2x32xf32> -> vector<2x64xf32>
    %cst_162 = arith.constant dense<0.000000e+00> : vector<2x256xf32>
    %479 = tpu.matmul %478, %376, %cst_162 {dimension_numbers = #tpu.dot_dimension_numbers<[1], [0], [0], [1], [0, 0, 1, 1], [], []>} : vector<2x64xf32>, vector<64x256xf32>, vector<2x256xf32> -> vector<2x256xf32>
    %480 = vector.extract_strided_slice %479 {offsets = [0, 128], sizes = [2, 128], strides = [1, 1]} : vector<2x256xf32> to vector<2x128xf32>
    %481 = vector.broadcast %377 : vector<1x128xf32> to vector<2x128xf32>
    %482 = arith.addf %480, %481 : vector<2x128xf32>
    %483 = vector.extract_strided_slice %482 {offsets = [0, 0], sizes = [2, 96], strides = [1, 1]} : vector<2x128xf32> to vector<2x96xf32>
    %484 = arith.negf %483 : vector<2x96xf32>
    %485 = math.exp %484 : vector<2x96xf32>
    %cst_163 = arith.constant 1.000000e+00 : f32
    %486 = vector.broadcast %cst_163 : f32 to vector<2x96xf32>
    %487 = arith.addf %486, %485 : vector<2x96xf32>
    %488 = arith.divf %486, %487 : vector<2x96xf32>
    %489 = vector.extract_strided_slice %482 {offsets = [0, 96], sizes = [2, 32], strides = [1, 1]} : vector<2x128xf32> to vector<2x32xf32>
    %490 = math.tanh %489 : vector<2x32xf32>
    %491 = vector.extract_strided_slice %488 {offsets = [0, 32], sizes = [2, 32], strides = [1, 1]} : vector<2x96xf32> to vector<2x32xf32>
    %492 = arith.mulf %491, %455 : vector<2x32xf32>
    %493 = vector.extract_strided_slice %488 {offsets = [0, 0], sizes = [2, 32], strides = [1, 1]} : vector<2x96xf32> to vector<2x32xf32>
    %494 = arith.mulf %493, %490 : vector<2x32xf32>
    %495 = arith.addf %492, %494 : vector<2x32xf32>
    %496 = vector.extract_strided_slice %488 {offsets = [0, 64], sizes = [2, 32], strides = [1, 1]} : vector<2x96xf32> to vector<2x32xf32>
    %497 = math.tanh %495 : vector<2x32xf32>
    %498 = arith.mulf %496, %497 : vector<2x32xf32>
    %499 = vector.extract_strided_slice %375 {offsets = [6, 0], sizes = [2, 128], strides = [1, 1]} : vector<16x128xf32> to vector<2x128xf32>
    %500 = vector.extract_strided_slice %479 {offsets = [0, 0], sizes = [2, 128], strides = [1, 1]} : vector<2x256xf32> to vector<2x128xf32>
    %501 = arith.addf %499, %500 : vector<2x128xf32>
    %502 = vector.extract_strided_slice %501 {offsets = [0, 0], sizes = [2, 96], strides = [1, 1]} : vector<2x128xf32> to vector<2x96xf32>
    %503 = arith.negf %502 : vector<2x96xf32>
    %504 = math.exp %503 : vector<2x96xf32>
    %cst_164 = arith.constant 1.000000e+00 : f32
    %505 = vector.broadcast %cst_164 : f32 to vector<2x96xf32>
    %506 = arith.addf %505, %504 : vector<2x96xf32>
    %507 = arith.divf %505, %506 : vector<2x96xf32>
    %508 = vector.extract_strided_slice %501 {offsets = [0, 96], sizes = [2, 32], strides = [1, 1]} : vector<2x128xf32> to vector<2x32xf32>
    %509 = math.tanh %508 : vector<2x32xf32>
    %510 = vector.extract_strided_slice %507 {offsets = [0, 32], sizes = [2, 32], strides = [1, 1]} : vector<2x96xf32> to vector<2x32xf32>
    %511 = arith.mulf %510, %474 : vector<2x32xf32>
    %512 = vector.extract_strided_slice %507 {offsets = [0, 0], sizes = [2, 32], strides = [1, 1]} : vector<2x96xf32> to vector<2x32xf32>
    %513 = arith.mulf %512, %509 : vector<2x32xf32>
    %514 = arith.addf %511, %513 : vector<2x32xf32>
    %515 = vector.extract_strided_slice %507 {offsets = [0, 64], sizes = [2, 32], strides = [1, 1]} : vector<2x96xf32> to vector<2x32xf32>
    %516 = math.tanh %514 : vector<2x32xf32>
    %517 = arith.mulf %515, %516 : vector<2x32xf32>
    %518 = tpu.concatenate %517, %498 in 1 : vector<2x32xf32>, vector<2x32xf32> -> vector<2x64xf32>
    %cst_165 = arith.constant dense<0.000000e+00> : vector<2x256xf32>
    %519 = tpu.matmul %518, %376, %cst_165 {dimension_numbers = #tpu.dot_dimension_numbers<[1], [0], [0], [1], [0, 0, 1, 1], [], []>} : vector<2x64xf32>, vector<64x256xf32>, vector<2x256xf32> -> vector<2x256xf32>
    %520 = vector.extract_strided_slice %519 {offsets = [0, 128], sizes = [2, 128], strides = [1, 1]} : vector<2x256xf32> to vector<2x128xf32>
    %521 = vector.broadcast %377 : vector<1x128xf32> to vector<2x128xf32>
    %522 = arith.addf %520, %521 : vector<2x128xf32>
    %523 = vector.extract_strided_slice %522 {offsets = [0, 0], sizes = [2, 96], strides = [1, 1]} : vector<2x128xf32> to vector<2x96xf32>
    %524 = arith.negf %523 : vector<2x96xf32>
    %525 = math.exp %524 : vector<2x96xf32>
    %cst_166 = arith.constant 1.000000e+00 : f32
    %526 = vector.broadcast %cst_166 : f32 to vector<2x96xf32>
    %527 = arith.addf %526, %525 : vector<2x96xf32>
    %528 = arith.divf %526, %527 : vector<2x96xf32>
    %529 = vector.extract_strided_slice %522 {offsets = [0, 96], sizes = [2, 32], strides = [1, 1]} : vector<2x128xf32> to vector<2x32xf32>
    %530 = math.tanh %529 : vector<2x32xf32>
    %531 = vector.extract_strided_slice %528 {offsets = [0, 32], sizes = [2, 32], strides = [1, 1]} : vector<2x96xf32> to vector<2x32xf32>
    %532 = arith.mulf %531, %495 : vector<2x32xf32>
    %533 = vector.extract_strided_slice %528 {offsets = [0, 0], sizes = [2, 32], strides = [1, 1]} : vector<2x96xf32> to vector<2x32xf32>
    %534 = arith.mulf %533, %530 : vector<2x32xf32>
    %535 = arith.addf %532, %534 : vector<2x32xf32>
    %536 = vector.extract_strided_slice %528 {offsets = [0, 64], sizes = [2, 32], strides = [1, 1]} : vector<2x96xf32> to vector<2x32xf32>
    %537 = math.tanh %535 : vector<2x32xf32>
    %538 = arith.mulf %536, %537 : vector<2x32xf32>
    %539 = vector.extract_strided_slice %375 {offsets = [8, 0], sizes = [2, 128], strides = [1, 1]} : vector<16x128xf32> to vector<2x128xf32>
    %540 = vector.extract_strided_slice %519 {offsets = [0, 0], sizes = [2, 128], strides = [1, 1]} : vector<2x256xf32> to vector<2x128xf32>
    %541 = arith.addf %539, %540 : vector<2x128xf32>
    %542 = vector.extract_strided_slice %541 {offsets = [0, 0], sizes = [2, 96], strides = [1, 1]} : vector<2x128xf32> to vector<2x96xf32>
    %543 = arith.negf %542 : vector<2x96xf32>
    %544 = math.exp %543 : vector<2x96xf32>
    %cst_167 = arith.constant 1.000000e+00 : f32
    %545 = vector.broadcast %cst_167 : f32 to vector<2x96xf32>
    %546 = arith.addf %545, %544 : vector<2x96xf32>
    %547 = arith.divf %545, %546 : vector<2x96xf32>
    %548 = vector.extract_strided_slice %541 {offsets = [0, 96], sizes = [2, 32], strides = [1, 1]} : vector<2x128xf32> to vector<2x32xf32>
    %549 = math.tanh %548 : vector<2x32xf32>
    %550 = vector.extract_strided_slice %547 {offsets = [0, 32], sizes = [2, 32], strides = [1, 1]} : vector<2x96xf32> to vector<2x32xf32>
    %551 = arith.mulf %550, %514 : vector<2x32xf32>
    %552 = vector.extract_strided_slice %547 {offsets = [0, 0], sizes = [2, 32], strides = [1, 1]} : vector<2x96xf32> to vector<2x32xf32>
    %553 = arith.mulf %552, %549 : vector<2x32xf32>
    %554 = arith.addf %551, %553 : vector<2x32xf32>
    %555 = vector.extract_strided_slice %547 {offsets = [0, 64], sizes = [2, 32], strides = [1, 1]} : vector<2x96xf32> to vector<2x32xf32>
    %556 = math.tanh %554 : vector<2x32xf32>
    %557 = arith.mulf %555, %556 : vector<2x32xf32>
    %558 = tpu.concatenate %557, %538 in 1 : vector<2x32xf32>, vector<2x32xf32> -> vector<2x64xf32>
    %cst_168 = arith.constant dense<0.000000e+00> : vector<2x256xf32>
    %559 = tpu.matmul %558, %376, %cst_168 {dimension_numbers = #tpu.dot_dimension_numbers<[1], [0], [0], [1], [0, 0, 1, 1], [], []>} : vector<2x64xf32>, vector<64x256xf32>, vector<2x256xf32> -> vector<2x256xf32>
    %560 = vector.extract_strided_slice %559 {offsets = [0, 128], sizes = [2, 128], strides = [1, 1]} : vector<2x256xf32> to vector<2x128xf32>
    %561 = vector.broadcast %377 : vector<1x128xf32> to vector<2x128xf32>
    %562 = arith.addf %560, %561 : vector<2x128xf32>
    %563 = vector.extract_strided_slice %562 {offsets = [0, 0], sizes = [2, 96], strides = [1, 1]} : vector<2x128xf32> to vector<2x96xf32>
    %564 = arith.negf %563 : vector<2x96xf32>
    %565 = math.exp %564 : vector<2x96xf32>
    %cst_169 = arith.constant 1.000000e+00 : f32
    %566 = vector.broadcast %cst_169 : f32 to vector<2x96xf32>
    %567 = arith.addf %566, %565 : vector<2x96xf32>
    %568 = arith.divf %566, %567 : vector<2x96xf32>
    %569 = vector.extract_strided_slice %562 {offsets = [0, 96], sizes = [2, 32], strides = [1, 1]} : vector<2x128xf32> to vector<2x32xf32>
    %570 = math.tanh %569 : vector<2x32xf32>
    %571 = vector.extract_strided_slice %568 {offsets = [0, 32], sizes = [2, 32], strides = [1, 1]} : vector<2x96xf32> to vector<2x32xf32>
    %572 = arith.mulf %571, %535 : vector<2x32xf32>
    %573 = vector.extract_strided_slice %568 {offsets = [0, 0], sizes = [2, 32], strides = [1, 1]} : vector<2x96xf32> to vector<2x32xf32>
    %574 = arith.mulf %573, %570 : vector<2x32xf32>
    %575 = arith.addf %572, %574 : vector<2x32xf32>
    %576 = vector.extract_strided_slice %568 {offsets = [0, 64], sizes = [2, 32], strides = [1, 1]} : vector<2x96xf32> to vector<2x32xf32>
    %577 = math.tanh %575 : vector<2x32xf32>
    %578 = arith.mulf %576, %577 : vector<2x32xf32>
    %579 = vector.extract_strided_slice %375 {offsets = [10, 0], sizes = [2, 128], strides = [1, 1]} : vector<16x128xf32> to vector<2x128xf32>
    %580 = vector.extract_strided_slice %559 {offsets = [0, 0], sizes = [2, 128], strides = [1, 1]} : vector<2x256xf32> to vector<2x128xf32>
    %581 = arith.addf %579, %580 : vector<2x128xf32>
    %582 = vector.extract_strided_slice %581 {offsets = [0, 0], sizes = [2, 96], strides = [1, 1]} : vector<2x128xf32> to vector<2x96xf32>
    %583 = arith.negf %582 : vector<2x96xf32>
    %584 = math.exp %583 : vector<2x96xf32>
    %cst_170 = arith.constant 1.000000e+00 : f32
    %585 = vector.broadcast %cst_170 : f32 to vector<2x96xf32>
    %586 = arith.addf %585, %584 : vector<2x96xf32>
    %587 = arith.divf %585, %586 : vector<2x96xf32>
    %588 = vector.extract_strided_slice %581 {offsets = [0, 96], sizes = [2, 32], strides = [1, 1]} : vector<2x128xf32> to vector<2x32xf32>
    %589 = math.tanh %588 : vector<2x32xf32>
    %590 = vector.extract_strided_slice %587 {offsets = [0, 32], sizes = [2, 32], strides = [1, 1]} : vector<2x96xf32> to vector<2x32xf32>
    %591 = arith.mulf %590, %554 : vector<2x32xf32>
    %592 = vector.extract_strided_slice %587 {offsets = [0, 0], sizes = [2, 32], strides = [1, 1]} : vector<2x96xf32> to vector<2x32xf32>
    %593 = arith.mulf %592, %589 : vector<2x32xf32>
    %594 = arith.addf %591, %593 : vector<2x32xf32>
    %595 = vector.extract_strided_slice %587 {offsets = [0, 64], sizes = [2, 32], strides = [1, 1]} : vector<2x96xf32> to vector<2x32xf32>
    %596 = math.tanh %594 : vector<2x32xf32>
    %597 = arith.mulf %595, %596 : vector<2x32xf32>
    %598 = tpu.concatenate %597, %578 in 1 : vector<2x32xf32>, vector<2x32xf32> -> vector<2x64xf32>
    %cst_171 = arith.constant dense<0.000000e+00> : vector<2x256xf32>
    %599 = tpu.matmul %598, %376, %cst_171 {dimension_numbers = #tpu.dot_dimension_numbers<[1], [0], [0], [1], [0, 0, 1, 1], [], []>} : vector<2x64xf32>, vector<64x256xf32>, vector<2x256xf32> -> vector<2x256xf32>
    %600 = vector.extract_strided_slice %599 {offsets = [0, 128], sizes = [2, 128], strides = [1, 1]} : vector<2x256xf32> to vector<2x128xf32>
    %601 = vector.broadcast %377 : vector<1x128xf32> to vector<2x128xf32>
    %602 = arith.addf %600, %601 : vector<2x128xf32>
    %603 = vector.extract_strided_slice %602 {offsets = [0, 0], sizes = [2, 96], strides = [1, 1]} : vector<2x128xf32> to vector<2x96xf32>
    %604 = arith.negf %603 : vector<2x96xf32>
    %605 = math.exp %604 : vector<2x96xf32>
    %cst_172 = arith.constant 1.000000e+00 : f32
    %606 = vector.broadcast %cst_172 : f32 to vector<2x96xf32>
    %607 = arith.addf %606, %605 : vector<2x96xf32>
    %608 = arith.divf %606, %607 : vector<2x96xf32>
    %609 = vector.extract_strided_slice %602 {offsets = [0, 96], sizes = [2, 32], strides = [1, 1]} : vector<2x128xf32> to vector<2x32xf32>
    %610 = math.tanh %609 : vector<2x32xf32>
    %611 = vector.extract_strided_slice %608 {offsets = [0, 32], sizes = [2, 32], strides = [1, 1]} : vector<2x96xf32> to vector<2x32xf32>
    %612 = arith.mulf %611, %575 : vector<2x32xf32>
    %613 = vector.extract_strided_slice %608 {offsets = [0, 0], sizes = [2, 32], strides = [1, 1]} : vector<2x96xf32> to vector<2x32xf32>
    %614 = arith.mulf %613, %610 : vector<2x32xf32>
    %615 = arith.addf %612, %614 : vector<2x32xf32>
    %616 = vector.extract_strided_slice %608 {offsets = [0, 64], sizes = [2, 32], strides = [1, 1]} : vector<2x96xf32> to vector<2x32xf32>
    %617 = math.tanh %615 : vector<2x32xf32>
    %618 = arith.mulf %616, %617 : vector<2x32xf32>
    %619 = vector.extract_strided_slice %375 {offsets = [12, 0], sizes = [2, 128], strides = [1, 1]} : vector<16x128xf32> to vector<2x128xf32>
    %620 = vector.extract_strided_slice %599 {offsets = [0, 0], sizes = [2, 128], strides = [1, 1]} : vector<2x256xf32> to vector<2x128xf32>
    %621 = arith.addf %619, %620 : vector<2x128xf32>
    %622 = vector.extract_strided_slice %621 {offsets = [0, 0], sizes = [2, 96], strides = [1, 1]} : vector<2x128xf32> to vector<2x96xf32>
    %623 = arith.negf %622 : vector<2x96xf32>
    %624 = math.exp %623 : vector<2x96xf32>
    %cst_173 = arith.constant 1.000000e+00 : f32
    %625 = vector.broadcast %cst_173 : f32 to vector<2x96xf32>
    %626 = arith.addf %625, %624 : vector<2x96xf32>
    %627 = arith.divf %625, %626 : vector<2x96xf32>
    %628 = vector.extract_strided_slice %621 {offsets = [0, 96], sizes = [2, 32], strides = [1, 1]} : vector<2x128xf32> to vector<2x32xf32>
    %629 = math.tanh %628 : vector<2x32xf32>
    %630 = vector.extract_strided_slice %627 {offsets = [0, 32], sizes = [2, 32], strides = [1, 1]} : vector<2x96xf32> to vector<2x32xf32>
    %631 = arith.mulf %630, %594 : vector<2x32xf32>
    %632 = vector.extract_strided_slice %627 {offsets = [0, 0], sizes = [2, 32], strides = [1, 1]} : vector<2x96xf32> to vector<2x32xf32>
    %633 = arith.mulf %632, %629 : vector<2x32xf32>
    %634 = arith.addf %631, %633 : vector<2x32xf32>
    %635 = vector.extract_strided_slice %627 {offsets = [0, 64], sizes = [2, 32], strides = [1, 1]} : vector<2x96xf32> to vector<2x32xf32>
    %636 = math.tanh %634 : vector<2x32xf32>
    %637 = arith.mulf %635, %636 : vector<2x32xf32>
    %638 = tpu.concatenate %637, %618 in 1 : vector<2x32xf32>, vector<2x32xf32> -> vector<2x64xf32>
    %cst_174 = arith.constant dense<0.000000e+00> : vector<2x256xf32>
    %639 = tpu.matmul %638, %376, %cst_174 {dimension_numbers = #tpu.dot_dimension_numbers<[1], [0], [0], [1], [0, 0, 1, 1], [], []>} : vector<2x64xf32>, vector<64x256xf32>, vector<2x256xf32> -> vector<2x256xf32>
    %640 = vector.extract_strided_slice %639 {offsets = [0, 128], sizes = [2, 128], strides = [1, 1]} : vector<2x256xf32> to vector<2x128xf32>
    %641 = vector.broadcast %377 : vector<1x128xf32> to vector<2x128xf32>
    %642 = arith.addf %640, %641 : vector<2x128xf32>
    %643 = vector.extract_strided_slice %642 {offsets = [0, 0], sizes = [2, 96], strides = [1, 1]} : vector<2x128xf32> to vector<2x96xf32>
    %644 = arith.negf %643 : vector<2x96xf32>
    %645 = math.exp %644 : vector<2x96xf32>
    %cst_175 = arith.constant 1.000000e+00 : f32
    %646 = vector.broadcast %cst_175 : f32 to vector<2x96xf32>
    %647 = arith.addf %646, %645 : vector<2x96xf32>
    %648 = arith.divf %646, %647 : vector<2x96xf32>
    %649 = vector.extract_strided_slice %642 {offsets = [0, 96], sizes = [2, 32], strides = [1, 1]} : vector<2x128xf32> to vector<2x32xf32>
    %650 = math.tanh %649 : vector<2x32xf32>
    %651 = vector.extract_strided_slice %648 {offsets = [0, 32], sizes = [2, 32], strides = [1, 1]} : vector<2x96xf32> to vector<2x32xf32>
    %652 = arith.mulf %651, %615 : vector<2x32xf32>
    %653 = vector.extract_strided_slice %648 {offsets = [0, 0], sizes = [2, 32], strides = [1, 1]} : vector<2x96xf32> to vector<2x32xf32>
    %654 = arith.mulf %653, %650 : vector<2x32xf32>
    %655 = arith.addf %652, %654 : vector<2x32xf32>
    %656 = vector.extract_strided_slice %648 {offsets = [0, 64], sizes = [2, 32], strides = [1, 1]} : vector<2x96xf32> to vector<2x32xf32>
    %657 = math.tanh %655 : vector<2x32xf32>
    %658 = arith.mulf %656, %657 : vector<2x32xf32>
    %659 = vector.extract_strided_slice %375 {offsets = [14, 0], sizes = [2, 128], strides = [1, 1]} : vector<16x128xf32> to vector<2x128xf32>
    %660 = vector.extract_strided_slice %639 {offsets = [0, 0], sizes = [2, 128], strides = [1, 1]} : vector<2x256xf32> to vector<2x128xf32>
    %661 = arith.addf %659, %660 : vector<2x128xf32>
    %662 = vector.extract_strided_slice %661 {offsets = [0, 0], sizes = [2, 96], strides = [1, 1]} : vector<2x128xf32> to vector<2x96xf32>
    %663 = arith.negf %662 : vector<2x96xf32>
    %664 = math.exp %663 : vector<2x96xf32>
    %cst_176 = arith.constant 1.000000e+00 : f32
    %665 = vector.broadcast %cst_176 : f32 to vector<2x96xf32>
    %666 = arith.addf %665, %664 : vector<2x96xf32>
    %667 = arith.divf %665, %666 : vector<2x96xf32>
    %668 = vector.extract_strided_slice %661 {offsets = [0, 96], sizes = [2, 32], strides = [1, 1]} : vector<2x128xf32> to vector<2x32xf32>
    %669 = math.tanh %668 : vector<2x32xf32>
    %670 = vector.extract_strided_slice %667 {offsets = [0, 32], sizes = [2, 32], strides = [1, 1]} : vector<2x96xf32> to vector<2x32xf32>
    %671 = arith.mulf %670, %634 : vector<2x32xf32>
    %672 = vector.extract_strided_slice %667 {offsets = [0, 0], sizes = [2, 32], strides = [1, 1]} : vector<2x96xf32> to vector<2x32xf32>
    %673 = arith.mulf %672, %669 : vector<2x32xf32>
    %674 = arith.addf %671, %673 : vector<2x32xf32>
    %675 = vector.extract_strided_slice %667 {offsets = [0, 64], sizes = [2, 32], strides = [1, 1]} : vector<2x96xf32> to vector<2x32xf32>
    %676 = math.tanh %674 : vector<2x32xf32>
    %677 = arith.mulf %675, %676 : vector<2x32xf32>
    %678 = tpu.concatenate %677, %658 in 1 : vector<2x32xf32>, vector<2x32xf32> -> vector<2x64xf32>
    %c0_177 = arith.constant 0 : index
    %c128 = arith.constant 128 : index
    %679 = vector.load %arg18[%c0_177, %c128] : memref<64x256xf32, #tpu.memory_space<vmem>>, vector<64x128xf32>
    %cst_178 = arith.constant dense<0.000000e+00> : vector<2x128xf32>
    %680 = tpu.matmul %678, %679, %cst_178 {dimension_numbers = #tpu.dot_dimension_numbers<[1], [0], [0], [1], [0, 0, 1, 1], [], []>} : vector<2x64xf32>, vector<64x128xf32>, vector<2x128xf32> -> vector<2x128xf32>
    %681 = vector.broadcast %377 : vector<1x128xf32> to vector<2x128xf32>
    %682 = arith.addf %680, %681 : vector<2x128xf32>
    %683 = vector.extract_strided_slice %682 {offsets = [0, 0], sizes = [2, 96], strides = [1, 1]} : vector<2x128xf32> to vector<2x96xf32>
    %684 = arith.negf %683 : vector<2x96xf32>
    %685 = math.exp %684 : vector<2x96xf32>
    %cst_179 = arith.constant 1.000000e+00 : f32
    %686 = vector.broadcast %cst_179 : f32 to vector<2x96xf32>
    %687 = arith.addf %686, %685 : vector<2x96xf32>
    %688 = arith.divf %686, %687 : vector<2x96xf32>
    %689 = vector.extract_strided_slice %682 {offsets = [0, 96], sizes = [2, 32], strides = [1, 1]} : vector<2x128xf32> to vector<2x32xf32>
    %690 = math.tanh %689 : vector<2x32xf32>
    %691 = vector.extract_strided_slice %688 {offsets = [0, 32], sizes = [2, 32], strides = [1, 1]} : vector<2x96xf32> to vector<2x32xf32>
    %692 = arith.mulf %691, %655 : vector<2x32xf32>
    %693 = vector.extract_strided_slice %688 {offsets = [0, 0], sizes = [2, 32], strides = [1, 1]} : vector<2x96xf32> to vector<2x32xf32>
    %694 = arith.mulf %693, %690 : vector<2x32xf32>
    %695 = arith.addf %692, %694 : vector<2x32xf32>
    %696 = vector.extract_strided_slice %688 {offsets = [0, 64], sizes = [2, 32], strides = [1, 1]} : vector<2x96xf32> to vector<2x32xf32>
    %697 = math.tanh %695 : vector<2x32xf32>
    %698 = arith.mulf %696, %697 : vector<2x32xf32>
    %699 = vector.shape_cast %418 : vector<2x32xf32> to vector<1x2x32xf32>
    %700 = vector.shape_cast %458 : vector<2x32xf32> to vector<1x2x32xf32>
    %701 = vector.shape_cast %498 : vector<2x32xf32> to vector<1x2x32xf32>
    %702 = vector.shape_cast %538 : vector<2x32xf32> to vector<1x2x32xf32>
    %703 = vector.shape_cast %578 : vector<2x32xf32> to vector<1x2x32xf32>
    %704 = vector.shape_cast %618 : vector<2x32xf32> to vector<1x2x32xf32>
    %705 = vector.shape_cast %658 : vector<2x32xf32> to vector<1x2x32xf32>
    %706 = vector.shape_cast %698 : vector<2x32xf32> to vector<1x2x32xf32>
    %707 = tpu.concatenate %699, %700, %701, %702, %703, %704, %705, %706 in 0 : vector<1x2x32xf32>, vector<1x2x32xf32>, vector<1x2x32xf32>, vector<1x2x32xf32>, vector<1x2x32xf32>, vector<1x2x32xf32>, vector<1x2x32xf32>, vector<1x2x32xf32> -> vector<8x2x32xf32>
    %708 = vector.extract_strided_slice %707 {offsets = [0, 0, 0], sizes = [8, 1, 32], strides = [1, 1, 1]} : vector<8x2x32xf32> to vector<8x1x32xf32>
    %709 = vector.shape_cast %708 : vector<8x1x32xf32> to vector<8x32xf32>
    %710 = vector.extract_strided_slice %707 {offsets = [0, 1, 0], sizes = [8, 1, 32], strides = [1, 1, 1]} : vector<8x2x32xf32> to vector<8x1x32xf32>
    %711 = vector.shape_cast %710 : vector<8x1x32xf32> to vector<8x32xf32>
    %712 = tpu.concatenate %709, %711 in 0 : vector<8x32xf32>, vector<8x32xf32> -> vector<16x32xf32>
    %c0_180 = arith.constant 0 : index
    %c0_181 = arith.constant 0 : index
    %713 = vector.load %arg20[%c0_180, %c0_181] : memref<32x96xf32, #tpu.memory_space<vmem>>, vector<32x96xf32>
    %cst_182 = arith.constant dense<0.000000e+00> : vector<16x96xf32>
    %714 = tpu.matmul %712, %713, %cst_182 {dimension_numbers = #tpu.dot_dimension_numbers<[1], [0], [0], [1], [0, 0, 1, 1], [], []>} : vector<16x32xf32>, vector<32x96xf32>, vector<16x96xf32> -> vector<16x96xf32>
    %c0_183 = arith.constant 0 : index
    %c0_184 = arith.constant 0 : index
    %715 = vector.load %arg21[%c0_183, %c0_184] : memref<1x96xf32, #tpu.memory_space<vmem>>, vector<1x96xf32>
    %716 = vector.broadcast %715 : vector<1x96xf32> to vector<16x96xf32>
    %717 = arith.addf %714, %716 : vector<16x96xf32>
    %718 = vector.extract_strided_slice %717 {offsets = [0, 0], sizes = [8, 96], strides = [1, 1]} : vector<16x96xf32> to vector<8x96xf32>
    %c0_185 = arith.constant 0 : index
    %c0_186 = arith.constant 0 : index
    %719 = vector.load %arg9[%c0_185, %c0_186] : memref<2x8xf32, #tpu.memory_space<vmem>>, vector<1x8xf32>
    %cst_187 = arith.constant 1.000000e+00 : f32
    %720 = vector.broadcast %cst_187 : f32 to vector<1x8xf32>
    %721 = arith.subf %720, %719 : vector<1x8xf32>
    %cst_188 = arith.constant -1.000000e+04 : f32
    %722 = vector.broadcast %cst_188 : f32 to vector<1x8xf32>
    %723 = arith.mulf %721, %722 : vector<1x8xf32>
    %cst_189 = arith.constant 0.000000e+00 : f32
    %724 = vector.broadcast %cst_189 : f32 to vector<8x32xf32>
    %725 = vector.extract_strided_slice %718 {offsets = [0, 0], sizes = [8, 16], strides = [1, 1]} : vector<8x96xf32> to vector<8x16xf32>
    %726 = vector.extract_strided_slice %718 {offsets = [0, 32], sizes = [8, 16], strides = [1, 1]} : vector<8x96xf32> to vector<8x16xf32>
    %727 = vector.extract_strided_slice %718 {offsets = [0, 64], sizes = [8, 16], strides = [1, 1]} : vector<8x96xf32> to vector<8x16xf32>
    %728 = tpu.transpose %726, [1, 0] : vector<8x16xf32> -> vector<16x8xf32>
    %cst_190 = arith.constant dense<0.000000e+00> : vector<8x8xf32>
    %729 = tpu.matmul %725, %728, %cst_190 {dimension_numbers = #tpu.dot_dimension_numbers<[1], [0], [0], [1], [0, 0, 1, 1], [], []>} : vector<8x16xf32>, vector<16x8xf32>, vector<8x8xf32> -> vector<8x8xf32>
    %730 = vector.broadcast %723 : vector<1x8xf32> to vector<8x8xf32>
    %731 = arith.addf %729, %730 : vector<8x8xf32>
    %cst_191 = arith.constant dense<0xFF800000> : vector<8xf32>
    %732 = vector.multi_reduction <maximumf>, %731, %cst_191 [1] : vector<8x8xf32> to vector<8xf32>
    %733 = vector.shape_cast %732 : vector<8xf32> to vector<8x1xf32>
    %734 = vector.broadcast %733 : vector<8x1xf32> to vector<8x8xf32>
    %735 = arith.subf %731, %734 : vector<8x8xf32>
    %736 = math.exp %735 : vector<8x8xf32>
    %cst_192 = arith.constant dense<0.000000e+00> : vector<8xf32>
    %737 = vector.multi_reduction <add>, %736, %cst_192 [1] : vector<8x8xf32> to vector<8xf32>
    %738 = vector.shape_cast %737 : vector<8xf32> to vector<8x1xf32>
    %739 = tpu.reciprocal %738 {approx = true} : vector<8x1xf32> -> vector<8x1xf32>
    %740 = vector.broadcast %739 : vector<8x1xf32> to vector<8x8xf32>
    %741 = arith.mulf %736, %740 : vector<8x8xf32>
    %cst_193 = arith.constant dense<0.000000e+00> : vector<8x16xf32>
    %742 = tpu.matmul %741, %727, %cst_193 {dimension_numbers = #tpu.dot_dimension_numbers<[1], [0], [0], [1], [0, 0, 1, 1], [], []>} : vector<8x8xf32>, vector<8x16xf32>, vector<8x16xf32> -> vector<8x16xf32>
    %c0_194 = arith.constant 0 : index
    %c0_195 = arith.constant 0 : index
    %743 = vector.load %arg22[%c0_194, %c0_195] : memref<32x32xf32, #tpu.memory_space<vmem>>, vector<16x32xf32>
    %cst_196 = arith.constant dense<0.000000e+00> : vector<8x32xf32>
    %744 = tpu.matmul %742, %743, %cst_196 {dimension_numbers = #tpu.dot_dimension_numbers<[1], [0], [0], [1], [0, 0, 1, 1], [], []>} : vector<8x16xf32>, vector<16x32xf32>, vector<8x32xf32> -> vector<8x32xf32>
    %745 = arith.addf %724, %744 : vector<8x32xf32>
    %746 = vector.extract_strided_slice %718 {offsets = [0, 16], sizes = [8, 16], strides = [1, 1]} : vector<8x96xf32> to vector<8x16xf32>
    %747 = vector.extract_strided_slice %718 {offsets = [0, 48], sizes = [8, 16], strides = [1, 1]} : vector<8x96xf32> to vector<8x16xf32>
    %748 = vector.extract_strided_slice %718 {offsets = [0, 80], sizes = [8, 16], strides = [1, 1]} : vector<8x96xf32> to vector<8x16xf32>
    %749 = tpu.transpose %747, [1, 0] : vector<8x16xf32> -> vector<16x8xf32>
    %cst_197 = arith.constant dense<0.000000e+00> : vector<8x8xf32>
    %750 = tpu.matmul %746, %749, %cst_197 {dimension_numbers = #tpu.dot_dimension_numbers<[1], [0], [0], [1], [0, 0, 1, 1], [], []>} : vector<8x16xf32>, vector<16x8xf32>, vector<8x8xf32> -> vector<8x8xf32>
    %751 = vector.broadcast %723 : vector<1x8xf32> to vector<8x8xf32>
    %752 = arith.addf %750, %751 : vector<8x8xf32>
    %cst_198 = arith.constant dense<0xFF800000> : vector<8xf32>
    %753 = vector.multi_reduction <maximumf>, %752, %cst_198 [1] : vector<8x8xf32> to vector<8xf32>
    %754 = vector.shape_cast %753 : vector<8xf32> to vector<8x1xf32>
    %755 = vector.broadcast %754 : vector<8x1xf32> to vector<8x8xf32>
    %756 = arith.subf %752, %755 : vector<8x8xf32>
    %757 = math.exp %756 : vector<8x8xf32>
    %cst_199 = arith.constant dense<0.000000e+00> : vector<8xf32>
    %758 = vector.multi_reduction <add>, %757, %cst_199 [1] : vector<8x8xf32> to vector<8xf32>
    %759 = vector.shape_cast %758 : vector<8xf32> to vector<8x1xf32>
    %760 = tpu.reciprocal %759 {approx = true} : vector<8x1xf32> -> vector<8x1xf32>
    %761 = vector.broadcast %760 : vector<8x1xf32> to vector<8x8xf32>
    %762 = arith.mulf %757, %761 : vector<8x8xf32>
    %cst_200 = arith.constant dense<0.000000e+00> : vector<8x16xf32>
    %763 = tpu.matmul %762, %748, %cst_200 {dimension_numbers = #tpu.dot_dimension_numbers<[1], [0], [0], [1], [0, 0, 1, 1], [], []>} : vector<8x8xf32>, vector<8x16xf32>, vector<8x16xf32> -> vector<8x16xf32>
    %c16_201 = arith.constant 16 : index
    %c0_202 = arith.constant 0 : index
    %764 = vector.load %arg22[%c16_201, %c0_202] : memref<32x32xf32, #tpu.memory_space<vmem>>, vector<16x32xf32>
    %cst_203 = arith.constant dense<0.000000e+00> : vector<8x32xf32>
    %765 = tpu.matmul %763, %764, %cst_203 {dimension_numbers = #tpu.dot_dimension_numbers<[1], [0], [0], [1], [0, 0, 1, 1], [], []>} : vector<8x16xf32>, vector<16x32xf32>, vector<8x32xf32> -> vector<8x32xf32>
    %766 = arith.addf %745, %765 : vector<8x32xf32>
    %767 = vector.extract_strided_slice %717 {offsets = [8, 0], sizes = [8, 96], strides = [1, 1]} : vector<16x96xf32> to vector<8x96xf32>
    %c1_204 = arith.constant 1 : index
    %c0_205 = arith.constant 0 : index
    %768 = vector.load %arg9[%c1_204, %c0_205] : memref<2x8xf32, #tpu.memory_space<vmem>>, vector<1x8xf32>
    %cst_206 = arith.constant 1.000000e+00 : f32
    %769 = vector.broadcast %cst_206 : f32 to vector<1x8xf32>
    %770 = arith.subf %769, %768 : vector<1x8xf32>
    %cst_207 = arith.constant -1.000000e+04 : f32
    %771 = vector.broadcast %cst_207 : f32 to vector<1x8xf32>
    %772 = arith.mulf %770, %771 : vector<1x8xf32>
    %cst_208 = arith.constant 0.000000e+00 : f32
    %773 = vector.broadcast %cst_208 : f32 to vector<8x32xf32>
    %774 = vector.extract_strided_slice %767 {offsets = [0, 0], sizes = [8, 16], strides = [1, 1]} : vector<8x96xf32> to vector<8x16xf32>
    %775 = vector.extract_strided_slice %767 {offsets = [0, 32], sizes = [8, 16], strides = [1, 1]} : vector<8x96xf32> to vector<8x16xf32>
    %776 = vector.extract_strided_slice %767 {offsets = [0, 64], sizes = [8, 16], strides = [1, 1]} : vector<8x96xf32> to vector<8x16xf32>
    %777 = tpu.transpose %775, [1, 0] : vector<8x16xf32> -> vector<16x8xf32>
    %cst_209 = arith.constant dense<0.000000e+00> : vector<8x8xf32>
    %778 = tpu.matmul %774, %777, %cst_209 {dimension_numbers = #tpu.dot_dimension_numbers<[1], [0], [0], [1], [0, 0, 1, 1], [], []>} : vector<8x16xf32>, vector<16x8xf32>, vector<8x8xf32> -> vector<8x8xf32>
    %779 = vector.broadcast %772 : vector<1x8xf32> to vector<8x8xf32>
    %780 = arith.addf %778, %779 : vector<8x8xf32>
    %cst_210 = arith.constant dense<0xFF800000> : vector<8xf32>
    %781 = vector.multi_reduction <maximumf>, %780, %cst_210 [1] : vector<8x8xf32> to vector<8xf32>
    %782 = vector.shape_cast %781 : vector<8xf32> to vector<8x1xf32>
    %783 = vector.broadcast %782 : vector<8x1xf32> to vector<8x8xf32>
    %784 = arith.subf %780, %783 : vector<8x8xf32>
    %785 = math.exp %784 : vector<8x8xf32>
    %cst_211 = arith.constant dense<0.000000e+00> : vector<8xf32>
    %786 = vector.multi_reduction <add>, %785, %cst_211 [1] : vector<8x8xf32> to vector<8xf32>
    %787 = vector.shape_cast %786 : vector<8xf32> to vector<8x1xf32>
    %788 = tpu.reciprocal %787 {approx = true} : vector<8x1xf32> -> vector<8x1xf32>
    %789 = vector.broadcast %788 : vector<8x1xf32> to vector<8x8xf32>
    %790 = arith.mulf %785, %789 : vector<8x8xf32>
    %cst_212 = arith.constant dense<0.000000e+00> : vector<8x16xf32>
    %791 = tpu.matmul %790, %776, %cst_212 {dimension_numbers = #tpu.dot_dimension_numbers<[1], [0], [0], [1], [0, 0, 1, 1], [], []>} : vector<8x8xf32>, vector<8x16xf32>, vector<8x16xf32> -> vector<8x16xf32>
    %c0_213 = arith.constant 0 : index
    %c0_214 = arith.constant 0 : index
    %792 = vector.load %arg22[%c0_213, %c0_214] : memref<32x32xf32, #tpu.memory_space<vmem>>, vector<16x32xf32>
    %cst_215 = arith.constant dense<0.000000e+00> : vector<8x32xf32>
    %793 = tpu.matmul %791, %792, %cst_215 {dimension_numbers = #tpu.dot_dimension_numbers<[1], [0], [0], [1], [0, 0, 1, 1], [], []>} : vector<8x16xf32>, vector<16x32xf32>, vector<8x32xf32> -> vector<8x32xf32>
    %794 = arith.addf %773, %793 : vector<8x32xf32>
    %795 = vector.extract_strided_slice %767 {offsets = [0, 16], sizes = [8, 16], strides = [1, 1]} : vector<8x96xf32> to vector<8x16xf32>
    %796 = vector.extract_strided_slice %767 {offsets = [0, 48], sizes = [8, 16], strides = [1, 1]} : vector<8x96xf32> to vector<8x16xf32>
    %797 = vector.extract_strided_slice %767 {offsets = [0, 80], sizes = [8, 16], strides = [1, 1]} : vector<8x96xf32> to vector<8x16xf32>
    %798 = tpu.transpose %796, [1, 0] : vector<8x16xf32> -> vector<16x8xf32>
    %cst_216 = arith.constant dense<0.000000e+00> : vector<8x8xf32>
    %799 = tpu.matmul %795, %798, %cst_216 {dimension_numbers = #tpu.dot_dimension_numbers<[1], [0], [0], [1], [0, 0, 1, 1], [], []>} : vector<8x16xf32>, vector<16x8xf32>, vector<8x8xf32> -> vector<8x8xf32>
    %800 = vector.broadcast %772 : vector<1x8xf32> to vector<8x8xf32>
    %801 = arith.addf %799, %800 : vector<8x8xf32>
    %cst_217 = arith.constant dense<0xFF800000> : vector<8xf32>
    %802 = vector.multi_reduction <maximumf>, %801, %cst_217 [1] : vector<8x8xf32> to vector<8xf32>
    %803 = vector.shape_cast %802 : vector<8xf32> to vector<8x1xf32>
    %804 = vector.broadcast %803 : vector<8x1xf32> to vector<8x8xf32>
    %805 = arith.subf %801, %804 : vector<8x8xf32>
    %806 = math.exp %805 : vector<8x8xf32>
    %cst_218 = arith.constant dense<0.000000e+00> : vector<8xf32>
    %807 = vector.multi_reduction <add>, %806, %cst_218 [1] : vector<8x8xf32> to vector<8xf32>
    %808 = vector.shape_cast %807 : vector<8xf32> to vector<8x1xf32>
    %809 = tpu.reciprocal %808 {approx = true} : vector<8x1xf32> -> vector<8x1xf32>
    %810 = vector.broadcast %809 : vector<8x1xf32> to vector<8x8xf32>
    %811 = arith.mulf %806, %810 : vector<8x8xf32>
    %cst_219 = arith.constant dense<0.000000e+00> : vector<8x16xf32>
    %812 = tpu.matmul %811, %797, %cst_219 {dimension_numbers = #tpu.dot_dimension_numbers<[1], [0], [0], [1], [0, 0, 1, 1], [], []>} : vector<8x8xf32>, vector<8x16xf32>, vector<8x16xf32> -> vector<8x16xf32>
    %c16_220 = arith.constant 16 : index
    %c0_221 = arith.constant 0 : index
    %813 = vector.load %arg22[%c16_220, %c0_221] : memref<32x32xf32, #tpu.memory_space<vmem>>, vector<16x32xf32>
    %cst_222 = arith.constant dense<0.000000e+00> : vector<8x32xf32>
    %814 = tpu.matmul %812, %813, %cst_222 {dimension_numbers = #tpu.dot_dimension_numbers<[1], [0], [0], [1], [0, 0, 1, 1], [], []>} : vector<8x16xf32>, vector<16x32xf32>, vector<8x32xf32> -> vector<8x32xf32>
    %815 = arith.addf %794, %814 : vector<8x32xf32>
    %816 = tpu.concatenate %766, %815 in 0 : vector<8x32xf32>, vector<8x32xf32> -> vector<16x32xf32>
    %c0_223 = arith.constant 0 : index
    %c0_224 = arith.constant 0 : index
    %817 = vector.load %arg23[%c0_223, %c0_224] : memref<1x32xf32, #tpu.memory_space<vmem>>, vector<1x32xf32>
    %818 = vector.broadcast %817 : vector<1x32xf32> to vector<16x32xf32>
    %819 = arith.addf %816, %818 : vector<16x32xf32>
    %820 = arith.addf %819, %712 : vector<16x32xf32>
    %c0_225 = arith.constant 0 : index
    %c0_226 = arith.constant 0 : index
    %821 = vector.load %arg24[%c0_225, %c0_226] : memref<2x32xf32, #tpu.memory_space<vmem>>, vector<1x32xf32>
    %c1_227 = arith.constant 1 : index
    %c0_228 = arith.constant 0 : index
    %822 = vector.load %arg24[%c1_227, %c0_228] : memref<2x32xf32, #tpu.memory_space<vmem>>, vector<1x32xf32>
    %cst_229 = arith.constant dense<0.000000e+00> : vector<16xf32>
    %823 = vector.multi_reduction <add>, %820, %cst_229 [1] : vector<16x32xf32> to vector<16xf32>
    %824 = vector.shape_cast %823 : vector<16xf32> to vector<16x1xf32>
    %cst_230 = arith.constant 3.200000e+01 : f32
    %825 = vector.broadcast %cst_230 : f32 to vector<16x1xf32>
    %826 = arith.divf %824, %825 : vector<16x1xf32>
    %827 = vector.broadcast %826 : vector<16x1xf32> to vector<16x32xf32>
    %828 = arith.subf %820, %827 : vector<16x32xf32>
    %829 = arith.mulf %828, %828 : vector<16x32xf32>
    %cst_231 = arith.constant dense<0.000000e+00> : vector<16xf32>
    %830 = vector.multi_reduction <add>, %829, %cst_231 [1] : vector<16x32xf32> to vector<16xf32>
    %831 = vector.shape_cast %830 : vector<16xf32> to vector<16x1xf32>
    %cst_232 = arith.constant 3.200000e+01 : f32
    %832 = vector.broadcast %cst_232 : f32 to vector<16x1xf32>
    %833 = arith.divf %831, %832 : vector<16x1xf32>
    %834 = vector.broadcast %826 : vector<16x1xf32> to vector<16x32xf32>
    %835 = arith.subf %820, %834 : vector<16x32xf32>
    %cst_233 = arith.constant 9.99999996E-13 : f32
    %836 = vector.broadcast %cst_233 : f32 to vector<16x1xf32>
    %837 = arith.addf %833, %836 : vector<16x1xf32>
    %838 = math.rsqrt %837 : vector<16x1xf32>
    %839 = vector.broadcast %838 : vector<16x1xf32> to vector<16x32xf32>
    %840 = arith.mulf %835, %839 : vector<16x32xf32>
    %841 = vector.broadcast %821 : vector<1x32xf32> to vector<16x32xf32>
    %842 = arith.mulf %840, %841 : vector<16x32xf32>
    %843 = vector.broadcast %822 : vector<1x32xf32> to vector<16x32xf32>
    %844 = arith.addf %842, %843 : vector<16x32xf32>
    %c0_234 = arith.constant 0 : index
    %c0_235 = arith.constant 0 : index
    %845 = vector.load %arg25[%c0_234, %c0_235] : memref<32x32xf32, #tpu.memory_space<vmem>>, vector<32x32xf32>
    %cst_236 = arith.constant dense<0.000000e+00> : vector<16x32xf32>
    %846 = tpu.matmul %844, %845, %cst_236 {dimension_numbers = #tpu.dot_dimension_numbers<[1], [0], [0], [1], [0, 0, 1, 1], [], []>} : vector<16x32xf32>, vector<32x32xf32>, vector<16x32xf32> -> vector<16x32xf32>
    %c0_237 = arith.constant 0 : index
    %c0_238 = arith.constant 0 : index
    %847 = vector.load %arg26[%c0_237, %c0_238] : memref<1x32xf32, #tpu.memory_space<vmem>>, vector<1x32xf32>
    %848 = vector.broadcast %847 : vector<1x32xf32> to vector<16x32xf32>
    %849 = arith.addf %846, %848 : vector<16x32xf32>
    %cst_239 = arith.constant 5.000000e-01 : f32
    %850 = vector.broadcast %cst_239 : f32 to vector<16x32xf32>
    %851 = arith.mulf %850, %849 : vector<16x32xf32>
    %cst_240 = arith.constant 4.471500e-02 : f32
    %852 = vector.broadcast %cst_240 : f32 to vector<16x32xf32>
    %853 = arith.mulf %852, %849 : vector<16x32xf32>
    %854 = arith.mulf %853, %849 : vector<16x32xf32>
    %855 = arith.mulf %854, %849 : vector<16x32xf32>
    %856 = arith.addf %849, %855 : vector<16x32xf32>
    %cst_241 = arith.constant 0.797884583 : f32
    %857 = vector.broadcast %cst_241 : f32 to vector<16x32xf32>
    %858 = arith.mulf %857, %856 : vector<16x32xf32>
    %859 = math.tanh %858 : vector<16x32xf32>
    %cst_242 = arith.constant 1.000000e+00 : f32
    %860 = vector.broadcast %cst_242 : f32 to vector<16x32xf32>
    %861 = arith.addf %860, %859 : vector<16x32xf32>
    %862 = arith.mulf %851, %861 : vector<16x32xf32>
    %c0_243 = arith.constant 0 : index
    %c0_244 = arith.constant 0 : index
    %863 = vector.load %arg27[%c0_243, %c0_244] : memref<32x32xf32, #tpu.memory_space<vmem>>, vector<32x32xf32>
    %cst_245 = arith.constant dense<0.000000e+00> : vector<16x32xf32>
    %864 = tpu.matmul %862, %863, %cst_245 {dimension_numbers = #tpu.dot_dimension_numbers<[1], [0], [0], [1], [0, 0, 1, 1], [], []>} : vector<16x32xf32>, vector<32x32xf32>, vector<16x32xf32> -> vector<16x32xf32>
    %c0_246 = arith.constant 0 : index
    %c0_247 = arith.constant 0 : index
    %865 = vector.load %arg28[%c0_246, %c0_247] : memref<1x32xf32, #tpu.memory_space<vmem>>, vector<1x32xf32>
    %866 = vector.broadcast %865 : vector<1x32xf32> to vector<16x32xf32>
    %867 = arith.addf %864, %866 : vector<16x32xf32>
    %868 = arith.addf %867, %844 : vector<16x32xf32>
    %c0_248 = arith.constant 0 : index
    %c0_249 = arith.constant 0 : index
    %869 = vector.load %arg29[%c0_248, %c0_249] : memref<2x32xf32, #tpu.memory_space<vmem>>, vector<1x32xf32>
    %c1_250 = arith.constant 1 : index
    %c0_251 = arith.constant 0 : index
    %870 = vector.load %arg29[%c1_250, %c0_251] : memref<2x32xf32, #tpu.memory_space<vmem>>, vector<1x32xf32>
    %cst_252 = arith.constant dense<0.000000e+00> : vector<16xf32>
    %871 = vector.multi_reduction <add>, %868, %cst_252 [1] : vector<16x32xf32> to vector<16xf32>
    %872 = vector.shape_cast %871 : vector<16xf32> to vector<16x1xf32>
    %cst_253 = arith.constant 3.200000e+01 : f32
    %873 = vector.broadcast %cst_253 : f32 to vector<16x1xf32>
    %874 = arith.divf %872, %873 : vector<16x1xf32>
    %875 = vector.broadcast %874 : vector<16x1xf32> to vector<16x32xf32>
    %876 = arith.subf %868, %875 : vector<16x32xf32>
    %877 = arith.mulf %876, %876 : vector<16x32xf32>
    %cst_254 = arith.constant dense<0.000000e+00> : vector<16xf32>
    %878 = vector.multi_reduction <add>, %877, %cst_254 [1] : vector<16x32xf32> to vector<16xf32>
    %879 = vector.shape_cast %878 : vector<16xf32> to vector<16x1xf32>
    %cst_255 = arith.constant 3.200000e+01 : f32
    %880 = vector.broadcast %cst_255 : f32 to vector<16x1xf32>
    %881 = arith.divf %879, %880 : vector<16x1xf32>
    %882 = vector.broadcast %874 : vector<16x1xf32> to vector<16x32xf32>
    %883 = arith.subf %868, %882 : vector<16x32xf32>
    %cst_256 = arith.constant 9.99999996E-13 : f32
    %884 = vector.broadcast %cst_256 : f32 to vector<16x1xf32>
    %885 = arith.addf %881, %884 : vector<16x1xf32>
    %886 = math.rsqrt %885 : vector<16x1xf32>
    %887 = vector.broadcast %886 : vector<16x1xf32> to vector<16x32xf32>
    %888 = arith.mulf %883, %887 : vector<16x32xf32>
    %889 = vector.broadcast %869 : vector<1x32xf32> to vector<16x32xf32>
    %890 = arith.mulf %888, %889 : vector<16x32xf32>
    %891 = vector.broadcast %870 : vector<1x32xf32> to vector<16x32xf32>
    %892 = arith.addf %890, %891 : vector<16x32xf32>
    %c0_257 = arith.constant 0 : index
    %c0_258 = arith.constant 0 : index
    %893 = vector.load %arg30[%c0_257, %c0_258] : memref<2x32xf32, #tpu.memory_space<vmem>>, vector<1x32xf32>
    %894 = vector.broadcast %893 : vector<1x32xf32> to vector<16x32xf32>
    %895 = arith.mulf %892, %894 : vector<16x32xf32>
    %c1_259 = arith.constant 1 : index
    %c0_260 = arith.constant 0 : index
    %896 = vector.load %arg30[%c1_259, %c0_260] : memref<2x32xf32, #tpu.memory_space<vmem>>, vector<1x32xf32>
    %897 = vector.broadcast %896 : vector<1x32xf32> to vector<16x32xf32>
    %898 = arith.mulf %712, %897 : vector<16x32xf32>
    %899 = arith.addf %895, %898 : vector<16x32xf32>
    %900 = vector.shape_cast %899 : vector<16x32xf32> to vector<2x8x32xf32>
    %cst_261 = arith.constant dense<0.000000e+00> : vector<2x8xf32>
    %901 = vector.multi_reduction <add>, %900, %cst_261 [2] : vector<2x8x32xf32> to vector<2x8xf32>
    %c0_262 = arith.constant 0 : index
    %c0_263 = arith.constant 0 : index
    %902 = vector.load %arg31[%c0_262, %c0_263] : memref<1x1xf32, #tpu.memory_space<vmem>>, vector<1x1xf32>
    %903 = vector.broadcast %902 : vector<1x1xf32> to vector<2x8xf32>
    %904 = arith.addf %901, %903 : vector<2x8xf32>
    %c0_264 = arith.constant 0 : index
    %c0_265 = arith.constant 0 : index
    %905 = vector.load %arg32[%c0_264, %c0_265] : memref<2x8xf32, #tpu.memory_space<vmem>>, vector<2x8xf32>
    tpu.vector_store %arg32[%c0_264, %c0_265], %904 {strides = array<i32>} : memref<2x8xf32, #tpu.memory_space<vmem>>, vector<2x8xf32>,
    return
  }
  func.func @transform_0(%arg0: i32, %arg1: memref<96xi32, #tpu.memory_space<smem>>) -> (i32, i32) {
    %c0_i32 = arith.constant 0 : i32
    %c0_i32_0 = arith.constant 0 : i32
    %c0_i32_1 = arith.constant 0 : i32
    return %c0_i32, %c0_i32_0 : i32, i32
  }
  func.func @transform_1(%arg0: i32, %arg1: memref<96xi32, #tpu.memory_space<smem>>) -> (i32, i32) {
    %c0_i32 = arith.constant 0 : i32
    %c0_i32_0 = arith.constant 0 : i32
    %c0_i32_1 = arith.constant 0 : i32
    return %c0_i32, %c0_i32_0 : i32, i32
  }
  func.func @transform_2(%arg0: i32, %arg1: memref<96xi32, #tpu.memory_space<smem>>) -> (i32, i32) {
    %c0_i32 = arith.constant 0 : i32
    %c0_i32_0 = arith.constant 0 : i32
    %c0_i32_1 = arith.constant 0 : i32
    return %c0_i32, %c0_i32_0 : i32, i32
  }
  func.func @transform_3(%arg0: i32, %arg1: memref<96xi32, #tpu.memory_space<smem>>) -> (i32, i32) {
    %c0_i32 = arith.constant 0 : i32
    %c0_i32_0 = arith.constant 0 : i32
    %c0_i32_1 = arith.constant 0 : i32
    return %c0_i32, %c0_i32_0 : i32, i32
  }
  func.func @transform_4(%arg0: i32, %arg1: memref<96xi32, #tpu.memory_space<smem>>) -> (i32, i32) {
    %c0_i32 = arith.constant 0 : i32
    %c0_i32_0 = arith.constant 0 : i32
    %c0_i32_1 = arith.constant 0 : i32
    return %c0_i32, %c0_i32_0 : i32, i32
  }
  func.func @transform_5(%arg0: i32, %arg1: memref<96xi32, #tpu.memory_space<smem>>) -> (i32, i32) {
    %c0_i32 = arith.constant 0 : i32
    %c0_i32_0 = arith.constant 0 : i32
    %c0_i32_1 = arith.constant 0 : i32
    return %c0_i32, %c0_i32_0 : i32, i32
  }
  func.func @transform_6(%arg0: i32, %arg1: memref<96xi32, #tpu.memory_space<smem>>) -> (i32, i32) {
    %c0_i32 = arith.constant 0 : i32
    %c0_i32_0 = arith.constant 0 : i32
    %c0_i32_1 = arith.constant 0 : i32
    return %c0_i32, %c0_i32_0 : i32, i32
  }
  func.func @transform_7(%arg0: i32, %arg1: memref<96xi32, #tpu.memory_space<smem>>) -> (i32, i32) {
    %c0_i32 = arith.constant 0 : i32
    %c0_i32_0 = arith.constant 0 : i32
    %c0_i32_1 = arith.constant 0 : i32
    return %c0_i32, %c0_i32_0 : i32, i32
  }
  func.func @transform_8(%arg0: i32, %arg1: memref<96xi32, #tpu.memory_space<smem>>) -> (i32, i32) {
    %c0_i32 = arith.constant 0 : i32
    %c0_i32_0 = arith.constant 0 : i32
    %c0_i32_1 = arith.constant 0 : i32
    return %c0_i32, %c0_i32_0 : i32, i32
  }
  func.func @transform_9(%arg0: i32, %arg1: memref<96xi32, #tpu.memory_space<smem>>) -> (i32, i32) {
    %c0_i32 = arith.constant 0 : i32
    %c0_i32_0 = arith.constant 0 : i32
    %c0_i32_1 = arith.constant 0 : i32
    return %c0_i32, %c0_i32_0 : i32, i32
  }
  func.func @transform_10(%arg0: i32, %arg1: memref<96xi32, #tpu.memory_space<smem>>) -> (i32, i32) {
    %c0_i32 = arith.constant 0 : i32
    %c0_i32_0 = arith.constant 0 : i32
    %c0_i32_1 = arith.constant 0 : i32
    return %c0_i32, %c0_i32_0 : i32, i32
  }
  func.func @transform_11(%arg0: i32, %arg1: memref<96xi32, #tpu.memory_space<smem>>) -> (i32, i32) {
    %c0_i32 = arith.constant 0 : i32
    %c0_i32_0 = arith.constant 0 : i32
    %c0_i32_1 = arith.constant 0 : i32
    return %c0_i32, %c0_i32_0 : i32, i32
  }
  func.func @transform_12(%arg0: i32, %arg1: memref<96xi32, #tpu.memory_space<smem>>) -> (i32, i32) {
    %c0_i32 = arith.constant 0 : i32
    %c0_i32_0 = arith.constant 0 : i32
    %c0_i32_1 = arith.constant 0 : i32
    return %c0_i32, %c0_i32_0 : i32, i32
  }
  func.func @transform_13(%arg0: i32, %arg1: memref<96xi32, #tpu.memory_space<smem>>) -> (i32, i32) {
    %c0_i32 = arith.constant 0 : i32
    %c0_i32_0 = arith.constant 0 : i32
    %c0_i32_1 = arith.constant 0 : i32
    return %c0_i32, %c0_i32_0 : i32, i32
  }
  func.func @transform_14(%arg0: i32, %arg1: memref<96xi32, #tpu.memory_space<smem>>) -> (i32, i32) {
    %c0_i32 = arith.constant 0 : i32
    %c0_i32_0 = arith.constant 0 : i32
    %c0_i32_1 = arith.constant 0 : i32
    return %c0_i32, %c0_i32_0 : i32, i32
  }
  func.func @transform_15(%arg0: i32, %arg1: memref<96xi32, #tpu.memory_space<smem>>) -> (i32, i32) {
    %c0_i32 = arith.constant 0 : i32
    %c0_i32_0 = arith.constant 0 : i32
    %c0_i32_1 = arith.constant 0 : i32
    return %c0_i32, %c0_i32_0 : i32, i32
  }
  func.func @transform_16(%arg0: i32, %arg1: memref<96xi32, #tpu.memory_space<smem>>) -> (i32, i32) {
    %c0_i32 = arith.constant 0 : i32
    %c0_i32_0 = arith.constant 0 : i32
    %c0_i32_1 = arith.constant 0 : i32
    return %c0_i32, %c0_i32_0 : i32, i32
  }
  func.func @transform_17(%arg0: i32, %arg1: memref<96xi32, #tpu.memory_space<smem>>) -> (i32, i32) {
    %c0_i32 = arith.constant 0 : i32
    %c0_i32_0 = arith.constant 0 : i32
    %c0_i32_1 = arith.constant 0 : i32
    return %c0_i32, %c0_i32_0 : i32, i32
  }
  func.func @transform_18(%arg0: i32, %arg1: memref<96xi32, #tpu.memory_space<smem>>) -> (i32, i32) {
    %c0_i32 = arith.constant 0 : i32
    %c0_i32_0 = arith.constant 0 : i32
    %c0_i32_1 = arith.constant 0 : i32
    return %c0_i32, %c0_i32_0 : i32, i32
  }
  func.func @transform_19(%arg0: i32, %arg1: memref<96xi32, #tpu.memory_space<smem>>) -> (i32, i32) {
    %c0_i32 = arith.constant 0 : i32
    %c0_i32_0 = arith.constant 0 : i32
    %c0_i32_1 = arith.constant 0 : i32
    return %c0_i32, %c0_i32_0 : i32, i32
  }
  func.func @transform_20(%arg0: i32, %arg1: memref<96xi32, #tpu.memory_space<smem>>) -> (i32, i32) {
    %c0_i32 = arith.constant 0 : i32
    %c0_i32_0 = arith.constant 0 : i32
    %c0_i32_1 = arith.constant 0 : i32
    return %c0_i32, %c0_i32_0 : i32, i32
  }
  func.func @transform_21(%arg0: i32, %arg1: memref<96xi32, #tpu.memory_space<smem>>) -> (i32, i32) {
    %c0_i32 = arith.constant 0 : i32
    %c0_i32_0 = arith.constant 0 : i32
    %c0_i32_1 = arith.constant 0 : i32
    return %c0_i32, %c0_i32_0 : i32, i32
  }
  func.func @transform_22(%arg0: i32, %arg1: memref<96xi32, #tpu.memory_space<smem>>) -> (i32, i32) {
    %c0_i32 = arith.constant 0 : i32
    %c0_i32_0 = arith.constant 0 : i32
    %c0_i32_1 = arith.constant 0 : i32
    return %c0_i32, %c0_i32_0 : i32, i32
  }
  func.func @transform_23(%arg0: i32, %arg1: memref<96xi32, #tpu.memory_space<smem>>) -> (i32, i32) {
    %c0_i32 = arith.constant 0 : i32
    %c0_i32_0 = arith.constant 0 : i32
    %c0_i32_1 = arith.constant 0 : i32
    return %c0_i32, %c0_i32_0 : i32, i32
  }
  func.func @transform_24(%arg0: i32, %arg1: memref<96xi32, #tpu.memory_space<smem>>) -> (i32, i32) {
    %c0_i32 = arith.constant 0 : i32
    %c0_i32_0 = arith.constant 0 : i32
    %c0_i32_1 = arith.constant 0 : i32
    return %c0_i32, %c0_i32_0 : i32, i32
  }
  func.func @transform_25(%arg0: i32, %arg1: memref<96xi32, #tpu.memory_space<smem>>) -> (i32, i32) {
    %c0_i32 = arith.constant 0 : i32
    %c0_i32_0 = arith.constant 0 : i32
    %c0_i32_1 = arith.constant 0 : i32
    return %c0_i32, %c0_i32_0 : i32, i32
  }
  func.func @transform_26(%arg0: i32, %arg1: memref<96xi32, #tpu.memory_space<smem>>) -> (i32, i32) {
    %c0_i32 = arith.constant 0 : i32
    %c0_i32_0 = arith.constant 0 : i32
    %c0_i32_1 = arith.constant 0 : i32
    return %c0_i32, %c0_i32_0 : i32, i32
  }
  func.func @transform_27(%arg0: i32, %arg1: memref<96xi32, #tpu.memory_space<smem>>) -> (i32, i32) {
    %c0_i32 = arith.constant 0 : i32
    %c0_i32_0 = arith.constant 0 : i32
    %c0_i32_1 = arith.constant 0 : i32
    return %c0_i32, %c0_i32_0 : i32, i32
  }
  func.func @transform_28(%arg0: i32, %arg1: memref<96xi32, #tpu.memory_space<smem>>) -> (i32, i32) {
    %c0_i32 = arith.constant 0 : i32
    %c0_i32_0 = arith.constant 0 : i32
    %c0_i32_1 = arith.constant 0 : i32
    return %c0_i32, %c0_i32_0 : i32, i32
  }
  func.func @transform_29(%arg0: i32, %arg1: memref<96xi32, #tpu.memory_space<smem>>) -> (i32, i32) {
    %c0_i32 = arith.constant 0 : i32
    %c0_i32_0 = arith.constant 0 : i32
    %c0_i32_1 = arith.constant 0 : i32
    return %c0_i32, %c0_i32_0 : i32, i32
  }
  func.func @transform_30(%arg0: i32, %arg1: memref<96xi32, #tpu.memory_space<smem>>) -> (i32, i32) {
    %c0_i32 = arith.constant 0 : i32
    %c0_i32_0 = arith.constant 0 : i32
    %c0_i32_1 = arith.constant 0 : i32
    return %c0_i32, %c0_i32_0 : i32, i32
  }
}

</mosaic_0001>

<bundles_post_ra>
// kernel: _lambda_.1
= control target key start
LH: loop header
LB: loop body
LE: loop exit
PB: predicated region body
PF: predicated region fallthrough
CT: control target
= control target key end

     0   :  { %s6046_s6 = smov 1   ;;  %s6047_s10 = smov 2   ;;  %s7254_s0 = inlined_call_operand.smem [shape: u32[32], index: -1, kind: input, shape index: {}] }
   0x1   :  { %s6128_s5 = sld [smem:[%s7254_s0]]   ;;  %s6048_s14 = smov 3  }
   0x2   :  { %s6133_s9 = sld [smem:[%s7254_s0 + %s6046_s6]]   ;;  %s6049_s18 = smov 4  }
   0x3   :  { %s6138_s13 = sld [smem:[%s7254_s0 + %s6047_s10]]   ;;  %s6050_s22 = smov 5  }
   0x4   :  { %s6143_s17 = sld [smem:[%s7254_s0 + %s6048_s14]]   ;;  %s6051_s26 = smov 6  }
   0x5   :  { %s6148_s21 = sld [smem:[%s7254_s0 + %s6049_s18]]   ;;  %s6052_s30 = smov 7  }
   0x6   :  { %s6153_s25 = sld [smem:[%s7254_s0 + %s6050_s22]]   ;;  %s6053_s4 = smov 8  }
   0x7   :  { %s6158_s29 = sld [smem:[%s7254_s0 + %s6051_s26]]   ;;  %s6054_s10 = smov 9  }
   0x8   :  { %s6163_s3 = sld [smem:[%s7254_s0 + %s6052_s30]]   ;;  %s6055_s15 = smov 10  }
   0x9   :  { %s6168_s8 = sld [smem:[%s7254_s0 + %s6053_s4]]   ;;  %s6056_s20 = smov 11  }
   0xa   :  { %7256 = sst [smem:[#allocation67_spill]] %s6143_s17  ;;  %s6057_s26 = smov 12  }
   0xb   :  { %s6173_s14 = sld [smem:[%s7254_s0 + %s6054_s10]]   ;;  %s6058_s1 = smov 13  }
   0xc   :  { %7257 = sst [smem:[#allocation68_spill]] %s6153_s25  ;;  %s6059_s7 = smov 14  }
   0xd   :  { %s6178_s19 = sld [smem:[%s7254_s0 + %s6055_s15]]   ;;  %s6060_s15 = smov 15  }
   0xe   :  { %7258 = sst [smem:[#allocation69_spill]] %s6163_s3  ;;  %s6061_s22 = smov 16  }
   0xf   :  { %7259 = sst [smem:[#allocation70_spill]] %s6168_s8  ;;  %s6062_s28 = smov 17  }
  0x10   :  { %s6183_s24 = sld [smem:[%s7254_s0 + %s6056_s20]]  }
  0x11   :  { %s6188_s30 = sld [smem:[%s7254_s0 + %s6057_s26]]  }
  0x12   :  { %s6193_s6 = sld [smem:[%s7254_s0 + %s6058_s1]]  }
  0x13   :  { %7260 = sst [smem:[#allocation71_spill]] %s6178_s19  ;;  %s68_s19 = sshll.u32 %s6128_s5, 4  ;;  %s69_s19 = int_to_ptr.vmem [resolvable:$true] %s68_s19 }
  0x14   :  { %s6198_s12 = sld [smem:[%s7254_s0 + %s6059_s7]]   ;;  %s6063_s7 = smov 18  }
  0x15   :  { %s6203_s20 = sld [smem:[%s7254_s0 + %s6060_s15]]   ;;  %s6064_s15 = smov 19  }
  0x16   :  { %s6208_s27 = sld [smem:[%s7254_s0 + %s6061_s22]]   ;;  %s6065_s22 = smov 20  }
  0x17   :  { %7261 = sst [smem:[#allocation72_spill]] %s6188_s30  ;;  %s6072_s30 = smov 27  }
  0x18   :  { %s6213_s4 = sld [smem:[%s7254_s0 + %s6062_s28]]   ;;  %s6066_s28 = smov 21  }
  0x19   :  { %s6218_s3 = sld [smem:[%s7254_s0 + %s6063_s7]]   ;;  %s6067_s7 = smov 22  }
  0x1a   :  { %7262 = sst [smem:[#allocation73_spill]] %s6198_s12  ;;  %p5425_p1 = scmp.lt.s32.totalorder %s69_s19, %s69_s19 }
  0x1b   :  { %s6223_s12 = sld [smem:[%s7254_s0 + %s6064_s15]]   ;;  %s6068_s15 = smov 23  }
  0x1c   :  { %7263 = sst [smem:[#allocation74_spill]] %s6208_s27 }
  0x1d   :  { %s6228_s27 = sld [smem:[%s7254_s0 + %s6065_s22]]   ;;  %s6069_s22 = smov 24  }
  0x1e   :  { %s6233_s10 = sld [smem:[%s7254_s0 + %s6066_s28]]   ;;  %s6070_s28 = smov 25  }
  0x1f   :  { %7264 = sst [smem:[#allocation75_spill]] %s6218_s3  ;;  %s6071_s3 = smov 26  }
  0x20   :  { %s6238_s16 = sld [smem:[%s7254_s0 + %s6067_s7]]  }
  0x21   :  { %s6243_s23 = sld [smem:[%s7254_s0 + %s6068_s15]]   ;;  %s5420_s15 = scalar_lea.vmem %s69_s19, 16 }
  0x22   :  { %s6248_s1 = sld [smem:[%s7254_s0 + %s6069_s22]]   ;;  %p5421_p0 = scmp.ne.s32.totalorder %s69_s19, %s5420_s15 }
  0x23   :  { %7265 = sst [smem:[#allocation76_spill]] %s6228_s27  ;;  %s6073_s27 = smov 28  }
  0x24   :  { %s6253_s8 = sld [smem:[%s7254_s0 + %s6070_s28]]   ;;  %s6074_s28 = smov 29  }
  0x25   :  { %s6263_s25 = sld [smem:[%s7254_s0 + %s6072_s30]]   ;;  %p5426_p2 = scmp.lt.s32.totalorder %s5420_s15, %s5420_s15 }
  0x26   :  { %7266 = sst [smem:[#allocation77_spill]] %s6238_s16 }
  0x27   :  { %s6258_s16 = sld [smem:[%s7254_s0 + %s6071_s3]]   ;;  %s6075_s3 = smov 31  }
  0x28   :  { %7267 = sst [smem:[#allocation78_spill]] %s6248_s1  ;;  %p5427_p3 = por %p5426_p2, %p5425_p1 }
  0x29   :  { %s6268_s1 = sld [smem:[%s7254_s0 + %s6073_s27]]  }
  0x2a   :  { %s6274_s7 = sld [smem:[%s7254_s0 + %s6074_s28]]   ;;  %p5428_p4 = pnand %p5427_p3, %p5421_p0 }
  0x2b   :  { %s6279_s30 = sld [smem:[%s7254_s0 + %s6075_s3]]  }
  0x2d   :  { %7268 = sst [smem:[#allocation79_spill]] %s6258_s16 }
  0x2e   :  { %5431 = shalt.err (!%p5428_p4)  }
  0x2f   :  { %s6076_s5 = smov [#allocation3]   ;;  %s6077_s18 = smov 30  }
  0x30   :  { %71 = dma.vmem_to_smem %s69_s19, 16, %s6076_s5, [#allocation2] }
  0x31   :  { %s4728_s22 = sld [smem:[%s7254_s0 + %s6077_s18]]  }
  0x37   :  { %v72_v0 = vstv %s4728_s22 }
  0x38   :  { %73 = vst [vmem:[#allocation4] sm:$0x1] %v72_v0 }
  0x39   :  { %6012 = dma.done.wait [#allocation2], 16 }
  0x3a   :  { %6013 = vsyncadd [#allocation2], 4294967280 }
  0x3b   :  { %75 = sfence }
  0x3c   :  { %76 = vsyncpa [#allocation6], 0 }
  0x3d   :  { %77 = vsyncpa [#allocation9], 0 }
  0x3e   :  { %78 = vsyncpa [#allocation12], 0 }
  0x3f   :  { %79 = vsyncpa [#allocation15], 0 }
  0x40   :  { %80 = vsyncpa [#allocation18], 0 }
  0x41   :  { %81 = vsyncpa [#allocation21], 0 }
  0x42   :  { %82 = vsyncpa [#allocation24], 0 }
  0x43   :  { %83 = vsyncpa [#allocation27], 0 }
  0x44   :  { %84 = vsyncpa [#allocation30], 0 }
  0x45   :  { %85 = vsyncpa [#allocation33], 0 }
  0x46   :  { %86 = vsyncpa [#allocation36], 0 }
  0x47   :  { %87 = vsyncpa [#allocation39], 0 }
  0x48   :  { %88 = vsyncpa [#allocation42], 0 }
  0x49   :  { %89 = vsyncpa [#allocation45], 0 }
  0x4a   :  { %90 = vsyncpa [#allocation48], 0 }
  0x4b   :  { %91 = vsyncpa [#allocation7], 0  ;;  %s6078_s0 = smov [#allocation8]   ;;  %s6079_s26 = smov [#allocation11]  }
  0x4c   :  { %s109_s16 = sshll.u32 %s6078_s0, 4  ;;  %s134_s19 = sshll.u32 %s6079_s26, 4  ;;  %s110_s16 = int_to_ptr.vmem [resolvable:$true] %s109_s16  ;;  %s135_s19 = int_to_ptr.vmem [resolvable:$true] %s134_s19 }
  0x4d   :  { %s5440_s28 = scalar_lea.vmem %s110_s16, 151296  ;;  %p5445_p6 = scmp.lt.s32.totalorder %s110_s16, %s110_s16 }
  0x4e   :  { %p5441_p5 = scmp.ne.s32.totalorder %s110_s16, %s5440_s28  ;;  %p5446_p7 = scmp.lt.s32.totalorder %s5440_s28, %s5440_s28 }
  0x50   :  { %p5447_p8 = por %p5446_p7, %p5445_p6 }
  0x52   :  { %p5448_p9 = pnand %p5447_p8, %p5441_p5 }
  0x54   :  { %5451 = shalt.err (!%p5448_p9)
}
  0x55   :  { %s6080_s2 = smov 128   ;;  %s6081_s3 = smov 8  }
  0x56   :  { %115 = dma.hbm_to_vmem [thread:$0]  %s6138_s13, 151296, %s110_s16, [#allocation9], %s6080_s2, %s6080_s2, %s6081_s3  }
  0x57   :  { %s5460_s11 = scalar_lea.vmem %s135_s19, 64  ;;  %p5465_p11 = scmp.lt.s32.totalorder %s135_s19, %s135_s19 }
  0x58   :  { %p5461_p10 = scmp.ne.s32.totalorder %s135_s19, %s5460_s11  ;;  %p5466_p12 = scmp.lt.s32.totalorder %s5460_s11, %s5460_s11 }
  0x5a   :  { %p5467_p13 = por %p5466_p12, %p5465_p11 }
  0x5c   :  { %p5468_p0 = pnand %p5467_p13, %p5461_p10 }
  0x5e   :  { %5471 = shalt.err (!%p5468_p0)
}
  0x5f   :  { %137 = dma.hbm_to_vmem [thread:$0]  %s6148_s21, 64, %s135_s19, [#allocation12]  }
  0x60   :  { %s6082_s15 = smov [#allocation14]   ;;  %s6083_s18 = smov [#allocation17]  }
  0x61   :  { %s155_s5 = sshll.u32 %s6082_s15, 4  ;;  %s179_s17 = sshll.u32 %s6083_s18, 4  ;;  %s156_s5 = int_to_ptr.vmem [resolvable:$true] %s155_s5  ;;  %s180_s17 = int_to_ptr.vmem [resolvable:$true] %s179_s17 }
  0x62   :  { %s5480_s27 = scalar_lea.vmem %s156_s5, 256  ;;  %p5485_p2 = scmp.lt.s32.totalorder %s156_s5, %s156_s5 }
  0x63   :  { %p5481_p1 = scmp.ne.s32.totalorder %s156_s5, %s5480_s27  ;;  %p5486_p3 = scmp.lt.s32.totalorder %s5480_s27, %s5480_s27 }
  0x65   :  { %p5487_p4 = por %p5486_p3, %p5485_p2 }
  0x67   :  { %p5488_p5 = pnand %p5487_p4, %p5481_p1 }
  0x69   :  { %5491 = shalt.err (!%p5488_p5)
}
  0x6a   :  { %161 = dma.hbm_to_vmem [thread:$0]  %s6158_s29, 256, %s156_s5, [#allocation15], %s6080_s2, %s6080_s2, %s6081_s3  }
  0x6b   :  { %s5500_s13 = scalar_lea.vmem %s180_s17, 1536  ;;  %p5505_p7 = scmp.lt.s32.totalorder %s180_s17, %s180_s17 }
  0x6c   :  { %p5501_p6 = scmp.ne.s32.totalorder %s180_s17, %s5500_s13  ;;  %p5506_p8 = scmp.lt.s32.totalorder %s5500_s13, %s5500_s13 }
  0x6e   :  { %p5507_p9 = por %p5506_p8, %p5505_p7 }
  0x70   :  { %p5508_p10 = pnand %p5507_p9, %p5501_p6 }
  0x72   :  { %5511 = shalt.err (!%p5508_p10)
}
  0x73   :  { %185 = dma.hbm_to_vmem [thread:$0]  %s6173_s14, 1536, %s180_s17, [#allocation18], %s6080_s2, %s6080_s2, %s6081_s3  }
  0x74   :  { %s6084_s21 = smov [#allocation20]   ;;  %s6085_s0 = smov [#allocation23]  }
  0x75   :  { %s202_s22 = sshll.u32 %s6084_s21, 4  ;;  %s222_s16 = sshll.u32 %s6085_s0, 4  ;;  %s203_s22 = int_to_ptr.vmem [resolvable:$true] %s202_s22  ;;  %s223_s16 = int_to_ptr.vmem [resolvable:$true] %s222_s16 }
  0x76   :  { %s5520_s26 = scalar_lea.vmem %s203_s22, 32  ;;  %p5525_p12 = scmp.lt.s32.totalorder %s203_s22, %s203_s22 }
  0x77   :  { %p5521_p11 = scmp.ne.s32.totalorder %s203_s22, %s5520_s26  ;;  %p5526_p13 = scmp.lt.s32.totalorder %s5520_s26, %s5520_s26 }
  0x79   :  { %p5527_p0 = por %p5526_p13, %p5525_p12 }
  0x7b   :  { %p5528_p1 = pnand %p5527_p0, %p5521_p11 }
  0x7d   :  { %5531 = shalt.err (!%p5528_p1)
}
  0x7e   :  { %205 = dma.hbm_to_vmem [thread:$0]  %s6183_s24, 32, %s203_s22, [#allocation21]  }
  0x7f   :  { %s5540_s29 = scalar_lea.vmem %s223_s16, 16  ;;  %s5544_s19 = scalar_lea.vmem %s223_s16, 32 }
  0x80   :  { %p5541_p2 = scmp.ne.s32.totalorder %s223_s16, %s5540_s29  ;;  %p5545_p3 = scmp.lt.s32.totalorder %s223_s16, %s223_s16 }
  0x81   :  { %p5546_p4 = scmp.lt.s32.totalorder %s5544_s19, %s5540_s29 }
  0x83   :  { %p5547_p5 = por %p5546_p4, %p5545_p3 }
  0x85   :  { %p5548_p6 = pnand %p5547_p5, %p5541_p2 }
  0x87   :  { %5551 = shalt.err (!%p5548_p6)
}
  0x88   :  { %225 = dma.hbm_to_vmem [thread:$0]  %s6193_s6, 16, %s223_s16, [#allocation24]  }
  0x89   :  { %s6086_s14 = smov [#allocation26]   ;;  %s6087_s11 = smov [#allocation29]  }
  0x8a   :  { %s241_s28 = sshll.u32 %s6086_s14, 4  ;;  %s263_s15 = sshll.u32 %s6087_s11, 4  ;;  %s242_s28 = int_to_ptr.vmem [resolvable:$true] %s241_s28  ;;  %s264_s15 = int_to_ptr.vmem [resolvable:$true] %s263_s15 }
  0x8b   :  { %s5560_s5 = scalar_lea.vmem %s242_s28, 512  ;;  %p5565_p8 = scmp.lt.s32.totalorder %s242_s28, %s242_s28 }
  0x8c   :  { %p5561_p7 = scmp.ne.s32.totalorder %s242_s28, %s5560_s5  ;;  %p5566_p9 = scmp.lt.s32.totalorder %s5560_s5, %s5560_s5 }
  0x8e   :  { %p5567_p10 = por %p5566_p9, %p5565_p8 }
  0x90   :  { %p5568_p11 = pnand %p5567_p10, %p5561_p7 }
  0x92   :  { %5571 = shalt.err (!%p5568_p11)
}
  0x93   :  { %247 = dma.hbm_to_vmem [thread:$0]  %s6203_s20, 512, %s242_s28, [#allocation27], %s6080_s2, %s6080_s2, %s6081_s3  }
  0x94   :  { %s5580_s24 = scalar_lea.vmem %s264_s15, 2048  ;;  %p5585_p13 = scmp.lt.s32.totalorder %s264_s15, %s264_s15 }
  0x95   :  { %p5581_p12 = scmp.ne.s32.totalorder %s264_s15, %s5580_s24  ;;  %p5586_p0 = scmp.lt.s32.totalorder %s5580_s24, %s5580_s24 }
  0x97   :  { %p5587_p1 = por %p5586_p0, %p5585_p13 }
  0x99   :  { %p5588_p2 = pnand %p5587_p1, %p5581_p12 }
  0x9b   :  { %5591 = shalt.err (!%p5588_p2)
}
  0x9c   :  { %s6088_s6 = smov 256   ;;  %s6089_s18 = smov 16  }
  0x9d   :  { %269 = dma.hbm_to_vmem [thread:$0]  %s6213_s4, 2048, %s264_s15, [#allocation30], %s6088_s6, %s6088_s6, %s6089_s18  }
  0x9e   :  { %s6090_s17 = smov [#allocation32]   ;;  %s6091_s13 = smov [#allocation35]  }
  0x9f   :  { %s285_s27 = sshll.u32 %s6090_s17, 4  ;;  %s307_s21 = sshll.u32 %s6091_s13, 4  ;;  %s286_s27 = int_to_ptr.vmem [resolvable:$true] %s285_s27  ;;  %s308_s21 = int_to_ptr.vmem [resolvable:$true] %s307_s21 }
  0xa0   :  { %s5600_s22 = scalar_lea.vmem %s286_s27, 512  ;;  %p5605_p4 = scmp.lt.s32.totalorder %s286_s27, %s286_s27 }
  0xa1   :  { %p5601_p3 = scmp.ne.s32.totalorder %s286_s27, %s5600_s22  ;;  %p5606_p5 = scmp.lt.s32.totalorder %s5600_s22, %s5600_s22 }
  0xa3   :  { %p5607_p6 = por %p5606_p5, %p5605_p4 }
  0xa5   :  { %p5608_p7 = pnand %p5607_p6, %p5601_p3 }
  0xa7   :  { %5611 = shalt.err (!%p5608_p7)
}
  0xa8   :  { %291 = dma.hbm_to_vmem [thread:$0]  %s6223_s12, 512, %s286_s27, [#allocation33], %s6080_s2, %s6080_s2, %s6081_s3  }
  0xa9   :  { %s5620_s20 = scalar_lea.vmem %s308_s21, 512  ;;  %p5625_p9 = scmp.lt.s32.totalorder %s308_s21, %s308_s21 }
  0xaa   :  { %p5621_p8 = scmp.ne.s32.totalorder %s308_s21, %s5620_s20  ;;  %p5626_p10 = scmp.lt.s32.totalorder %s5620_s20, %s5620_s20 }
  0xac   :  { %p5627_p11 = por %p5626_p10, %p5625_p9 }
  0xae   :  { %p5628_p12 = pnand %p5627_p11, %p5621_p8 }
  0xb0   :  { %5631 = shalt.err (!%p5628_p12)
}
  0xb1   :  { %313 = dma.hbm_to_vmem [thread:$0]  %s6233_s10, 512, %s308_s21, [#allocation36], %s6080_s2, %s6080_s2, %s6081_s3  }
  0xb2   :  { %s6092_s4 = smov [#allocation38]   ;;  %s6093_s16 = smov [#allocation41]  }
  0xb3   :  { %s330_s0 = sshll.u32 %s6092_s4, 4  ;;  %s352_s26 = sshll.u32 %s6093_s16, 4  ;;  %s331_s0 = int_to_ptr.vmem [resolvable:$true] %s330_s0  ;;  %s353_s26 = int_to_ptr.vmem [resolvable:$true] %s352_s26 }
  0xb4   :  { %s5640_s29 = scalar_lea.vmem %s331_s0, 32  ;;  %p5645_p0 = scmp.lt.s32.totalorder %s331_s0, %s331_s0 }
  0xb5   :  { %p5641_p13 = scmp.ne.s32.totalorder %s331_s0, %s5640_s29  ;;  %p5646_p1 = scmp.lt.s32.totalorder %s5640_s29, %s5640_s29 }
  0xb7   :  { %p5647_p2 = por %p5646_p1, %p5645_p0 }
  0xb9   :  { %p5648_p3 = pnand %p5647_p2, %p5641_p13 }
  0xbb   :  { %5651 = shalt.err (!%p5648_p3)
}
  0xbc   :  { %333 = dma.hbm_to_vmem [thread:$0]  %s6243_s23, 32, %s331_s0, [#allocation39]  }
  0xbd   :  { %s5660_s12 = scalar_lea.vmem %s353_s26, 16  ;;  %s5664_s19 = scalar_lea.vmem %s353_s26, 32 }
  0xbe   :  { %p5661_p4 = scmp.ne.s32.totalorder %s353_s26, %s5660_s12  ;;  %p5665_p5 = scmp.lt.s32.totalorder %s353_s26, %s353_s26 }
  0xbf   :  { %p5666_p6 = scmp.lt.s32.totalorder %s5664_s19, %s5660_s12 }
  0xc1   :  { %p5667_p7 = por %p5666_p6, %p5665_p5 }
  0xc3   :  { %p5668_p8 = pnand %p5667_p7, %p5661_p4 }
  0xc5   :  { %5671 = shalt.err (!%p5668_p8)
}
  0xc6   :  { %355 = dma.hbm_to_vmem [thread:$0]  %s6253_s8, 16, %s353_s26, [#allocation42]  }
  0xc7   :  { %s6094_s10 = smov [#allocation44]   ;;  %s6095_s28 = smov [#allocation5]  }
  0xc8   :  { %s374_s14 = sshll.u32 %s6094_s10, 4  ;;  %s97_s11 = sshll.u32 %s6095_s28, 4  ;;  %s375_s14 = int_to_ptr.vmem [resolvable:$true] %s374_s14  ;;  %s98_s11 = int_to_ptr.vmem [resolvable:$true] %s97_s11 }
  0xc9   :  { %s5680_s15 = scalar_lea.vmem %s375_s14, 16  ;;  %s5684_s5 = scalar_lea.vmem %s375_s14, 32 }
  0xca   :  { %p5681_p9 = scmp.ne.s32.totalorder %s375_s14, %s5680_s15  ;;  %p5685_p10 = scmp.lt.s32.totalorder %s375_s14, %s375_s14 }
  0xcb   :  { %p5686_p11 = scmp.lt.s32.totalorder %s5684_s5, %s5680_s15 }
  0xcd   :  { %p5687_p12 = por %p5686_p11, %p5685_p10 }
  0xcf   :  { %p5688_p13 = pnand %p5687_p12, %p5681_p9 }
  0xd1   :  { %5691 = shalt.err (!%p5688_p13)
}
  0xd2   :  { %377 = dma.hbm_to_vmem [thread:$0]  %s6263_s25, 16, %s375_s14, [#allocation45]  }
  0xd3   :  { %s5700_s23 = scalar_lea.vmem %s98_s11, 24704  ;;  %p5705_p1 = scmp.lt.s32.totalorder %s98_s11, %s98_s11 }
  0xd4   :  { %p5701_p0 = scmp.ne.s32.totalorder %s98_s11, %s5700_s23  ;;  %p5706_p2 = scmp.lt.s32.totalorder %s5700_s23, %s5700_s23 }
  0xd6   :  { %p5707_p3 = por %p5706_p2, %p5705_p1 }
  0xd8   :  { %p5708_p4 = pnand %p5707_p3, %p5701_p0 }
  0xda   :  { %5711 = shalt.err (!%p5708_p4)
}
  0xdb   :  { %103 = dma.hbm_to_vmem [thread:$0]  %s6133_s9, 24704, %s98_s11, [#allocation6], %s6080_s2, %s6080_s2, %s6081_s3  }
  0xdc   :  { %s6096_s8 = smov [#allocation10]   ;;  %s6097_s6 = smov [#allocation13]  }
  0xdd   :  { %s121_s24 = sshll.u32 %s6096_s8, 4  ;;  %s143_s18 = sshll.u32 %s6097_s6, 4  ;;  %s122_s24 = int_to_ptr.vmem [resolvable:$true] %s121_s24  ;;  %s144_s18 = int_to_ptr.vmem [resolvable:$true] %s143_s18 }
  0xde   :  { %s5720_s17 = scalar_lea.vmem %s122_s24, 14720  ;;  %p5725_p6 = scmp.lt.s32.totalorder %s122_s24, %s122_s24 }
  0xdf   :  { %p5721_p5 = scmp.ne.s32.totalorder %s122_s24, %s5720_s17  ;;  %p5726_p7 = scmp.lt.s32.totalorder %s5720_s17, %s5720_s17 }
  0xe1   :  { %p5727_p8 = por %p5726_p7, %p5725_p6 }
  0xe3   :  { %p5728_p9 = pnand %p5727_p8, %p5721_p5 }
  0xe5   :  { %5731 = shalt.err (!%p5728_p9)
}
  0xe6   :  { %s7269_s25 = sld [smem:[#allocation67_spill]]  ;;  %s5740_s27 = scalar_lea.vmem %s144_s18, 256 }
  0xe7   :  { %p5741_p10 = scmp.ne.s32.totalorder %s144_s18, %s5740_s27  ;;  %p5745_p11 = scmp.lt.s32.totalorder %s144_s18, %s144_s18 }
  0xe8   :  { %p5746_p12 = scmp.lt.s32.totalorder %s5740_s27, %s5740_s27 }
  0xea   :  { %p5747_p13 = por %p5746_p12, %p5745_p11 }
  0xec   :  { %127 = dma.hbm_to_vmem [thread:$0]  %s7269_s25, 14720, %s122_s24, [#allocation9], %s6080_s2, %s6080_s2, %s6081_s3  }
  0xed   :  { %p5748_p0 = pnand %p5747_p13, %p5741_p10 }
  0xef   :  { %5751 = shalt.err (!%p5748_p0)
}
  0xf0   :  { %s7270_s9 = sld [smem:[#allocation68_spill]]  ;;  %s6098_s13 = smov [#allocation16]  }
  0xf1   :  { %s170_s21 = sshll.u32 %s6098_s13, 4  ;;  %s6099_s22 = smov [#allocation19]   ;;  %s171_s21 = int_to_ptr.vmem [resolvable:$true] %s170_s21 }
  0xf2   :  { %s192_s20 = sshll.u32 %s6099_s22, 4  ;;  %s5760_s4 = scalar_lea.vmem %s171_s21, 32  ;;  %s193_s20 = int_to_ptr.vmem [resolvable:$true] %s192_s20 }
  0xf3   :  { %p5761_p1 = scmp.ne.s32.totalorder %s171_s21, %s5760_s4  ;;  %p5765_p2 = scmp.lt.s32.totalorder %s171_s21, %s171_s21 }
  0xf4   :  { %p5766_p3 = scmp.lt.s32.totalorder %s5760_s4, %s5760_s4 }
  0xf6   :  { %149 = dma.hbm_to_vmem [thread:$0]  %s7270_s9, 256, %s144_s18, [#allocation12], %s6080_s2, %s6080_s2, %s6081_s3  }
  0xf7   :  { %p5767_p4 = por %p5766_p3, %p5765_p2 }
  0xf9   :  { %p5768_p5 = pnand %p5767_p4, %p5761_p1 }
  0xfb   :  { %5771 = shalt.err (!%p5768_p5)
}
  0xfc   :  { %s7271_s0 = sld [smem:[#allocation70_spill]]  ;;  %s5780_s16 = scalar_lea.vmem %s193_s20, 16 }
  0xfd   :  { %p5781_p6 = scmp.ne.s32.totalorder %s193_s20, %s5780_s16  ;;  %s5784_s26 = scalar_lea.vmem %s193_s20, 32 }
  0xfe   :  { %p5785_p7 = scmp.lt.s32.totalorder %s193_s20, %s193_s20  ;;  %p5786_p8 = scmp.lt.s32.totalorder %s5784_s26, %s5780_s16 }
 0x100   :  { %p5787_p9 = por %p5786_p8, %p5785_p7 }
 0x102   :  { %173 = dma.hbm_to_vmem [thread:$0]  %s7271_s0, 32, %s171_s21, [#allocation15]  }
 0x103   :  { %p5788_p10 = pnand %p5787_p9, %p5781_p6 }
 0x105   :  { %5791 = shalt.err (!%p5788_p10)
}
 0x106   :  { %s7272_s29 = sld [smem:[#allocation71_spill]]  ;;  %s6100_s12 = smov [#allocation22]  }
 0x107   :  { %s212_s19 = sshll.u32 %s6100_s12, 4  ;;  %s6101_s10 = smov [#allocation25]   ;;  %s213_s19 = int_to_ptr.vmem [resolvable:$true] %s212_s19 }
 0x108   :  { %s232_s14 = sshll.u32 %s6101_s10, 4  ;;  %s5800_s28 = scalar_lea.vmem %s213_s19, 64  ;;  %s233_s14 = int_to_ptr.vmem [resolvable:$true] %s232_s14 }
 0x109   :  { %p5801_p11 = scmp.ne.s32.totalorder %s213_s19, %s5800_s28  ;;  %p5805_p12 = scmp.lt.s32.totalorder %s213_s19, %s213_s19 }
 0x10a   :  { %p5806_p13 = scmp.lt.s32.totalorder %s5800_s28, %s5800_s28 }
 0x10c   :  { %195 = dma.hbm_to_vmem [thread:$0]  %s7272_s29, 16, %s193_s20, [#allocation18]  }
 0x10d   :  { %p5807_p0 = por %p5806_p13, %p5805_p12 }
 0x10f   :  { %p5808_p1 = pnand %p5807_p0, %p5801_p11 }
 0x111   :  { %5811 = shalt.err (!%p5808_p1)
}
 0x112   :  { %s7273_s11 = sld [smem:[#allocation72_spill]]  ;;  %s5820_s15 = scalar_lea.vmem %s233_s14, 32 }
 0x113   :  { %p5821_p2 = scmp.ne.s32.totalorder %s233_s14, %s5820_s15  ;;  %p5825_p3 = scmp.lt.s32.totalorder %s233_s14, %s233_s14 }
 0x114   :  { %p5826_p4 = scmp.lt.s32.totalorder %s5820_s15, %s5820_s15 }
 0x116   :  { %p5827_p5 = por %p5826_p4, %p5825_p3 }
 0x118   :  { %215 = dma.hbm_to_vmem [thread:$0]  %s7273_s11, 64, %s213_s19, [#allocation21]  }
 0x119   :  { %p5828_p6 = pnand %p5827_p5, %p5821_p2 }
 0x11b   :  { %5831 = shalt.err (!%p5828_p6)
}
 0x11c   :  { %s7274_s5 = sld [smem:[#allocation73_spill]]  ;;  %s6102_s23 = smov [#allocation28]  }
 0x11d   :  { %s254_s8 = sshll.u32 %s6102_s23, 4  ;;  %s6103_s24 = smov [#allocation31]   ;;  %s255_s8 = int_to_ptr.vmem [resolvable:$true] %s254_s8 }
 0x11e   :  { %s276_s6 = sshll.u32 %s6103_s24, 4  ;;  %s5840_s18 = scalar_lea.vmem %s255_s8, 16  ;;  %s277_s6 = int_to_ptr.vmem [resolvable:$true] %s276_s6 }
 0x11f   :  { %p5841_p7 = scmp.ne.s32.totalorder %s255_s8, %s5840_s18  ;;  %s5844_s17 = scalar_lea.vmem %s255_s8, 32 }
 0x120   :  { %p5845_p8 = scmp.lt.s32.totalorder %s255_s8, %s255_s8  ;;  %p5846_p9 = scmp.lt.s32.totalorder %s5844_s17, %s5840_s18 }
 0x122   :  { %235 = dma.hbm_to_vmem [thread:$0]  %s7274_s5, 32, %s233_s14, [#allocation24]  }
 0x123   :  { %p5847_p10 = por %p5846_p9, %p5845_p8 }
 0x125   :  { %p5848_p11 = pnand %p5847_p10, %p5841_p7 }
 0x127   :  { %5851 = shalt.err (!%p5848_p11)
}
 0x128   :  { %s7275_s25 = sld [smem:[#allocation74_spill]]  ;;  %s5860_s27 = scalar_lea.vmem %s277_s6, 16 }
 0x129   :  { %p5861_p12 = scmp.ne.s32.totalorder %s277_s6, %s5860_s27  ;;  %s5864_s9 = scalar_lea.vmem %s277_s6, 32 }
 0x12a   :  { %p5865_p13 = scmp.lt.s32.totalorder %s277_s6, %s277_s6  ;;  %p5866_p0 = scmp.lt.s32.totalorder %s5864_s9, %s5860_s27 }
 0x12c   :  { %p5867_p1 = por %p5866_p0, %p5865_p13 }
 0x12e   :  { %257 = dma.hbm_to_vmem [thread:$0]  %s7275_s25, 16, %s255_s8, [#allocation27]  }
 0x12f   :  { %p5868_p2 = pnand %p5867_p1, %p5861_p12 }
 0x131   :  { %5871 = shalt.err (!%p5868_p2)
}
 0x132   :  { %s7276_s13 = sld [smem:[#allocation75_spill]]  ;;  %s6104_s21 = smov [#allocation34]  }
 0x133   :  { %s298_s22 = sshll.u32 %s6104_s21, 4  ;;  %s6105_s20 = smov [#allocation37]   ;;  %s299_s22 = int_to_ptr.vmem [resolvable:$true] %s298_s22 }
 0x134   :  { %s320_s4 = sshll.u32 %s6105_s20, 4  ;;  %s5880_s0 = scalar_lea.vmem %s299_s22, 16  ;;  %s321_s4 = int_to_ptr.vmem [resolvable:$true] %s320_s4 }
 0x135   :  { %p5881_p3 = scmp.ne.s32.totalorder %s299_s22, %s5880_s0  ;;  %s5884_s16 = scalar_lea.vmem %s299_s22, 32 }
 0x136   :  { %p5885_p4 = scmp.lt.s32.totalorder %s299_s22, %s299_s22  ;;  %p5886_p5 = scmp.lt.s32.totalorder %s5884_s16, %s5880_s0 }
 0x138   :  { %279 = dma.hbm_to_vmem [thread:$0]  %s7276_s13, 16, %s277_s6, [#allocation30]  }
 0x139   :  { %p5887_p6 = por %p5886_p5, %p5885_p4 }
 0x13b   :  { %p5888_p7 = pnand %p5887_p6, %p5881_p3 }
 0x13d   :  { %5891 = shalt.err (!%p5888_p7)
}
 0x13e   :  { %s7277_s26 = sld [smem:[#allocation76_spill]]  ;;  %s5900_s29 = scalar_lea.vmem %s321_s4, 16 }
 0x13f   :  { %p5901_p8 = scmp.ne.s32.totalorder %s321_s4, %s5900_s29  ;;  %s5904_s12 = scalar_lea.vmem %s321_s4, 32 }
 0x140   :  { %p5905_p9 = scmp.lt.s32.totalorder %s321_s4, %s321_s4  ;;  %p5906_p10 = scmp.lt.s32.totalorder %s5904_s12, %s5900_s29 }
 0x142   :  { %p5907_p11 = por %p5906_p10, %p5905_p9 }
 0x144   :  { %301 = dma.hbm_to_vmem [thread:$0]  %s7277_s26, 16, %s299_s22, [#allocation33]  }
 0x145   :  { %p5908_p12 = pnand %p5907_p11, %p5901_p8 }
 0x147   :  { %5911 = shalt.err (!%p5908_p12)
}
 0x148   :  { %s7278_s19 = sld [smem:[#allocation77_spill]]  ;;  %s6106_s10 = smov [#allocation40]  }
 0x149   :  { %s339_s14 = sshll.u32 %s6106_s10, 4  ;;  %s6107_s28 = smov [#allocation43]   ;;  %s340_s14 = int_to_ptr.vmem [resolvable:$true] %s339_s14 }
 0x14a   :  { %s361_s11 = sshll.u32 %s6107_s28, 4  ;;  %s5920_s15 = scalar_lea.vmem %s340_s14, 512  ;;  %s362_s11 = int_to_ptr.vmem [resolvable:$true] %s361_s11 }
 0x14b   :  { %p5921_p13 = scmp.ne.s32.totalorder %s340_s14, %s5920_s15  ;;  %p5925_p0 = scmp.lt.s32.totalorder %s340_s14, %s340_s14 }
 0x14c   :  { %p5926_p1 = scmp.lt.s32.totalorder %s5920_s15, %s5920_s15 }
 0x14e   :  { %323 = dma.hbm_to_vmem [thread:$0]  %s7278_s19, 16, %s321_s4, [#allocation36]  }
 0x14f   :  { %p5927_p2 = por %p5926_p1, %p5925_p0 }
 0x151   :  { %p5928_p3 = pnand %p5927_p2, %p5921_p13 }
 0x153   :  { %5931 = shalt.err (!%p5928_p3)
}
 0x154   :  { %s7279_s5 = sld [smem:[#allocation78_spill]]  ;;  %s5940_s23 = scalar_lea.vmem %s362_s11, 512 }
 0x155   :  { %p5941_p4 = scmp.ne.s32.totalorder %s362_s11, %s5940_s23  ;;  %p5945_p5 = scmp.lt.s32.totalorder %s362_s11, %s362_s11 }
 0x156   :  { %p5946_p6 = scmp.lt.s32.totalorder %s5940_s23, %s5940_s23 }
 0x158   :  { %p5947_p7 = por %p5946_p6, %p5945_p5 }
 0x15a   :  { %345 = dma.hbm_to_vmem [thread:$0]  %s7279_s5, 512, %s340_s14, [#allocation39], %s6080_s2, %s6080_s2, %s6081_s3  }
 0x15b   :  { %p5948_p8 = pnand %p5947_p7, %p5941_p4 }
 0x15d   :  { %5951 = shalt.err (!%p5948_p8)
}
 0x15e   :  { %s7280_s8 = sld [smem:[#allocation79_spill]]  ;;  %s6108_s24 = smov [#allocation46]  }
 0x15f   :  { %s384_s6 = sshll.u32 %s6108_s24, 4  ;;  %s6109_s18 = smov [#allocation47]   ;;  %s385_s6 = int_to_ptr.vmem [resolvable:$true] %s384_s6 }
 0x160   :  { %s394_s17 = sshll.u32 %s6109_s18, 4  ;;  %s5960_s25 = scalar_lea.vmem %s385_s6, 32  ;;  %s395_s17 = int_to_ptr.vmem [resolvable:$true] %s394_s17 }
 0x161   :  { %p5961_p9 = scmp.ne.s32.totalorder %s385_s6, %s5960_s25  ;;  %p5965_p10 = scmp.lt.s32.totalorder %s385_s6, %s385_s6 }
 0x162   :  { %p5966_p11 = scmp.lt.s32.totalorder %s5960_s25, %s5960_s25 }
 0x164   :  { %367 = dma.hbm_to_vmem [thread:$0]  %s7280_s8, 512, %s362_s11, [#allocation42], %s6080_s2, %s6080_s2, %s6081_s3  }
 0x165   :  { %p5967_p12 = por %p5966_p11, %p5965_p10 }
 0x167   :  { %p5968_p13 = pnand %p5967_p12, %p5961_p9 }
 0x169   :  { %5971 = shalt.err (!%p5968_p13)
}
 0x16a   :  { %387 = dma.hbm_to_vmem [thread:$0]  %s6268_s1, 32, %s385_s6, [#allocation45]  }
 0x16b   :  { %s5980_s27 = scalar_lea.vmem %s395_s17, 32  ;;  %p5985_p1 = scmp.lt.s32.totalorder %s395_s17, %s395_s17 }
 0x16c   :  { %p5981_p0 = scmp.ne.s32.totalorder %s395_s17, %s5980_s27  ;;  %p5986_p2 = scmp.lt.s32.totalorder %s5980_s27, %s5980_s27 }
 0x16e   :  { %p5987_p3 = por %p5986_p2, %p5985_p1 }
 0x170   :  { %p5988_p4 = pnand %p5987_p3, %p5981_p0 }
 0x172   :  { %5991 = shalt.err (!%p5988_p4)
}
 0x173   :  { %397 = dma.hbm_to_vmem [thread:$0]  %s6274_s7, 32, %s395_s17, [#allocation48]  }
 0x174   :  { %6014 = dma.done.wait [#allocation6], 24704  }
 0x175   :  { %6015 = vsyncadd [#allocation6], 4294942592 }
 0x176   :  { %6016 = dma.done.wait [#allocation9], 166016  }
 0x177   :  { %6017 = vsyncadd [#allocation9], 4294801280 }
 0x178   :  { %6018 = dma.done.wait [#allocation12], 320  }
 0x179   :  { %6019 = vsyncadd [#allocation12], 4294966976 }
 0x17a   :  { %6020 = dma.done.wait [#allocation15], 288  }
 0x17b   :  { %6021 = vsyncadd [#allocation15], 4294967008 }
 0x17c   :  { %6022 = dma.done.wait [#allocation18], 1552  }
 0x17d   :  { %6023 = vsyncadd [#allocation18], 4294965744 }
 0x17e   :  { %6024 = dma.done.wait [#allocation21], 96  }
 0x17f   :  { %6025 = vsyncadd [#allocation21], 4294967200 }
 0x180   :  { %6026 = dma.done.wait [#allocation24], 48  }
 0x181   :  { %6027 = vsyncadd [#allocation24], 4294967248 }
 0x182   :  { %6028 = dma.done.wait [#allocation27], 528  }
 0x183   :  { %6029 = vsyncadd [#allocation27], 4294966768 }
 0x184   :  { %6030 = dma.done.wait [#allocation30], 2064  }
 0x185   :  { %6031 = vsyncadd [#allocation30], 4294965232 }
 0x186   :  { %6032 = dma.done.wait [#allocation33], 528  }
 0x187   :  { %6033 = vsyncadd [#allocation33], 4294966768 }
 0x188   :  { %6034 = dma.done.wait [#allocation36], 528  }
 0x189   :  { %6035 = vsyncadd [#allocation36], 4294966768 }
 0x18a   :  { %6036 = dma.done.wait [#allocation39], 544  }
 0x18b   :  { %6037 = vsyncadd [#allocation39], 4294966752 }
 0x18c   :  { %6038 = dma.done.wait [#allocation42], 528  }
 0x18d   :  { %6039 = vsyncadd [#allocation42], 4294966768 }
 0x18e   :  { %6040 = dma.done.wait [#allocation45], 48  }
 0x18f   :  { %6041 = vsyncadd [#allocation45], 4294967248 }
 0x190   :  { %6042 = dma.done.wait [#allocation48], 32  }
 0x191   :  { %6043 = vsyncadd [#allocation48], 4294967264  ;;  %s4745_s1 = sld [smem:[#allocation3 + $0x10]]  ;;  %vm574_vm0 = vcmask 1040384   ;;  %vm576_vm1 = vcmask 1041408   ;;  %vm578_vm2 = vcmask 1042432  }
 0x192   :  { %s4746_s7 = sld [smem:[#allocation3 + $0x18]]  ;;  %vm580_vm3 = vcmask 1043456   ;;  %vm582_vm4 = vcmask 1044480   ;;  %vm584_vm5 = vcmask 1045504   ;;  %v702_v1 = vld [vmem:[#allocation17 + $0x18] sm:$0xff]  ;;  %v596_v2 = vld [vmem:[#allocation17 + $0x8] sm:$0xff] }
 0x193   :  { %s6345_s2 = sld [smem:[#allocation3 + $0x11]]  ;;  %v701_v3 = vld [vmem:[#allocation17 + $0x10] sm:$0xff]  ;;  %vm586_vm6 = vcmask 1046528   ;;  %4999 = vmatprep.subr.mxu0 %v702_v1  ;;  %5006 = vmatprep.subr.mxu1 %v596_v2  ;;  %v595_v4 = vld [vmem:[#allocation17] sm:$0xff]  ;;  %vm703_vm7 = vcmask 130048   ;;  %v6359_v7 = vld [vmem:[#allocation17 + $0x28] sm:$0xff] }
 0x194   :  { %s6347_s3 = sld [smem:[#allocation3 + $0x19]]  ;;  %5000 = vmatpush3.msra.mxu0 %v702_v1  ;;  %5007 = vmatpush3.msra.mxu1 %v596_v2  ;;  %v6392_v29 = vld [vmem:[#allocation17 + $0x38] sm:$0xff]  ;;  %vm1682_vm8 = vcmask 23552   ;;  %vm2027_vm9 = vcmask 261120   ;;  %vm2029_vm10 = vcmask 523264   ;;  %vm3117_vm11 = vcmask 1041409  }
 0x195   :  { %s6349_s9 = sld [smem:[#allocation3 + $0x12]]  ;;  %5001 = vmatprep.subr.mxu0 %v701_v3  ;;  %5008 = vmatprep.subr.mxu1 %v595_v4  ;;  %vm3120_vm12 = vcmask 1042434   ;;  %vm3123_vm13 = vcmask 1043459   ;;  %vm3126_vm14 = vcmask 1044484   ;;  %vm3129_vm15 = vcmask 1045509  }
 0x196   :  { %s6351_s13 = sld [smem:[#allocation3 + $0x1a]]  ;;  %5002 = vmatpush3.msra.mxu0 %v701_v3  ;;  %5009 = vmatpush3.msra.mxu1 %v595_v4 }
 0x197   :  { %s6353_s21 = sld [smem:[#allocation3 + $0x13]]  ;;  %s598_s22 = scalar_lea.vmem [#allocation8], %s4745_s1  ;;  %5013 = vmatprep.subr.mxu0 %v6359_v7  ;;  %5020 = vmatprep.subr.mxu1 %v6392_v29 }
 0x198   :  { %v599_v5 = vld [vmem:[%s598_s22] sm:$0x1]  ;;  %s6355_s20 = sld [smem:[#allocation3 + $0x1b]]  ;;  %s601_s4 = scalar_lea.vmem [#allocation8], %s4746_s7 }
 0x199   :  { %v602_v6 = vld [vmem:[%s601_s4] sm:$0x1]  ;;  %s6357_s0 = sld [smem:[#allocation3]]  ;;  %s604_s16 = scalar_lea.vmem [#allocation8], %s6345_s2 }
 0x19a   :  { %v605_v8 = vld [vmem:[%s604_s16] sm:$0x1]  ;;  %v646_v9 = vrot.slane %v602_v6, 7  ;;  %s6362_s26 = sld [smem:[#allocation3 + $0x8]]  ;;  %s607_s29 = scalar_lea.vmem [#allocation8], %s6347_s3 }
 0x19b   :  { %v608_v10 = vld [vmem:[%s607_s29] sm:$0x1]  ;;  %v649_v11 = vrot.slane %v605_v8, 6  ;;  %s6365_s12 = sld [smem:[#allocation3 + $0x1]]  ;;  %s610_s19 = scalar_lea.vmem [#allocation8], %s6349_s9 }
 0x19c   :  { %v611_v12 = vld [vmem:[%s610_s19] sm:$0x1]  ;;  %v652_v13 = vrot.slane %v608_v10, 5  ;;  %v687_v14 = vsel %vm574_vm0, %v599_v5, %v646_v9  ;;  %s6369_s10 = sld [smem:[#allocation3 + $0x9]]  ;;  %s613_s14 = scalar_lea.vmem [#allocation8], %s6351_s13 }
 0x19d   :  { %v614_v15 = vld [vmem:[%s613_s14] sm:$0x1]  ;;  %v655_v16 = vrot.slane %v611_v12, 4  ;;  %v688_v17 = vsel %vm576_vm1, %v687_v14, %v649_v11  ;;  %s6374_s28 = sld [smem:[#allocation3 + $0x2]]  ;;  %s616_s11 = scalar_lea.vmem [#allocation8], %s6353_s21  ;;  %v970_v11 = vld [vmem:[#allocation17 + $0x20] sm:$0xff] }
 0x19e   :  { %v617_v18 = vld [vmem:[%s616_s11] sm:$0x1]  ;;  %v658_v19 = vrot.slane %v614_v15, 3  ;;  %v689_v20 = vsel %vm578_vm2, %v688_v17, %v652_v13  ;;  %s6378_s15 = sld [smem:[#allocation3 + $0xa]]  ;;  %s619_s5 = scalar_lea.vmem [#allocation8], %s6355_s20 }
 0x19f   :  { %v620_v21 = vld [vmem:[%s619_s5] sm:$0x1]  ;;  %v661_v22 = vrot.slane %v617_v18, 2  ;;  %v690_v23 = vsel %vm580_vm3, %v689_v20, %v655_v16  ;;  %s6382_s23 = sld [smem:[#allocation3 + $0x3]]  ;;  %s485_s8 = scalar_lea.vmem [#allocation5], %s6357_s0 }
 0x1a0   :  { %v664_v24 = vrot.slane %v620_v21, 1  ;;  %v691_v25 = vsel %vm582_vm4, %v690_v23, %v658_v19  ;;  %v486_v26 = vld [vmem:[%s485_s8] sm:$0x1]  ;;  %s6386_s24 = sld [smem:[#allocation3 + $0xb]]  ;;  %s488_s6 = scalar_lea.vmem [#allocation5], %s6362_s26 }
 0x1a1   :  { %v692_v27 = vsel %vm584_vm5, %v691_v25, %v661_v22  ;;  %v489_v28 = vld [vmem:[%s488_s6] sm:$0x1]  ;;  %s6390_s18 = sld [smem:[#allocation3 + $0x14]]  ;;  %s491_s17 = scalar_lea.vmem [#allocation5], %s6365_s12 }
 0x1a2   :  { %v693_v30 = vsel %vm586_vm6, %v692_v27, %v664_v24  ;;  %v492_v31 = vld [vmem:[%s491_s17] sm:$0x1]  ;;  %v533_v32 = vrot.slane %v489_v28, 7  ;;  %s6396_s25 = sld [smem:[#allocation3 + $0x1c]]  ;;  %s494_s27 = scalar_lea.vmem [#allocation5], %s6369_s10 }
 0x1a3   :  { %5003 = vmatprep.mubr.msk.f32.mxu0 %vm703_vm7, %v693_v30  ;;  %v495_v33 = vld [vmem:[%s494_s27] sm:$0x1]  ;;  %v536_v34 = vrot.slane %v492_v31, 6  ;;  %s6401_s1 = sld [smem:[#allocation3 + $0x15]]  ;;  %s497_s7 = scalar_lea.vmem [#allocation5], %s6374_s28  ;;  %v1159_v31 = vld [vmem:[#allocation17 + $0x30] sm:$0xff] }
 0x1a4   :  { %v498_v35 = vld [vmem:[%s497_s7] sm:$0x1]  ;;  %v539_v36 = vrot.slane %v495_v33, 5  ;;  %v575_v37 = vsel %vm574_vm0, %v486_v26, %v533_v32  ;;  %s6405_s2 = sld [smem:[#allocation3 + $0x1d]]  ;;  %s500_s3 = scalar_lea.vmem [#allocation5], %s6378_s15 }
 0x1a5   :  { %v501_v38 = vld [vmem:[%s500_s3] sm:$0x1]  ;;  %v542_v39 = vrot.slane %v498_v35, 4  ;;  %v577_v40 = vsel %vm576_vm1, %v575_v37, %v536_v34  ;;  %s6409_s9 = sld [smem:[#allocation3 + $0x16]]  ;;  %s503_s13 = scalar_lea.vmem [#allocation5], %s6382_s23 }
 0x1a6   :  { %v504_v41 = vld [vmem:[%s503_s13] sm:$0x1]  ;;  %v545_v42 = vrot.slane %v501_v38, 3  ;;  %v579_v43 = vsel %vm578_vm2, %v577_v40, %v539_v36  ;;  %s6413_s21 = sld [smem:[#allocation3 + $0x1e]]  ;;  %s506_s22 = scalar_lea.vmem [#allocation5], %s6386_s24 }
 0x1a7   :  { %v507_v44 = vld [vmem:[%s506_s22] sm:$0x1]  ;;  %v548_v45 = vrot.slane %v504_v41, 2  ;;  %v581_v46 = vsel %vm580_vm3, %v579_v43, %v542_v39  ;;  %s6417_s20 = sld [smem:[#allocation3 + $0x17]]  ;;  %s622_s4 = scalar_lea.vmem [#allocation8], %s6390_s18 }
 0x1a8   :  { %v551_v47 = vrot.slane %v507_v44, 1  ;;  %v583_v48 = vsel %vm582_vm4, %v581_v46, %v545_v42  ;;  %v623_v49 = vld [vmem:[%s622_s4] sm:$0x1]  ;;  %s6421_s0 = sld [smem:[#allocation3 + $0x1f]]  ;;  %s625_s16 = scalar_lea.vmem [#allocation8], %s6396_s25 }
 0x1a9   :  { %v585_v50 = vsel %vm584_vm5, %v583_v48, %v548_v45  ;;  %v626_v51 = vld [vmem:[%s625_s16] sm:$0x1]  ;;  %s6425_s26 = sld [smem:[#allocation3 + $0x4]]  ;;  %s628_s29 = scalar_lea.vmem [#allocation8], %s6401_s1 }
 0x1aa   :  { %v587_v52 = vsel %vm586_vm6, %v585_v50, %v551_v47  ;;  %v629_v53 = vld [vmem:[%s628_s29] sm:$0x1]  ;;  %v667_v54 = vrot.slane %v626_v51, 7  ;;  %s6429_s12 = sld [smem:[#allocation3 + $0xc]]  ;;  %s631_s19 = scalar_lea.vmem [#allocation8], %s6405_s2 }
 0x1ab   :  { %5010 = vmatprep.mubr.msk.f32.mxu1 %vm703_vm7, %v587_v52  ;;  %v632_v55 = vld [vmem:[%s631_s19] sm:$0x1]  ;;  %v670_v56 = vrot.slane %v629_v53, 6  ;;  %s6433_s10 = sld [smem:[#allocation3 + $0x5]]  ;;  %s634_s14 = scalar_lea.vmem [#allocation8], %s6409_s9 }
 0x1ac   :  { %v635_v57 = vld [vmem:[%s634_s14] sm:$0x1]  ;;  %v673_v58 = vrot.slane %v632_v55, 5  ;;  %v694_v59 = vsel %vm574_vm0, %v623_v49, %v667_v54  ;;  %s6437_s28 = sld [smem:[#allocation3 + $0xd]]  ;;  %s637_s11 = scalar_lea.vmem [#allocation8], %s6413_s21 }
 0x1ad   :  { %v638_v60 = vld [vmem:[%s637_s11] sm:$0x1]  ;;  %v676_v61 = vrot.slane %v635_v57, 4  ;;  %v695_v62 = vsel %vm576_vm1, %v694_v59, %v670_v56  ;;  %s6441_s15 = sld [smem:[#allocation3 + $0x6]]  ;;  %s640_s5 = scalar_lea.vmem [#allocation8], %s6417_s20  ;;  %v6528_v57 = vld [vmem:[#allocation17 + $0x58] sm:$0xff] }
 0x1ae   :  { %v641_v63 = vld [vmem:[%s640_s5] sm:$0x1]  ;;  %v679_v0 = vrot.slane %v638_v60, 3  ;;  %v696_v1 = vsel %vm578_vm2, %v695_v62, %v673_v58  ;;  %s6445_s23 = sld [smem:[#allocation3 + $0xe]]  ;;  %s643_s8 = scalar_lea.vmem [#allocation8], %s6421_s0 }
 0x1af   :  { %v644_v2 = vld [vmem:[%s643_s8] sm:$0x1]  ;;  %v682_v3 = vrot.slane %v641_v63, 2  ;;  %v697_v4 = vsel %vm580_vm3, %v696_v1, %v676_v61  ;;  %s6449_s24 = sld [smem:[#allocation3 + $0x7]]  ;;  %s509_s6 = scalar_lea.vmem [#allocation5], %s6425_s26 }
 0x1b0   :  { %v685_v5 = vrot.slane %v644_v2, 1  ;;  %v698_v6 = vsel %vm582_vm4, %v697_v4, %v679_v0  ;;  %v510_v8 = vld [vmem:[%s509_s6] sm:$0x1]  ;;  %s6453_s18 = sld [smem:[#allocation3 + $0xf]]  ;;  %s512_s17 = scalar_lea.vmem [#allocation5], %s6429_s12 }
 0x1b1   :  { %v699_v9 = vsel %vm584_vm5, %v698_v6, %v682_v3  ;;  %v513_v10 = vld [vmem:[%s512_s17] sm:$0x1]  ;;  %s6457_s25 = sld [smem:[#allocation3 + $0x20]]  ;;  %s515_s27 = scalar_lea.vmem [#allocation5], %s6433_s10 }
 0x1b2   :  { %v700_v12 = vsel %vm586_vm6, %v699_v9, %v685_v5  ;;  %v516_v13 = vld [vmem:[%s515_s27] sm:$0x1]  ;;  %v554_v14 = vrot.slane %v513_v10, 7  ;;  %s6461_s1 = sld [smem:[#allocation3 + $0x28]]  ;;  %s518_s7 = scalar_lea.vmem [#allocation5], %s6437_s28 }
 0x1b3   :  { %5004 = vmatmul.mubr.msk.f32.vlgmr.msra.gmra.mxu0 %vm703_vm7, %v700_v12  ;;  %v519_v15 = vld [vmem:[%s518_s7] sm:$0x1]  ;;  %v557_v16 = vrot.slane %v516_v13, 6  ;;  %s6465_s2 = sld [smem:[#allocation3 + $0x21]]  ;;  %s521_s3 = scalar_lea.vmem [#allocation5], %s6441_s15 }
 0x1b4   :  { %v522_v17 = vld [vmem:[%s521_s3] sm:$0x1]  ;;  %v560_v18 = vrot.slane %v519_v15, 5  ;;  %v588_v19 = vsel %vm574_vm0, %v510_v8, %v554_v14  ;;  %5014 = vmatpush3.msra.mxu0 %v6359_v7  ;;  %s6470_s9 = sld [smem:[#allocation3 + $0x29]]  ;;  %s524_s13 = scalar_lea.vmem [#allocation5], %s6445_s23 }
 0x1b5   :  { %v525_v20 = vld [vmem:[%s524_s13] sm:$0x1]  ;;  %v563_v21 = vrot.slane %v522_v17, 4  ;;  %v589_v22 = vsel %vm576_vm1, %v588_v19, %v557_v16  ;;  %5015 = vmatprep.subr.mxu0 %v970_v11  ;;  %s6474_s21 = sld [smem:[#allocation3 + $0x22]]  ;;  %s527_s22 = scalar_lea.vmem [#allocation5], %s6449_s24 }
 0x1b6   :  { %v528_v23 = vld [vmem:[%s527_s22] sm:$0x1]  ;;  %v566_v24 = vrot.slane %v525_v20, 3  ;;  %v590_v25 = vsel %vm578_vm2, %v589_v22, %v560_v18  ;;  %5016 = vmatpush3.msra.mxu0 %v970_v11  ;;  %s6478_s20 = sld [smem:[#allocation3 + $0x2a]]  ;;  %s530_s4 = scalar_lea.vmem [#allocation5], %s6453_s18 }
 0x1b7   :  { %v531_v7 = vld [vmem:[%s530_s4] sm:$0x1]  ;;  %v569_v26 = vrot.slane %v528_v23, 2  ;;  %v591_v27 = vsel %vm580_vm3, %v590_v25, %v563_v21  ;;  %s6482_s0 = sld [smem:[#allocation3 + $0x23]]  ;;  %s867_s16 = scalar_lea.vmem [#allocation10], %s6457_s25 }
 0x1b8   :  { %v572_v28 = vrot.slane %v531_v7, 1  ;;  %v592_v30 = vsel %vm582_vm4, %v591_v27, %v566_v24  ;;  %v868_v32 = vld [vmem:[%s867_s16] sm:$0x1]  ;;  %s6486_s26 = sld [smem:[#allocation3 + $0x2b]]  ;;  %s870_s29 = scalar_lea.vmem [#allocation10], %s6461_s1 }
 0x1b9   :  { %v593_v33 = vsel %vm584_vm5, %v592_v30, %v569_v26  ;;  %v871_v34 = vld [vmem:[%s870_s29] sm:$0x1]  ;;  %s6490_s12 = sld [smem:[#allocation3 + $0x30]]  ;;  %s873_s19 = scalar_lea.vmem [#allocation10], %s6465_s2 }
 0x1ba   :  { %v6492_v35 = vld [vmem:[#allocation17 + $0x48] sm:$0xff]  ;;  %v594_v36 = vsel %vm586_vm6, %v593_v33, %v572_v28  ;;  %v915_v38 = vrot.slane %v871_v34, 7  ;;  %s6496_s10 = sld [smem:[#allocation3 + $0x38]]  ;;  %s876_s14 = scalar_lea.vmem [#allocation10], %s6470_s9 }
 0x1bb   :  { %v874_v37 = vld [vmem:[%s873_s19] sm:$0x1]  ;;  %5027 = vmatprep.subr.mxu0 %v6492_v35  ;;  %5011 = vmatmul.mubr.msk.f32.vlgmr.msra.gmra.mxu1 %vm703_vm7, %v594_v36  ;;  %s6501_s28 = sld [smem:[#allocation3 + $0x31]]  ;;  %s879_s11 = scalar_lea.vmem [#allocation10], %s6474_s21 }
 0x1bc   :  { %v877_v39 = vld [vmem:[%s876_s14] sm:$0x1]  ;;  %v918_v40 = vrot.slane %v874_v37, 6  ;;  %5021 = vmatpush3.msra.mxu1 %v6392_v29  ;;  %v956_v43 = vsel %vm574_vm0, %v868_v32, %v915_v38  ;;  %s6506_s15 = sld [smem:[#allocation3 + $0x39]]  ;;  %s882_s5 = scalar_lea.vmem [#allocation10], %s6478_s20 }
 0x1bd   :  { %v880_v41 = vld [vmem:[%s879_s11] sm:$0x1]  ;;  %v921_v42 = vrot.slane %v877_v39, 5  ;;  %5022 = vmatprep.subr.mxu1 %v1159_v31  ;;  %s6510_s23 = sld [smem:[#allocation3 + $0x32]]  ;;  %s885_s8 = scalar_lea.vmem [#allocation10], %s6482_s0 }
 0x1be   :  { %v883_v44 = vld [vmem:[%s882_s5] sm:$0x1]  ;;  %v924_v45 = vrot.slane %v880_v41, 4  ;;  %v957_v46 = vsel %vm576_vm1, %v956_v43, %v918_v40  ;;  %5023 = vmatpush3.msra.mxu1 %v1159_v31  ;;  %s6514_s24 = sld [smem:[#allocation3 + $0x3a]]  ;;  %s888_s6 = scalar_lea.vmem [#allocation10], %s6486_s26  ;;  %v1348_v40 = vld [vmem:[#allocation17 + $0x40] sm:$0xff] }
 0x1bf   :  { %v886_v47 = vld [vmem:[%s885_s8] sm:$0x1]  ;;  %v927_v29 = vrot.slane %v883_v44, 3  ;;  %v958_v48 = vsel %vm578_vm2, %v957_v46, %v921_v42  ;;  %s6518_s18 = sld [smem:[#allocation3 + $0x33]]  ;;  %s1056_s17 = scalar_lea.vmem [#allocation11], %s6490_s12  ;;  %5034 = vmatprep.subr.mxu1 %v6528_v57 }
 0x1c0   :  { %v889_v49 = vld [vmem:[%s888_s6] sm:$0x1]  ;;  %v930_v50 = vrot.slane %v886_v47, 2  ;;  %v959_v51 = vsel %vm580_vm3, %v958_v48, %v924_v45  ;;  %s6522_s25 = sld [smem:[#allocation3 + $0x3b]]  ;;  %s1059_s27 = scalar_lea.vmem [#allocation11], %s6496_s10 }
 0x1c1   :  { %v933_v52 = vrot.slane %v889_v49, 1  ;;  %v960_v53 = vsel %vm582_vm4, %v959_v51, %v927_v29  ;;  %v1057_v54 = vld [vmem:[%s1056_s17] sm:$0x1]  ;;  %s6526_s1 = sld [smem:[#allocation3 + $0x24]]  ;;  %s1062_s7 = scalar_lea.vmem [#allocation11], %s6501_s28 }
 0x1c2   :  { %v961_v55 = vsel %vm584_vm5, %v960_v53, %v930_v50  ;;  %v1060_v56 = vld [vmem:[%s1059_s27] sm:$0x1]  ;;  %s6532_s2 = sld [smem:[#allocation3 + $0x2c]]  ;;  %s1065_s3 = scalar_lea.vmem [#allocation11], %s6506_s15 }
 0x1c3   :  { %v962_v58 = vsel %vm586_vm6, %v961_v55, %v933_v52  ;;  %v1063_v59 = vld [vmem:[%s1062_s7] sm:$0x1]  ;;  %v1104_v60 = vrot.slane %v1060_v56, 7  ;;  %s6537_s9 = sld [smem:[#allocation3 + $0x25]]  ;;  %s1068_s13 = scalar_lea.vmem [#allocation11], %s6510_s23 }
 0x1c4   :  { %5017 = vmatprep.mubr.msk.f32.mxu0 %vm703_vm7, %v962_v58  ;;  %v1066_v61 = vld [vmem:[%s1065_s3] sm:$0x1]  ;;  %v1107_v62 = vrot.slane %v1063_v59, 6  ;;  %s6541_s21 = sld [smem:[#allocation3 + $0x2d]]  ;;  %s1071_s22 = scalar_lea.vmem [#allocation11], %s6514_s24 }
 0x1c5   :  { %v1069_v63 = vld [vmem:[%s1068_s13] sm:$0x1]  ;;  %v1110_v0 = vrot.slane %v1066_v61, 5  ;;  %v1145_v1 = vsel %vm574_vm0, %v1057_v54, %v1104_v60  ;;  %s6545_s20 = sld [smem:[#allocation3 + $0x26]]  ;;  %s1074_s4 = scalar_lea.vmem [#allocation11], %s6518_s18  ;;  %v1537_v61 = vld [vmem:[#allocation17 + $0x50] sm:$0xff] }
 0x1c6   :  { %v1072_v2 = vld [vmem:[%s1071_s22] sm:$0x1]  ;;  %v1113_v3 = vrot.slane %v1069_v63, 4  ;;  %v1146_v4 = vsel %vm576_vm1, %v1145_v1, %v1107_v62  ;;  %s6549_s0 = sld [smem:[#allocation3 + $0x2e]]  ;;  %s1077_s16 = scalar_lea.vmem [#allocation11], %s6522_s25 }
 0x1c7   :  { %v1075_v5 = vld [vmem:[%s1074_s4] sm:$0x1]  ;;  %v1116_v6 = vrot.slane %v1072_v2, 3  ;;  %v1147_v8 = vsel %vm578_vm2, %v1146_v4, %v1110_v0  ;;  %s6553_s26 = sld [smem:[#allocation3 + $0x27]]  ;;  %s891_s29 = scalar_lea.vmem [#allocation10], %s6526_s1 }
 0x1c8   :  { %v1078_v9 = vld [vmem:[%s1077_s16] sm:$0x1]  ;;  %v1119_v10 = vrot.slane %v1075_v5, 2  ;;  %v1148_v11 = vsel %vm580_vm3, %v1147_v8, %v1113_v3  ;;  %s6557_s12 = sld [smem:[#allocation3 + $0x2f]]  ;;  %s894_s19 = scalar_lea.vmem [#allocation10], %s6532_s2 }
 0x1c9   :  { %v1122_v12 = vrot.slane %v1078_v9, 1  ;;  %v1149_v13 = vsel %vm582_vm4, %v1148_v11, %v1116_v6  ;;  %v892_v14 = vld [vmem:[%s891_s29] sm:$0x1]  ;;  %s6561_s10 = sld [smem:[#allocation3 + $0x34]]  ;;  %s897_s14 = scalar_lea.vmem [#allocation10], %s6537_s9 }
 0x1ca   :  { %v1150_v15 = vsel %vm584_vm5, %v1149_v13, %v1119_v10  ;;  %v895_v16 = vld [vmem:[%s894_s19] sm:$0x1]  ;;  %s6565_s28 = sld [smem:[#allocation3 + $0x3c]]  ;;  %s900_s11 = scalar_lea.vmem [#allocation10], %s6541_s21 }
 0x1cb   :  { %v1151_v17 = vsel %vm586_vm6, %v1150_v15, %v1122_v12  ;;  %v898_v18 = vld [vmem:[%s897_s14] sm:$0x1]  ;;  %v936_v19 = vrot.slane %v895_v16, 7  ;;  %s6569_s15 = sld [smem:[#allocation3 + $0x35]]  ;;  %s903_s5 = scalar_lea.vmem [#allocation10], %s6545_s20 }
 0x1cc   :  { %5024 = vmatprep.mubr.msk.f32.mxu1 %vm703_vm7, %v1151_v17  ;;  %v901_v20 = vld [vmem:[%s900_s11] sm:$0x1]  ;;  %v939_v21 = vrot.slane %v898_v18, 6  ;;  %s6573_s23 = sld [smem:[#allocation3 + $0x3d]]  ;;  %s906_s8 = scalar_lea.vmem [#allocation10], %s6549_s0 }
 0x1cd   :  { %v904_v22 = vld [vmem:[%s903_s5] sm:$0x1]  ;;  %v942_v23 = vrot.slane %v901_v20, 5  ;;  %v963_v24 = vsel %vm574_vm0, %v892_v14, %v936_v19  ;;  %s6577_s24 = sld [smem:[#allocation3 + $0x36]]  ;;  %s909_s6 = scalar_lea.vmem [#allocation10], %s6553_s26 }
 0x1ce   :  { %v907_v25 = vld [vmem:[%s906_s8] sm:$0x1]  ;;  %v945_v7 = vrot.slane %v904_v22, 4  ;;  %v964_v26 = vsel %vm576_vm1, %v963_v24, %v939_v21  ;;  %s6581_s18 = sld [smem:[#allocation3 + $0x3e]]  ;;  %s912_s17 = scalar_lea.vmem [#allocation10], %s6557_s12 }
 0x1cf   :  { %v910_v27 = vld [vmem:[%s909_s6] sm:$0x1]  ;;  %v948_v28 = vrot.slane %v907_v25, 3  ;;  %v965_v30 = vsel %vm578_vm2, %v964_v26, %v942_v23  ;;  %s6585_s25 = sld [smem:[#allocation3 + $0x37]]  ;;  %s1080_s27 = scalar_lea.vmem [#allocation11], %s6561_s10 }
 0x1d0   :  { %v913_v31 = vld [vmem:[%s912_s17] sm:$0x1]  ;;  %v951_v32 = vrot.slane %v910_v27, 2  ;;  %v966_v33 = vsel %vm580_vm3, %v965_v30, %v945_v7  ;;  %s6589_s1 = sld [smem:[#allocation3 + $0x3f]]  ;;  %s1083_s7 = scalar_lea.vmem [#allocation11], %s6565_s28 }
 0x1d1   :  { %v954_v34 = vrot.slane %v913_v31, 1  ;;  %v967_v36 = vsel %vm582_vm4, %v966_v33, %v948_v28  ;;  %v1081_v37 = vld [vmem:[%s1080_s27] sm:$0x1]  ;;  %s6593_s2 = sld [smem:[#allocation3 + $0x40]]  ;;  %s1086_s3 = scalar_lea.vmem [#allocation11], %s6569_s15 }
 0x1d2   :  { %v968_v38 = vsel %vm584_vm5, %v967_v36, %v951_v32  ;;  %v1084_v39 = vld [vmem:[%s1083_s7] sm:$0x1]  ;;  %s6597_s9 = sld [smem:[#allocation3 + $0x48]]  ;;  %s1089_s13 = scalar_lea.vmem [#allocation11], %s6573_s23 }
 0x1d3   :  { %v969_v41 = vsel %vm586_vm6, %v968_v38, %v954_v34  ;;  %v1087_v42 = vld [vmem:[%s1086_s3] sm:$0x1]  ;;  %v1125_v43 = vrot.slane %v1084_v39, 7  ;;  %s6601_s21 = sld [smem:[#allocation3 + $0x41]]  ;;  %s1092_s22 = scalar_lea.vmem [#allocation11], %s6577_s24 }
 0x1d4   :  { %5018 = vmatmul.mubr.msk.f32.vlgmr.msra.gmra.mxu0 %vm703_vm7, %v969_v41  ;;  %v1090_v44 = vld [vmem:[%s1089_s13] sm:$0x1]  ;;  %v1128_v45 = vrot.slane %v1087_v42, 6  ;;  %s6606_s20 = sld [smem:[#allocation3 + $0x49]]  ;;  %s1095_s4 = scalar_lea.vmem [#allocation11], %s6581_s18 }
 0x1d5   :  { %v1093_v46 = vld [vmem:[%s1092_s22] sm:$0x1]  ;;  %v1131_v47 = vrot.slane %v1090_v44, 5  ;;  %v1152_v29 = vsel %vm574_vm0, %v1081_v37, %v1125_v43  ;;  %5028 = vmatpush3.msra.mxu0 %v6492_v35  ;;  %s6610_s0 = sld [smem:[#allocation3 + $0x42]]  ;;  %s1098_s16 = scalar_lea.vmem [#allocation11], %s6585_s25 }
 0x1d6   :  { %v1096_v48 = vld [vmem:[%s1095_s4] sm:$0x1]  ;;  %v1134_v49 = vrot.slane %v1093_v46, 4  ;;  %v1153_v50 = vsel %vm576_vm1, %v1152_v29, %v1128_v45  ;;  %5029 = vmatprep.subr.mxu0 %v1348_v40  ;;  %s6614_s26 = sld [smem:[#allocation3 + $0x4a]]  ;;  %s1101_s29 = scalar_lea.vmem [#allocation11], %s6589_s1 }
 0x1d7   :  { %v1099_v51 = vld [vmem:[%s1098_s16] sm:$0x1]  ;;  %v1137_v52 = vrot.slane %v1096_v48, 3  ;;  %v1154_v53 = vsel %vm578_vm2, %v1153_v50, %v1131_v47  ;;  %5030 = vmatpush3.msra.mxu0 %v1348_v40  ;;  %s6618_s12 = sld [smem:[#allocation3 + $0x43]]  ;;  %s1245_s19 = scalar_lea.vmem [#allocation13], %s6593_s2 }
 0x1d8   :  { %v1102_v35 = vld [vmem:[%s1101_s29] sm:$0x1]  ;;  %v1140_v54 = vrot.slane %v1099_v51, 2  ;;  %v1155_v55 = vsel %vm580_vm3, %v1154_v53, %v1134_v49  ;;  %s6622_s10 = sld [smem:[#allocation3 + $0x4b]]  ;;  %s1248_s14 = scalar_lea.vmem [#allocation13], %s6597_s9 }
 0x1d9   :  { %v1143_v56 = vrot.slane %v1102_v35, 1  ;;  %v1156_v58 = vsel %vm582_vm4, %v1155_v55, %v1137_v52  ;;  %v1246_v59 = vld [vmem:[%s1245_s19] sm:$0x1]  ;;  %s6626_s28 = sld [smem:[#allocation3 + $0x50]]  ;;  %s1251_s11 = scalar_lea.vmem [#allocation13], %s6601_s21 }
 0x1da   :  { %v1157_v60 = vsel %vm584_vm5, %v1156_v58, %v1140_v54  ;;  %v1249_v62 = vld [vmem:[%s1248_s14] sm:$0x1]  ;;  %s6630_s15 = sld [smem:[#allocation3 + $0x58]]  ;;  %s1254_s5 = scalar_lea.vmem [#allocation13], %s6606_s20 }
 0x1db   :  { %v1158_v63 = vsel %vm586_vm6, %v1157_v60, %v1143_v56  ;;  %v1252_v0 = vld [vmem:[%s1251_s11] sm:$0x1]  ;;  %v1293_v1 = vrot.slane %v1249_v62, 7  ;;  %s6634_s23 = sld [smem:[#allocation3 + $0x51]]  ;;  %s1257_s8 = scalar_lea.vmem [#allocation13], %s6610_s0 }
 0x1dc   :  { %5025 = vmatmul.mubr.msk.f32.vlgmr.msra.gmra.mxu1 %vm703_vm7, %v1158_v63  ;;  %v1255_v2 = vld [vmem:[%s1254_s5] sm:$0x1]  ;;  %v1296_v3 = vrot.slane %v1252_v0, 6  ;;  %s6639_s24 = sld [smem:[#allocation3 + $0x59]]  ;;  %s1260_s6 = scalar_lea.vmem [#allocation13], %s6614_s26 }
 0x1dd   :  { %5035 = vmatpush3.msra.mxu1 %v6528_v57  ;;  %v1258_v4 = vld [vmem:[%s1257_s8] sm:$0x1]  ;;  %v1299_v5 = vrot.slane %v1255_v2, 5  ;;  %v1334_v6 = vsel %vm574_vm0, %v1246_v59, %v1293_v1  ;;  %s6643_s18 = sld [smem:[#allocation3 + $0x52]]  ;;  %s1263_s17 = scalar_lea.vmem [#allocation13], %s6618_s12 }
 0x1de   :  { %5036 = vmatprep.subr.mxu1 %v1537_v61  ;;  %v1261_v8 = vld [vmem:[%s1260_s6] sm:$0x1]  ;;  %v1302_v9 = vrot.slane %v1258_v4, 4  ;;  %v1335_v10 = vsel %vm576_vm1, %v1334_v6, %v1296_v3  ;;  %s6647_s25 = sld [smem:[#allocation3 + $0x5a]]  ;;  %s1266_s27 = scalar_lea.vmem [#allocation13], %s6622_s10 }
 0x1df   :  { %v1264_v11 = vld [vmem:[%s1263_s17] sm:$0x1]  ;;  %v1305_v57 = vrot.slane %v1261_v8, 3  ;;  %v1336_v12 = vsel %vm578_vm2, %v1335_v10, %v1299_v5  ;;  %5037 = vmatpush3.msra.mxu1 %v1537_v61  ;;  %s6651_s1 = sld [smem:[#allocation3 + $0x53]]  ;;  %s1434_s7 = scalar_lea.vmem [#allocation14], %s6626_s28 }
 0x1e0   :  { %v1267_v13 = vld [vmem:[%s1266_s27] sm:$0x1]  ;;  %v1308_v14 = vrot.slane %v1264_v11, 2  ;;  %v1337_v15 = vsel %vm580_vm3, %v1336_v12, %v1302_v9  ;;  %s6655_s2 = sld [smem:[#allocation3 + $0x5b]]  ;;  %s1437_s3 = scalar_lea.vmem [#allocation14], %s6630_s15 }
 0x1e1   :  { %v1311_v16 = vrot.slane %v1267_v13, 1  ;;  %v1338_v17 = vsel %vm582_vm4, %v1337_v15, %v1305_v57  ;;  %v1435_v18 = vld [vmem:[%s1434_s7] sm:$0x1]  ;;  %s6659_s9 = sld [smem:[#allocation3 + $0x44]]  ;;  %s1440_s13 = scalar_lea.vmem [#allocation14], %s6634_s23 }
 0x1e2   :  { %v1339_v19 = vsel %vm584_vm5, %v1338_v17, %v1308_v14  ;;  %v1438_v20 = vld [vmem:[%s1437_s3] sm:$0x1]  ;;  %s6663_s21 = sld [smem:[#allocation3 + $0x4c]]  ;;  %s1443_s22 = scalar_lea.vmem [#allocation14], %s6639_s24  ;;  %v1674_v1 = vld [vmem:[#allocation22] sm:$0x7] }
 0x1e3   :  { %v1340_v21 = vsel %vm586_vm6, %v1339_v19, %v1311_v16  ;;  %v1441_v22 = vld [vmem:[%s1440_s13] sm:$0x1]  ;;  %v1482_v23 = vrot.slane %v1438_v20, 7  ;;  %s6667_s20 = sld [smem:[#allocation3 + $0x45]]  ;;  %s1446_s4 = scalar_lea.vmem [#allocation14], %s6643_s18  ;;  %5041 = vmatprep.subr.msk.mxu0 %vm578_vm2, %v1674_v1 }
 0x1e4   :  { %5031 = vmatprep.mubr.msk.f32.mxu0 %vm703_vm7, %v1340_v21  ;;  %v1444_v24 = vld [vmem:[%s1443_s22] sm:$0x1]  ;;  %v1485_v25 = vrot.slane %v1441_v22, 6  ;;  %s6671_s0 = sld [smem:[#allocation3 + $0x4d]]  ;;  %s1449_s16 = scalar_lea.vmem [#allocation14], %s6647_s25 }
 0x1e5   :  { %v1447_v7 = vld [vmem:[%s1446_s4] sm:$0x1]  ;;  %v1488_v26 = vrot.slane %v1444_v24, 5  ;;  %v1523_v27 = vsel %vm574_vm0, %v1435_v18, %v1482_v23  ;;  %s6675_s26 = sld [smem:[#allocation3 + $0x46]]  ;;  %s1452_s29 = scalar_lea.vmem [#allocation14], %s6651_s1 }
 0x1e6   :  { %v1450_v28 = vld [vmem:[%s1449_s16] sm:$0x1]  ;;  %v1491_v30 = vrot.slane %v1447_v7, 4  ;;  %v1524_v31 = vsel %vm576_vm1, %v1523_v27, %v1485_v25  ;;  %s6679_s12 = sld [smem:[#allocation3 + $0x4e]]  ;;  %s1455_s19 = scalar_lea.vmem [#allocation14], %s6655_s2 }
 0x1e7   :  { %v1453_v32 = vld [vmem:[%s1452_s29] sm:$0x1]  ;;  %v1494_v33 = vrot.slane %v1450_v28, 3  ;;  %v1525_v34 = vsel %vm578_vm2, %v1524_v31, %v1488_v26  ;;  %s6683_s10 = sld [smem:[#allocation3 + $0x47]]  ;;  %s1269_s14 = scalar_lea.vmem [#allocation13], %s6659_s9 }
 0x1e8   :  { %v1456_v36 = vld [vmem:[%s1455_s19] sm:$0x1]  ;;  %v1497_v37 = vrot.slane %v1453_v32, 2  ;;  %v1526_v38 = vsel %vm580_vm3, %v1525_v34, %v1491_v30  ;;  %s6687_s28 = sld [smem:[#allocation3 + $0x4f]]  ;;  %s1272_s11 = scalar_lea.vmem [#allocation13], %s6663_s21 }
 0x1e9   :  { %v1500_v39 = vrot.slane %v1456_v36, 1  ;;  %v1527_v40 = vsel %vm582_vm4, %v1526_v38, %v1494_v33  ;;  %v1270_v41 = vld [vmem:[%s1269_s14] sm:$0x1]  ;;  %s6691_s15 = sld [smem:[#allocation3 + $0x54]]  ;;  %s1275_s5 = scalar_lea.vmem [#allocation13], %s6667_s20 }
 0x1ea   :  { %v1528_v42 = vsel %vm584_vm5, %v1527_v40, %v1497_v37  ;;  %v1273_v43 = vld [vmem:[%s1272_s11] sm:$0x1]  ;;  %s6695_s23 = sld [smem:[#allocation3 + $0x5c]]  ;;  %s1278_s8 = scalar_lea.vmem [#allocation13], %s6671_s0 }
 0x1eb   :  { %v1529_v44 = vsel %vm586_vm6, %v1528_v42, %v1500_v39  ;;  %v1276_v45 = vld [vmem:[%s1275_s5] sm:$0x1]  ;;  %v1314_v46 = vrot.slane %v1273_v43, 7  ;;  %s6699_s24 = sld [smem:[#allocation3 + $0x55]]  ;;  %s1281_s6 = scalar_lea.vmem [#allocation13], %s6675_s26 }
 0x1ec   :  { %5038 = vmatprep.mubr.msk.f32.mxu1 %vm703_vm7, %v1529_v44  ;;  %v1279_v47 = vld [vmem:[%s1278_s8] sm:$0x1]  ;;  %v1317_v29 = vrot.slane %v1276_v45, 6  ;;  %s6703_s18 = sld [smem:[#allocation3 + $0x5d]]  ;;  %s1284_s17 = scalar_lea.vmem [#allocation13], %s6679_s12 }
 0x1ed   :  { %v1282_v48 = vld [vmem:[%s1281_s6] sm:$0x1]  ;;  %v1320_v49 = vrot.slane %v1279_v47, 5  ;;  %v1341_v50 = vsel %vm574_vm0, %v1270_v41, %v1314_v46  ;;  %s6707_s25 = sld [smem:[#allocation3 + $0x56]]  ;;  %s1287_s27 = scalar_lea.vmem [#allocation13], %s6683_s10 }
 0x1ee   :  { %v1285_v51 = vld [vmem:[%s1284_s17] sm:$0x1]  ;;  %v1323_v52 = vrot.slane %v1282_v48, 4  ;;  %v1342_v53 = vsel %vm576_vm1, %v1341_v50, %v1317_v29  ;;  %s7281_s1 = sld [smem:[#allocation69_spill]]  ;;  %s1290_s2 = scalar_lea.vmem [#allocation13], %s6687_s28 }
 0x1ef   :  { %v1288_v35 = vld [vmem:[%s1287_s27] sm:$0x1]  ;;  %v1326_v54 = vrot.slane %v1285_v51, 3  ;;  %v1343_v55 = vsel %vm578_vm2, %v1342_v53, %v1320_v49  ;;  %s6711_s7 = sld [smem:[#allocation3 + $0x5e]]  ;;  %s1458_s9 = scalar_lea.vmem [#allocation14], %s6691_s15 }
 0x1f0   :  { %v1291_v56 = vld [vmem:[%s1290_s2] sm:$0x1]  ;;  %v1329_v58 = vrot.slane %v1288_v35, 2  ;;  %v1344_v59 = vsel %vm580_vm3, %v1343_v55, %v1323_v52  ;;  %s6715_s3 = sld [smem:[#allocation3 + $0x57]]  ;;  %s1461_s21 = scalar_lea.vmem [#allocation14], %s6695_s23 }
 0x1f1   :  { %v1332_v60 = vrot.slane %v1291_v56, 1  ;;  %v1345_v61 = vsel %vm582_vm4, %v1344_v59, %v1326_v54  ;;  %v1459_v62 = vld [vmem:[%s1458_s9] sm:$0x1]  ;;  %s6719_s13 = sld [smem:[#allocation3 + $0x5f]]  ;;  %s1464_s22 = scalar_lea.vmem [#allocation14], %s6699_s24 }
 0x1f2   :  { %v1346_v63 = vsel %vm584_vm5, %v1345_v61, %v1329_v58  ;;  %v1462_v0 = vld [vmem:[%s1461_s21] sm:$0x1]  ;;  %s1467_s20 = scalar_lea.vmem [#allocation14], %s6703_s18  ;;  %v4840_v46 = vld [vmem:[#allocation23] ss:$0 sm:$0xff]  ;;  %s6110_s29 = smov 32  }
 0x1f3   :  { %v1347_v3 = vsel %vm586_vm6, %v1346_v63, %v1332_v60  ;;  %v1465_v4 = vld [vmem:[%s1464_s22] sm:$0x1]  ;;  %v1503_v5 = vrot.slane %v1462_v0, 7  ;;  %s1470_s4 = scalar_lea.vmem [#allocation14], %s6707_s25  ;;  %v4837_v47 = vld [vmem:[#allocation19] ss:$0 sm:$0xff] }
 0x1f4   :  { %v1672_v2 = vld [vmem:[%s7281_s1] sm:$0xff]  ;;  %5032 = vmatmul.mubr.msk.f32.vlgmr.msra.gmra.mxu0 %vm703_vm7, %v1347_v3  ;;  %v1506_v8 = vrot.slane %v1465_v4, 6  ;;  %v1673_v57 = vld [vmem:[%s7281_s1 + $0x8] sm:$0xff]  ;;  %s6112_s12 = smov 64   ;;  %s6113_s19 = smov 96  }
 0x1f5   :  { %v1468_v6 = vld [vmem:[%s1467_s20] sm:$0x1]  ;;  %v1530_v11 = vsel %vm574_vm0, %v1459_v62, %v1503_v5  ;;  %5042 = vmatpush3.msk.msra.mxu0 %vm578_vm2, %v1674_v1  ;;  %5043 = vmatprep.mubr.msk.f32.mxu0 %vm1682_vm8, %v1672_v2  ;;  %s1473_s0 = scalar_lea.vmem [#allocation14], %s6711_s7  ;;  %vm6114_vm0 = vmmov 0   ;;  %s6115_s10 = smov 80  }
 0x1f6   :  { %v1471_v9 = vld [vmem:[%s1470_s4] sm:$0x1]  ;;  %v1509_v10 = vrot.slane %v1468_v6, 5  ;;  %v1531_v14 = vsel %vm576_vm1, %v1530_v11, %v1506_v8  ;;  %s1476_s16 = scalar_lea.vmem [#allocation14], %s6715_s3  ;;  %vm3131_vm1 = vcmask 1046534   ;;  %s6116_s14 = smov 112  }
 0x1f7   :  { %v1474_v12 = vld [vmem:[%s1473_s0] sm:$0x1]  ;;  %v1512_v13 = vrot.slane %v1471_v9, 4  ;;  %s1479_s26 = scalar_lea.vmem [#allocation14], %s6719_s13  ;;  %s6117_s28 = smov 48  }
 0x1f8   :  { %v1477_v15 = vld [vmem:[%s1476_s16] sm:$0x1]  ;;  %v1515_v16 = vrot.slane %v1474_v12, 3  ;;  %v1532_v17 = vsel %vm578_vm2, %v1531_v14, %v1509_v10  ;;  %5044 = vmatmul.mubr.msk.f32.vlgmr.msra.gmra.mxu0 %vm1682_vm8, %v1673_v57  ;;  %vm3134_vm2 = vcmask 1047559   ;;  %s6119_s11 = smov [#allocation49]  }
 0x1f9   :  { %v1480_v18 = vld [vmem:[%s1479_s26] sm:$0x1]  ;;  %v1518_v19 = vrot.slane %v1477_v15, 2  ;;  %v1533_v20 = vsel %vm580_vm3, %v1532_v17, %v1512_v13  ;;  %v1808_v15 = vld [vmem:[#allocation26 + $0x8] sm:$0xff]  ;;  %vm3329_vm3 = vcmask 64512   ;;  %s4580_s15 = sshll.u32 %s6119_s11, 4  ;;  %s4581_s15 = int_to_ptr.vmem [resolvable:$true] %s4580_s15 }
 0x1fa   :  { %v1521_v21 = vrot.slane %v1480_v18, 1  ;;  %v1534_v22 = vsel %vm582_vm4, %v1533_v20, %v1515_v16  ;;  %5053 = vmatprep.subr.mxu0 %v1808_v15  ;;  %v1807_v16 = vld [vmem:[#allocation26] sm:$0xff]  ;;  %v1810_v17 = vld [vmem:[#allocation26 + $0x18] sm:$0xff]  ;;  %v1809_v18 = vld [vmem:[#allocation26 + $0x10] sm:$0xff]  ;;  %vm4572_vm4 = vcmask 58368   ;;  %s5992_s5 = scalar_lea.vmem %s4581_s15, 32  ;;  %p5997_p6 = scmp.lt.s32.totalorder %s4581_s15, %s4581_s15 }
 0x1fb   :  { %v1535_v23 = vsel %vm584_vm5, %v1534_v22, %v1518_v19  ;;  %5054 = vmatpush3.msra.mxu0 %v1808_v15  ;;  %5046 = vmatprep.subr.mxu1 %v1810_v17  ;;  %v6803_v15 = vld [vmem:[#allocation29 + $0x30] sm:$0xff]  ;;  %p5993_p5 = scmp.ne.s32.totalorder %s4581_s15, %s5992_s5  ;;  %p5998_p7 = scmp.lt.s32.totalorder %s5992_s5, %s5992_s5 }
 0x1fc   :  { %v1536_v24 = vsel %vm586_vm6, %v1535_v23, %v1521_v21  ;;  %5055 = vmatprep.subr.mxu0 %v1807_v16 }
 0x1fd   :  { %5039 = vmatmul.mubr.msk.f32.vlgmr.msra.gmra.mxu1 %vm703_vm7, %v1536_v24  ;;  %5056 = vmatpush3.msra.mxu0 %v1807_v16  ;;  %v6807_v16 = vld [vmem:[#allocation29 + $0x28] sm:$0xff]  ;;  %p5999_p8 = por %p5998_p7, %p5997_p6 }
 0x1fe   :  { %5047 = vmatpush3.msra.mxu1 %v1810_v17  ;;  %v6811_v17 = vld [vmem:[#allocation29 + $0x20] sm:$0xff] }
 0x1ff   :  { %5048 = vmatprep.subr.mxu1 %v1809_v18  ;;  %p6000_p9 = pnand %p5999_p8, %p5993_p5 }
 0x200   :  { %5049 = vmatpush3.msra.mxu1 %v1809_v18 }
 0x273   :  { %v5005_v25 = vpop.f32.mrf.mxu0 }
 0x275   :  { %v776_v7 = vpop.f32.mrf.mxu0 }
 0x27b   :  { %v5012_v26 = vpop.f32.mrf.mxu1 }
 0x27c   :  { %v863_v30 = vadd.f32 %v5012_v26, %v5005_v25 }
 0x27d   :  { %v857_v28 = vpop.f32.mrf.mxu1 }
 0x27e   :  { %v858_v32 = vadd.f32 %v857_v28, %v776_v7 }
 0x294   :  { %v5019_v27 = vpop.f32.mrf.mxu0 }
 0x295   :  { %v1054_v33 = vadd.f32 %v5019_v27, %v863_v30 }
 0x296   :  { %v1044_v31 = vpop.f32.mrf.mxu0 }
 0x297   :  { %v1053_v36 = vadd.f32 %v1044_v31, %v858_v32  ;;  %v4838_v32 = vld [vmem:[#allocation20] ss:$0 sm:$0xff] }
 0x29c   :  { %v5026_v34 = vpop.f32.mrf.mxu1 }
 0x29d   :  { %v1243_v38 = vadd.f32 %v5026_v34, %v1054_v33  ;;  %v4839_v34 = vld [vmem:[#allocation20 + $0x1] ss:$0 sm:$0xff] }
 0x29e   :  { %v1233_v39 = vpop.f32.mrf.mxu1 }
 0x29f   :  { %v1242_v40 = vadd.f32 %v1233_v39, %v1053_v36 }
 0x2b4   :  { %v5033_v37 = vpop.f32.mrf.mxu0 }
 0x2b5   :  { %v1432_v42 = vadd.f32 %v5033_v37, %v1243_v38  ;;  %v4844_v38 = vld [vmem:[#allocation25] ss:$0 sm:$0xff] }
 0x2b6   :  { %v1422_v41 = vpop.f32.mrf.mxu0 }
 0x2b7   :  { %v1431_v43 = vadd.f32 %v1422_v41, %v1242_v40 }
 0x2b8   :  { %v5045_v45 = vpop.f32.mrf.mxu0 }
 0x2b9   :  { %v1764_v50 = vadd.f32 %v5045_v45, %v4840_v46 }
 0x2ba   :  { %v1758_v52 = vpop.f32.mrf.mxu0 }
 0x2bb   :  { %v1759_v54 = vadd.f32 %v4840_v46, %v1758_v52  ;;  %v1772_v56 = vsel %vm703_vm7, %v1764_v50, 0.0 }
 0x2bd   :  { %v5040_v44 = vpop.f32.mrf.mxu1  ;;  %v1769_v58 = vsel %vm703_vm7, %v1759_v54, 0.0 }
 0x2be   :  { %v1621_v29 = vadd.f32 %v5040_v44, %v1432_v42 }
 0x2bf   :  { %v1611_v48 = vpop.f32.mrf.mxu1 }
 0x2c0   :  { %v1620_v49 = vadd.f32 %v1611_v48, %v1431_v43  ;;  %v1630_v51 = vadd.f32 %v4837_v47, %v1621_v29  ;;  %v4845_v43 = vld [vmem:[#allocation25 + $0x1] ss:$0 sm:$0xff] }
 0x2c2   :  { %v1636_v53 = vsel %vm703_vm7, %v1630_v51, 0.0  ;;  %v1629_v35 = vadd.f32 %v4837_v47, %v1620_v49 }
 0x2c3   :  { %1637 = vadd.xlane.f32.xlu1 %v1636_v53  ;;  %v4850_v53 = vld [vmem:[#allocation28] ss:$0 sm:$0xff] }
 0x2c4   :  { %v1633_v55 = vsel %vm703_vm7, %v1629_v35, 0.0 }
 0x2c5   :  { %1634 = vadd.xlane.f32.xlu0 %v1633_v55 }
 0x2c7   :  { %1773 = vadd.xlane.f32.xlu1 %v1772_v56 }
 0x2c9   :  { %1770 = vadd.xlane.f32.xlu0 %v1769_v58 }
 0x34c   :  { %v1638_v59 = vpop.xlane.xlu1 %1637 }
 0x34d   :  { %v1641_v60 = vmul.f32 0.0625, %v1638_v59 }
 0x34e   :  { %v1635_v61 = vpop.xlane.xlu0 %1634 }
 0x34f   :  { %v1640_v62 = vmul.f32 0.0625, %v1635_v61  ;;  %v1643_v0 = vsub.f32 %v1630_v51, %v1641_v60 }
 0x350   :  { %v1774_v63 = vpop.xlane.xlu1 %1773 }
 0x351   :  { %v1642_v1 = vsub.f32 %v1629_v35, %v1640_v62  ;;  %v1776_v2 = vmul.f32 0.0625, %v1774_v63  ;;  %v1645_v10 = vmul.f32 %v1643_v0, %v1643_v0 }
 0x352   :  { %v1771_v3 = vpop.xlane.xlu0 %1770 }
 0x353   :  { %v1775_v4 = vmul.f32 0.0625, %v1771_v3  ;;  %v1644_v5 = vmul.f32 %v1642_v1, %v1642_v1  ;;  %v1778_v6 = vsub.f32 %v1764_v50, %v1776_v2  ;;  %v1649_v57 = vsel %vm703_vm7, %v1645_v10, 0.0  ;;  %v6779_v10 = vld [vmem:[#allocation29 + $0x60] sm:$0xff] }
 0x355   :  { %v1777_v8 = vsub.f32 %v1759_v54, %v1775_v4  ;;  %v1646_v9 = vsel %vm703_vm7, %v1644_v5, 0.0  ;;  %v1780_v13 = vmul.f32 %v1778_v6, %v1778_v6 }
 0x356   :  { %1647 = vadd.xlane.f32.xlu0 %v1646_v9  ;;  %v6776_v9 = vld [vmem:[#allocation29 + $0x68] sm:$0xff] }
 0x357   :  { %v1779_v11 = vmul.f32 %v1777_v8, %v1777_v8  ;;  %v1784_v14 = vsel %vm703_vm7, %v1780_v13, 0.0  ;;  %v6795_v13 = vld [vmem:[#allocation29 + $0x40] sm:$0xff] }
 0x359   :  { %v1781_v12 = vsel %vm703_vm7, %v1779_v11, 0.0  ;;  %v6783_v11 = vld [vmem:[#allocation29 + $0x58] sm:$0xff] }
 0x35a   :  { %1650 = vadd.xlane.f32.xlu0 %v1649_v57  ;;  %1782 = vadd.xlane.f32.xlu1 %v1781_v12  ;;  %v6787_v57 = vld [vmem:[#allocation29 + $0x50] sm:$0xff]  ;;  %v6791_v12 = vld [vmem:[#allocation29 + $0x48] sm:$0xff] }
 0x35e   :  { %1785 = vadd.xlane.f32.xlu1 %v1784_v14  ;;  %v6799_v14 = vld [vmem:[#allocation29 + $0x38] sm:$0xff] }
 0x3df   :  { %v1648_v19 = vpop.xlane.xlu0 %1647 }
 0x3e0   :  { %v1652_v20 = vmul.f32 0.0625, %v1648_v19  ;;  %v6815_v19 = vld [vmem:[#allocation29 + $0x18] sm:$0xff] }
 0x3e2   :  { %v1654_v21 = vadd.f32 1e-06, %v1652_v20  ;;  %v6820_v20 = vld [vmem:[#allocation29 + $0x10] sm:$0xff] }
 0x3e3   :  { %v1783_v22 = vpop.xlane.xlu1 %1782  ;;  %v1651_v23 = vpop.xlane.xlu0 %1650 }
 0x3e4   :  { %5256 = vrsqrt.f32 %v1654_v21  ;;  %v1787_v24 = vmul.f32 0.0625, %v1783_v22  ;;  %v1653_v25 = vmul.f32 0.0625, %v1651_v23  ;;  %v6823_v21 = vld [vmem:[#allocation29 + $0x8] sm:$0xff]  ;;  %v6833_v22 = vld [vmem:[#allocation29] sm:$0xff]  ;;  %v6111_v23 = vmov 0.0  }
 0x3e6   :  { %v1789_v7 = vadd.f32 1e-06, %v1787_v24  ;;  %v1655_v26 = vadd.f32 1e-06, %v1653_v25 }
 0x3e7   :  { %v1786_v27 = vpop.xlane.xlu1 %1785 }
 0x3e8   :  { %5258 = vrsqrt.f32 %v1789_v7  ;;  %v1788_v28 = vmul.f32 0.0625, %v1786_v27 }
 0x3e9   :  { %5260 = vrsqrt.f32 %v1655_v26 }
 0x3ea   :  { %v1790_v30 = vadd.f32 1e-06, %v1788_v28  ;;  %v6862_v28 = vld [vmem:[#allocation31] ss:$0 sm:$0xff] }
 0x3ec   :  { %5262 = vrsqrt.f32 %v1790_v30 }
 0x3f1   :  { %v5257_v31 = vpop.eup %5256 }
 0x3f2   :  { %v1658_v33 = vmul.f32 %v5257_v31, %v1642_v1 }
 0x3f4   :  { %v1664_v36 = vmul.f32 %v4838_v32, %v1658_v33 }
 0x3f5   :  { %v5259_v37 = vpop.eup %5258 }
 0x3f6   :  { %v5261_v39 = vpop.eup %5260  ;;  %v1670_v40 = vadd.f32 %v4839_v34, %v1664_v36  ;;  %v1793_v41 = vmul.f32 %v5259_v37, %v1777_v8  ;;  %v6774_v8 = vld [vmem:[#allocation29 + $0x70] sm:$0xff] }
 0x3f7   :  { %v1659_v42 = vmul.f32 %v5261_v39, %v1643_v0 }
 0x3f8   :  { %5057 = vmatprep.mubr.msk.f32.mxu0 %vm703_vm7, %v1670_v40  ;;  %v1799_v44 = vmul.f32 %v4844_v38, %v1793_v41 }
 0x3f9   :  { %v5263_v45 = vpop.eup %5262  ;;  %v1665_v46 = vmul.f32 %v4838_v32, %v1659_v42 }
 0x3fa   :  { %v1794_v47 = vmul.f32 %v5263_v45, %v1778_v6  ;;  %v1805_v29 = vadd.f32 %v4845_v43, %v1799_v44  ;;  %v6772_v6 = vld [vmem:[#allocation29 + $0x78] sm:$0xff] }
 0x3fb   :  { %v1671_v48 = vadd.f32 %v4839_v34, %v1665_v46  ;;  %2049 = vmatprep.subr.mxu1 %v6772_v6  ;;  %2196 = vmatprep.subr.mxu0 %v6772_v6 }
 0x3fc   :  { %v1800_v49 = vmul.f32 %v4844_v38, %v1794_v47  ;;  %5050 = vmatprep.mubr.msk.f32.mxu1 %vm703_vm7, %v1805_v29 }
 0x3fd   :  { %5058 = vmatmul.mubr.msk.f32.vlgmr.msra.gmra.mxu0 %vm703_vm7, %v1671_v48 }
 0x3fe   :  { %v1806_v50 = vadd.f32 %v4845_v43, %v1800_v49  ;;  %2197 = vmatpush1.msra.mxu0 %v6774_v8  ;;  %2244 = vmatprep.mubr.f32.mxu0 %v6111_v23 }
 0x3ff   :  { %2198 = vmatprep.subr.mxu0 %v6776_v9 }
 0x400   :  { %5051 = vmatmul.mubr.msk.f32.vlgmr.msra.gmra.mxu1 %vm703_vm7, %v1806_v50  ;;  %2199 = vmatpush1.msra.mxu0 %v6779_v10 }
 0x401   :  { %2050 = vmatpush1.msra.mxu1 %v6774_v8  ;;  %2200 = vmatprep.subr.mxu0 %v6783_v11 }
 0x402   :  { %2051 = vmatprep.subr.mxu1 %v6776_v9  ;;  %2201 = vmatpush1.msra.mxu0 %v6787_v57 }
 0x403   :  { %2052 = vmatpush1.msra.mxu1 %v6779_v10  ;;  %2202 = vmatprep.subr.mxu0 %v6791_v12 }
 0x404   :  { %2053 = vmatprep.subr.mxu1 %v6783_v11  ;;  %2203 = vmatpush1.msra.mxu0 %v6795_v13 }
 0x405   :  { %2054 = vmatpush1.msra.mxu1 %v6787_v57  ;;  %2204 = vmatprep.subr.mxu0 %v6799_v14 }
 0x406   :  { %2055 = vmatprep.subr.mxu1 %v6791_v12  ;;  %2205 = vmatpush1.msra.mxu0 %v6803_v15 }
 0x407   :  { %2056 = vmatpush1.msra.mxu1 %v6795_v13  ;;  %2206 = vmatprep.subr.mxu0 %v6807_v16 }
 0x408   :  { %2057 = vmatprep.subr.mxu1 %v6799_v14  ;;  %2207 = vmatpush1.msra.mxu0 %v6811_v17 }
 0x409   :  { %2058 = vmatpush1.msra.mxu1 %v6803_v15  ;;  %2208 = vmatprep.subr.mxu0 %v6815_v19 }
 0x40a   :  { %2059 = vmatprep.subr.mxu1 %v6807_v16  ;;  %2209 = vmatpush1.msra.mxu0 %v6820_v20 }
 0x40b   :  { %2060 = vmatpush1.msra.mxu1 %v6811_v17  ;;  %2210 = vmatprep.subr.mxu0 %v6823_v21 }
 0x40c   :  { %2061 = vmatprep.subr.mxu1 %v6815_v19  ;;  %2097 = vmatprep.mubr.f32.mxu1 %v6111_v23 }
 0x40d   :  { %2062 = vmatpush1.msra.mxu1 %v6820_v20  ;;  %2211 = vmatpush1.msra.mxu0 %v6833_v22 }
 0x40e   :  { %2063 = vmatprep.subr.mxu1 %v6823_v21  ;;  %2478 = vmatprep.subr.mxu0 %v6772_v6 }
 0x40f   :  { %2064 = vmatpush1.msra.mxu1 %v6833_v22 }
 0x410   :  { %2337 = vmatprep.subr.mxu1 %v6772_v6 }
 0x4bd   :  { %v5059_v51 = vpop.f32.mrf.mxu0 }
 0x4bf   :  { %v1964_v54 = vpop.f32.mrf.mxu0 }
 0x4c0   :  { %v5052_v52 = vpop.f32.mrf.mxu1 }
 0x4c1   :  { %v1970_v35 = vadd.f32 %v5059_v51, %v5052_v52 }
 0x4c2   :  { %v1883_v55 = vpop.f32.mrf.mxu1 }
 0x4c3   :  { %v6757_v56 = vadd.f32 %v4850_v53, %v1970_v35  ;;  %v1965_v58 = vadd.f32 %v1964_v54, %v1883_v55 }
 0x4c5   :  { %v6759_v59 = vadd.f32 %v4850_v53, %v1965_v58 }
 0x4c7   :  { %5264 = vtanh.f32 %v6759_v59  ;;  %v4851_v61 = vmul.f32 -1.442695, %v6759_v59 }
 0x4c9   :  { %5266 = vpow2.f32 %v4851_v61 }
 0x4d4   :  { %v5265_v60 = vpop.eup %5264 }
 0x4d5   :  { %2008 = vrot.lane.b32.xlu0 %v5265_v60, %s6110_s29 }
 0x4d6   :  { %v5267_v62 = vpop.eup %5266 }
 0x4d7   :  { %v2002_v63 = vadd.f32 1.0, %v5267_v62 }
 0x4d9   :  { %5268 = vrcp.f32 %v2002_v63 }
 0x4e6   :  { %v6764_v0 = vpop.eup %5268 }
 0x4e7   :  { %v2006_v3 = vmul.f32 0.0, %v6764_v0 }
 0x547   :  { %v2009_v1 = vpop.permute.xlu0 %2008 }
 0x548   :  { %v2011_v2 = vmul.f32 %v6764_v0, %v2009_v1 }
 0x54a   :  { %2013 = vrot.lane.b32.xlu1 %v2011_v2, %s6110_s29 }
 0x5bc   :  { %v2014_v4 = vpop.permute.xlu1 %2013 }
 0x5bd   :  { %v6769_v5 = vadd.f32 %v2014_v4, %v2006_v3 }
 0x5bf   :  { %5270 = vtanh.f32 %v6769_v5  ;;  %v2147_v48 = vrot.slane %v6769_v5, 6 }
 0x5cc   :  { %v5271_v18 = vpop.eup %5270 }
 0x5cd   :  { %2019 = vrot.lane.b32.xlu1 %v5271_v18, %s6110_s29 }
 0x63f   :  { %v2020_v24 = vpop.permute.xlu1 %2019 }
 0x640   :  { %v2022_v25 = vmul.f32 %v6764_v0, %v2020_v24 }
 0x642   :  { %2024 = vrot.lane.b32.xlu1 %v2022_v25, %s6112_s12 }
 0x6b4   :  { %v2025_v7 = vpop.permute.xlu1 %2024 }
 0x6b5   :  { %v2028_v26 = vsel %vm2027_vm9, %v2025_v7, 0.0 }
 0x6b6   :  { %4852 = vmatmul.mubr.msk.f32.vlgmr.msra.gmra.mxu1 %vm2029_vm10, %v2028_v26 }
 0x6b7   :  { %2338 = vmatpush1.msra.mxu1 %v6774_v8  ;;  %2385 = vmatprep.mubr.f32.mxu1 %v6111_v23 }
 0x6b8   :  { %2339 = vmatprep.subr.mxu1 %v6776_v9 }
 0x6b9   :  { %2340 = vmatpush1.msra.mxu1 %v6779_v10 }
 0x6ba   :  { %2341 = vmatprep.subr.mxu1 %v6783_v11 }
 0x6bb   :  { %2342 = vmatpush1.msra.mxu1 %v6787_v57 }
 0x6bc   :  { %2343 = vmatprep.subr.mxu1 %v6791_v12 }
 0x6bd   :  { %2344 = vmatpush1.msra.mxu1 %v6795_v13 }
 0x6be   :  { %2345 = vmatprep.subr.mxu1 %v6799_v14 }
 0x6bf   :  { %2346 = vmatpush1.msra.mxu1 %v6803_v15 }
 0x6c0   :  { %2347 = vmatprep.subr.mxu1 %v6807_v16 }
 0x6c1   :  { %2348 = vmatpush1.msra.mxu1 %v6811_v17 }
 0x6c2   :  { %2349 = vmatprep.subr.mxu1 %v6815_v19 }
 0x6c3   :  { %2350 = vmatpush1.msra.mxu1 %v6820_v20 }
 0x6c4   :  { %2351 = vmatprep.subr.mxu1 %v6823_v21 }
 0x6c5   :  { %2352 = vmatpush1.msra.mxu1 %v6833_v22 }
 0x6c6   :  { %2614 = vmatprep.subr.mxu1 %v6772_v6 }
 0x776   :  { %v2099_v27 = vpop.f32.mrf.mxu1 }
 0x777   :  { %v2136_v30 = vrot.slane %v2099_v27, 6 }
 0x778   :  { %v2101_v31 = vpop.f32.mrf.mxu1 }
 0x779   :  { %v2138_v32 = vadd.f32 %v2136_v30, %v6759_v59  ;;  %v2110_v33 = vadd.f32 %v6862_v28, %v2101_v31 }
 0x77b   :  { %5272 = vtanh.f32 %v2138_v32  ;;  %v4855_v37 = vmul.f32 -1.442695, %v2138_v32  ;;  %v4854_v38 = vmul.f32 -1.442695, %v2110_v33 }
 0x77c   :  { %5274 = vtanh.f32 %v2110_v33 }
 0x77d   :  { %5276 = vpow2.f32 %v4855_v37 }
 0x77e   :  { %5278 = vpow2.f32 %v4854_v38 }
 0x788   :  { %v5273_v34 = vpop.eup %5272 }
 0x789   :  { %v5275_v36 = vpop.eup %5274  ;;  %2151 = vrot.lane.b32.xlu1 %v5273_v34, %s6110_s29 }
 0x78a   :  { %2120 = vrot.lane.b32.xlu0 %v5275_v36, %s6110_s29  ;;  %v5277_v39 = vpop.eup %5276 }
 0x78b   :  { %v5279_v40 = vpop.eup %5278  ;;  %v2142_v41 = vadd.f32 1.0, %v5277_v39 }
 0x78c   :  { %v2114_v42 = vadd.f32 1.0, %v5279_v40 }
 0x78d   :  { %5280 = vrcp.f32 %v2142_v41 }
 0x78e   :  { %5282 = vrcp.f32 %v2114_v42 }
 0x79a   :  { %v5281_v43 = vpop.eup %5280 }
 0x79b   :  { %v5283_v45 = vpop.eup %5282  ;;  %v2149_v49 = vmul.f32 %v5281_v43, %v2147_v48 }
 0x79c   :  { %v2118_v51 = vmul.f32 0.0, %v5283_v45 }
 0x7fb   :  { %v2152_v44 = vpop.permute.xlu1 %2151 }
 0x7fc   :  { %v2154_v46 = vmul.f32 %v5281_v43, %v2152_v44  ;;  %v2121_v47 = vpop.permute.xlu0 %2120 }
 0x7fd   :  { %v2123_v29 = vmul.f32 %v5283_v45, %v2121_v47 }
 0x7fe   :  { %2156 = vrot.lane.b32.xlu1 %v2154_v46, %s6110_s29 }
 0x7ff   :  { %2125 = vrot.lane.b32.xlu0 %v2123_v29, %s6110_s29 }
 0x870   :  { %v2157_v50 = vpop.permute.xlu1 %2156 }
 0x871   :  { %v6871_v52 = vadd.f32 %v2157_v50, %v2149_v49  ;;  %v2126_v53 = vpop.permute.xlu0 %2125 }
 0x872   :  { %v6873_v35 = vadd.f32 %v2126_v53, %v2118_v51 }
 0x873   :  { %5284 = vtanh.f32 %v6871_v52  ;;  %v2288_v42 = vrot.slane %v6871_v52, 6 }
 0x874   :  { %5286 = vtanh.f32 %v6873_v35 }
 0x880   :  { %v5285_v54 = vpop.eup %5284 }
 0x881   :  { %v5287_v55 = vpop.eup %5286  ;;  %2162 = vrot.lane.b32.xlu1 %v5285_v54, %s6110_s29 }
 0x882   :  { %2131 = vrot.lane.b32.xlu0 %v5287_v55, %s6110_s29 }
 0x8f3   :  { %v2163_v58 = vpop.permute.xlu1 %2162 }
 0x8f4   :  { %v2165_v60 = vmul.f32 %v5281_v43, %v2163_v58  ;;  %v2132_v61 = vpop.permute.xlu0 %2131 }
 0x8f5   :  { %v6879_v62 = vmul.f32 %v5283_v45, %v2132_v61 }
 0x8f6   :  { %2167 = vrot.lane.b32.xlu0 %v2165_v60, %s6112_s12 }
 0x8f7   :  { %v2171_v63 = vrot.slane %v6879_v62, 6 }
 0x8f9   :  { %2172 = vrot.lane.b32.xlu1 %v2171_v63, %s6113_s19 }
 0x968   :  { %v2168_v0 = vpop.permute.xlu0 %2167 }
 0x96b   :  { %v2173_v1 = vpop.permute.xlu1 %2172 }
 0x96c   :  { %v2175_v2 = vsel %vm2027_vm9, %v2168_v0, %v2173_v1 }
 0x96d   :  { %v2177_v3 = vrot.slane %v2175_v2, 2 }
 0x96f   :  { %4856 = vmatmul.mubr.msk.f32.vlgmr.msra.gmra.mxu0 %vm2029_vm10, %v2177_v3 }
 0x970   :  { %2479 = vmatpush1.msra.mxu0 %v6774_v8  ;;  %2526 = vmatprep.mubr.f32.mxu0 %v6111_v23 }
 0x971   :  { %2480 = vmatprep.subr.mxu0 %v6776_v9 }
 0x972   :  { %2481 = vmatpush1.msra.mxu0 %v6779_v10 }
 0x973   :  { %2482 = vmatprep.subr.mxu0 %v6783_v11 }
 0x974   :  { %2483 = vmatpush1.msra.mxu0 %v6787_v57 }
 0x975   :  { %2484 = vmatprep.subr.mxu0 %v6791_v12 }
 0x976   :  { %2485 = vmatpush1.msra.mxu0 %v6795_v13 }
 0x977   :  { %2486 = vmatprep.subr.mxu0 %v6799_v14 }
 0x978   :  { %2487 = vmatpush1.msra.mxu0 %v6803_v15 }
 0x979   :  { %2488 = vmatprep.subr.mxu0 %v6807_v16 }
 0x97a   :  { %2489 = vmatpush1.msra.mxu0 %v6811_v17 }
 0x97b   :  { %2490 = vmatprep.subr.mxu0 %v6815_v19 }
 0x97c   :  { %2491 = vmatpush1.msra.mxu0 %v6820_v20 }
 0x97d   :  { %2492 = vmatprep.subr.mxu0 %v6823_v21 }
 0x97e   :  { %2493 = vmatpush1.msra.mxu0 %v6833_v22 }
 0x97f   :  { %2755 = vmatprep.subr.mxu0 %v6772_v6 }
 0xa2f   :  { %v2246_v4 = vpop.f32.mrf.mxu0 }
 0xa30   :  { %v2277_v5 = vrot.slane %v2246_v4, 4 }
 0xa31   :  { %v2248_v18 = vpop.f32.mrf.mxu0 }
 0xa32   :  { %v2279_v24 = vadd.f32 %v2277_v5, %v6759_v59  ;;  %v2251_v25 = vadd.f32 %v6862_v28, %v2248_v18 }
 0xa34   :  { %5288 = vtanh.f32 %v2279_v24  ;;  %v4858_v27 = vmul.f32 -1.442695, %v2279_v24  ;;  %v4857_v30 = vmul.f32 -1.442695, %v2251_v25 }
 0xa35   :  { %5290 = vtanh.f32 %v2251_v25 }
 0xa36   :  { %5292 = vpow2.f32 %v4858_v27 }
 0xa37   :  { %5294 = vpow2.f32 %v4857_v30 }
 0xa41   :  { %v5289_v7 = vpop.eup %5288 }
 0xa42   :  { %v5291_v26 = vpop.eup %5290  ;;  %2292 = vrot.lane.b32.xlu1 %v5289_v7, %s6110_s29 }
 0xa43   :  { %2261 = vrot.lane.b32.xlu0 %v5291_v26, %s6110_s29  ;;  %v5293_v31 = vpop.eup %5292 }
 0xa44   :  { %v5295_v32 = vpop.eup %5294  ;;  %v2283_v33 = vadd.f32 1.0, %v5293_v31 }
 0xa45   :  { %v2255_v34 = vadd.f32 1.0, %v5295_v32 }
 0xa46   :  { %5296 = vrcp.f32 %v2283_v33 }
 0xa47   :  { %5298 = vrcp.f32 %v2255_v34 }
 0xa53   :  { %v5297_v36 = vpop.eup %5296 }
 0xa54   :  { %v5299_v38 = vpop.eup %5298  ;;  %v2290_v43 = vmul.f32 %v5297_v36, %v2288_v42 }
 0xa55   :  { %v2259_v45 = vmul.f32 %v5299_v38, %v6873_v35 }
 0xab4   :  { %v2293_v37 = vpop.permute.xlu1 %2292 }
 0xab5   :  { %v2295_v39 = vmul.f32 %v5297_v36, %v2293_v37  ;;  %v2262_v40 = vpop.permute.xlu0 %2261 }
 0xab6   :  { %v2264_v41 = vmul.f32 %v5299_v38, %v2262_v40 }
 0xab7   :  { %2297 = vrot.lane.b32.xlu1 %v2295_v39, %s6110_s29 }
 0xab8   :  { %2266 = vrot.lane.b32.xlu0 %v2264_v41, %s6110_s29 }
 0xb29   :  { %v2298_v44 = vpop.permute.xlu1 %2297 }
 0xb2a   :  { %v6911_v46 = vadd.f32 %v2298_v44, %v2290_v43  ;;  %v2267_v47 = vpop.permute.xlu0 %2266 }
 0xb2b   :  { %v6913_v29 = vadd.f32 %v2267_v47, %v2259_v45 }
 0xb2c   :  { %5300 = vtanh.f32 %v6911_v46  ;;  %v2429_v34 = vrot.slane %v6911_v46, 6 }
 0xb2d   :  { %5302 = vtanh.f32 %v6913_v29 }
 0xb39   :  { %v5301_v48 = vpop.eup %5300 }
 0xb3a   :  { %v5303_v49 = vpop.eup %5302  ;;  %2303 = vrot.lane.b32.xlu1 %v5301_v48, %s6110_s29  ;;  %v3137_v48 = vrot.slane %v6879_v62, 1 }
 0xb3b   :  { %2272 = vrot.lane.b32.xlu0 %v5303_v49, %s6110_s29 }
 0xbac   :  { %v2304_v50 = vpop.permute.xlu1 %2303 }
 0xbad   :  { %v2306_v51 = vmul.f32 %v5297_v36, %v2304_v50  ;;  %v2273_v52 = vpop.permute.xlu0 %2272 }
 0xbae   :  { %v6919_v53 = vmul.f32 %v5299_v38, %v2273_v52 }
 0xbaf   :  { %2308 = vrot.lane.b32.xlu0 %v2306_v51, %s6112_s12 }
 0xbb0   :  { %v2312_v35 = vrot.slane %v6919_v53, 4  ;;  %v3116_v45 = vrot.slane %v6919_v53, 7 }
 0xbb2   :  { %2313 = vrot.lane.b32.xlu1 %v2312_v35, %s6113_s19  ;;  %v3118_v52 = vsel %vm3117_vm11, %v3116_v45, %v6879_v62  ;;  %v3138_v35 = vsel %vm3117_vm11, %v6919_v53, %v3137_v48 }
 0xc21   :  { %v2309_v54 = vpop.permute.xlu0 %2308 }
 0xc24   :  { %v2314_v55 = vpop.permute.xlu1 %2313 }
 0xc25   :  { %v2316_v58 = vsel %vm2027_vm9, %v2309_v54, %v2314_v55 }
 0xc26   :  { %v2318_v60 = vrot.slane %v2316_v58, 4 }
 0xc28   :  { %4859 = vmatmul.mubr.msk.f32.vlgmr.msra.gmra.mxu1 %vm2029_vm10, %v2318_v60 }
 0xc29   :  { %2615 = vmatpush1.msra.mxu1 %v6774_v8  ;;  %2662 = vmatprep.mubr.f32.mxu1 %v6111_v23 }
 0xc2a   :  { %2616 = vmatprep.subr.mxu1 %v6776_v9 }
 0xc2b   :  { %2617 = vmatpush1.msra.mxu1 %v6779_v10 }
 0xc2c   :  { %2618 = vmatprep.subr.mxu1 %v6783_v11 }
 0xc2d   :  { %2619 = vmatpush1.msra.mxu1 %v6787_v57 }
 0xc2e   :  { %2620 = vmatprep.subr.mxu1 %v6791_v12 }
 0xc2f   :  { %2621 = vmatpush1.msra.mxu1 %v6795_v13 }
 0xc30   :  { %2622 = vmatprep.subr.mxu1 %v6799_v14 }
 0xc31   :  { %2623 = vmatpush1.msra.mxu1 %v6803_v15 }
 0xc32   :  { %2624 = vmatprep.subr.mxu1 %v6807_v16 }
 0xc33   :  { %2625 = vmatpush1.msra.mxu1 %v6811_v17 }
 0xc34   :  { %2626 = vmatprep.subr.mxu1 %v6815_v19 }
 0xc35   :  { %2627 = vmatpush1.msra.mxu1 %v6820_v20 }
 0xc36   :  { %2628 = vmatprep.subr.mxu1 %v6823_v21 }
 0xc37   :  { %2629 = vmatpush1.msra.mxu1 %v6833_v22 }
 0xc38   :  { %2896 = vmatprep.subr.mxu1 %v6772_v6 }
 0xce8   :  { %v2387_v61 = vpop.f32.mrf.mxu1 }
 0xce9   :  { %v2418_v63 = vrot.slane %v2387_v61, 2 }
 0xcea   :  { %v2389_v0 = vpop.f32.mrf.mxu1 }
 0xceb   :  { %v2420_v1 = vadd.f32 %v2418_v63, %v6759_v59  ;;  %v2392_v2 = vadd.f32 %v6862_v28, %v2389_v0 }
 0xced   :  { %5304 = vtanh.f32 %v2420_v1  ;;  %v4861_v5 = vmul.f32 -1.442695, %v2420_v1  ;;  %v4860_v18 = vmul.f32 -1.442695, %v2392_v2 }
 0xcee   :  { %5306 = vtanh.f32 %v2392_v2 }
 0xcef   :  { %5308 = vpow2.f32 %v4861_v5 }
 0xcf0   :  { %5310 = vpow2.f32 %v4860_v18 }
 0xcfa   :  { %v5305_v3 = vpop.eup %5304 }
 0xcfb   :  { %v5307_v4 = vpop.eup %5306  ;;  %2433 = vrot.lane.b32.xlu1 %v5305_v3, %s6110_s29 }
 0xcfc   :  { %2402 = vrot.lane.b32.xlu0 %v5307_v4, %s6110_s29  ;;  %v5309_v24 = vpop.eup %5308 }
 0xcfd   :  { %v5311_v25 = vpop.eup %5310  ;;  %v2424_v7 = vadd.f32 1.0, %v5309_v24 }
 0xcfe   :  { %v2396_v26 = vadd.f32 1.0, %v5311_v25 }
 0xcff   :  { %5312 = vrcp.f32 %v2424_v7 }
 0xd00   :  { %5314 = vrcp.f32 %v2396_v26 }
 0xd0c   :  { %v5313_v59 = vpop.eup %5312 }
 0xd0d   :  { %v5315_v30 = vpop.eup %5314  ;;  %v2431_v36 = vmul.f32 %v5313_v59, %v2429_v34 }
 0xd0e   :  { %v2400_v38 = vmul.f32 %v5315_v30, %v6913_v29 }
 0xd6d   :  { %v2434_v27 = vpop.permute.xlu1 %2433 }
 0xd6e   :  { %v2436_v31 = vmul.f32 %v5313_v59, %v2434_v27  ;;  %v2403_v32 = vpop.permute.xlu0 %2402 }
 0xd6f   :  { %v2405_v33 = vmul.f32 %v5315_v30, %v2403_v32 }
 0xd70   :  { %2438 = vrot.lane.b32.xlu1 %v2436_v31, %s6110_s29 }
 0xd71   :  { %2407 = vrot.lane.b32.xlu0 %v2405_v33, %s6110_s29 }
 0xde2   :  { %v2439_v37 = vpop.permute.xlu1 %2438 }
 0xde3   :  { %v6951_v39 = vadd.f32 %v2439_v37, %v2431_v36  ;;  %v2408_v40 = vpop.permute.xlu0 %2407 }
 0xde4   :  { %v6953_v41 = vadd.f32 %v2408_v40, %v2400_v38 }
 0xde5   :  { %5316 = vtanh.f32 %v6951_v39  ;;  %v2567_v33 = vrot.slane %v6951_v39, 6 }
 0xde6   :  { %5318 = vtanh.f32 %v6953_v41 }
 0xdf2   :  { %v5317_v42 = vpop.eup %5316 }
 0xdf3   :  { %v5319_v43 = vpop.eup %5318  ;;  %2444 = vrot.lane.b32.xlu1 %v5317_v42, %s6110_s29 }
 0xdf4   :  { %2413 = vrot.lane.b32.xlu0 %v5319_v43, %s6110_s29 }
 0xe65   :  { %v2445_v44 = vpop.permute.xlu1 %2444 }
 0xe66   :  { %v2447_v46 = vmul.f32 %v5313_v59, %v2445_v44  ;;  %v2414_v47 = vpop.permute.xlu0 %2413 }
 0xe67   :  { %v2416_v29 = vmul.f32 %v5315_v30, %v2414_v47 }
 0xe68   :  { %2449 = vrot.lane.b32.xlu0 %v2447_v46, %s6112_s12 }
 0xe69   :  { %v3119_v49 = vrot.slane %v2416_v29, 6  ;;  %v3139_v50 = vrot.slane %v2416_v29, 7  ;;  %v2453_v51 = vrot.slane %v2416_v29, 2 }
 0xe6b   :  { %v6966_v54 = vsel %vm3120_vm12, %v3119_v49, %v3118_v52  ;;  %v6968_v55 = vsel %vm3120_vm12, %v3139_v50, %v3138_v35  ;;  %2454 = vrot.lane.b32.xlu1 %v2453_v51, %s6113_s19 }
 0xeda   :  { %v2450_v58 = vpop.permute.xlu0 %2449 }
 0xedd   :  { %v2455_v60 = vpop.permute.xlu1 %2454 }
 0xede   :  { %v2457_v61 = vsel %vm2027_vm9, %v2450_v58, %v2455_v60 }
 0xedf   :  { %v2459_v63 = vrot.slane %v2457_v61, 6 }
 0xee1   :  { %4862 = vmatmul.mubr.msk.f32.vlgmr.msra.gmra.mxu0 %vm2029_vm10, %v2459_v63 }
 0xee2   :  { %2756 = vmatpush1.msra.mxu0 %v6774_v8  ;;  %2803 = vmatprep.mubr.f32.mxu0 %v6111_v23 }
 0xee3   :  { %2757 = vmatprep.subr.mxu0 %v6776_v9 }
 0xee4   :  { %2758 = vmatpush1.msra.mxu0 %v6779_v10 }
 0xee5   :  { %2759 = vmatprep.subr.mxu0 %v6783_v11 }
 0xee6   :  { %2760 = vmatpush1.msra.mxu0 %v6787_v57 }
 0xee7   :  { %2761 = vmatprep.subr.mxu0 %v6791_v12 }
 0xee8   :  { %2762 = vmatpush1.msra.mxu0 %v6795_v13 }
 0xee9   :  { %2763 = vmatprep.subr.mxu0 %v6799_v14 }
 0xeea   :  { %2764 = vmatpush1.msra.mxu0 %v6803_v15 }
 0xeeb   :  { %2765 = vmatprep.subr.mxu0 %v6807_v16 }
 0xeec   :  { %2766 = vmatpush1.msra.mxu0 %v6811_v17 }
 0xeed   :  { %2767 = vmatprep.subr.mxu0 %v6815_v19 }
 0xeee   :  { %2768 = vmatpush1.msra.mxu0 %v6820_v20 }
 0xeef   :  { %2769 = vmatprep.subr.mxu0 %v6823_v21 }
 0xef0   :  { %2770 = vmatpush1.msra.mxu0 %v6833_v22 }
 0xef1   :  { %5060 = vmatprep.subr.mxu0 %v6111_v23 }
 0xfa1   :  { %v2528_v62 = vpop.f32.mrf.mxu0 }
 0xfa2   :  { %v2558_v53 = vadd.f32 %v2528_v62, %v6757_v56 }
 0xfa3   :  { %v2530_v0 = vpop.f32.mrf.mxu0 }
 0xfa4   :  { %5320 = vtanh.f32 %v2558_v53  ;;  %v2533_v1 = vadd.f32 %v6862_v28, %v2530_v0  ;;  %v4864_v4 = vmul.f32 -1.442695, %v2558_v53 }
 0xfa6   :  { %5322 = vtanh.f32 %v2533_v1  ;;  %v4863_v5 = vmul.f32 -1.442695, %v2533_v1 }
 0xfa7   :  { %5324 = vpow2.f32 %v4864_v4 }
 0xfa8   :  { %5326 = vpow2.f32 %v4863_v5 }
 0xfb1   :  { %v5321_v2 = vpop.eup %5320 }
 0xfb2   :  { %2571 = vrot.lane.b32.xlu1 %v5321_v2, %s6110_s29 }
 0xfb3   :  { %v5323_v3 = vpop.eup %5322 }
 0xfb4   :  { %2543 = vrot.lane.b32.xlu0 %v5323_v3, %s6110_s29  ;;  %v5325_v18 = vpop.eup %5324 }
 0xfb5   :  { %v5327_v24 = vpop.eup %5326  ;;  %v2562_v25 = vadd.f32 1.0, %v5325_v18 }
 0xfb6   :  { %v2537_v7 = vadd.f32 1.0, %v5327_v24 }
 0xfb7   :  { %5328 = vrcp.f32 %v2562_v25 }
 0xfb8   :  { %5330 = vrcp.f32 %v2537_v7 }
 0xfc4   :  { %v5329_v26 = vpop.eup %5328 }
 0xfc5   :  { %v5331_v30 = vpop.eup %5330  ;;  %v2569_v34 = vmul.f32 %v5329_v26, %v2567_v33 }
 0xfc6   :  { %v2541_v38 = vmul.f32 %v5331_v30, %v6953_v41 }
0x1024   :  { %v2572_v59 = vpop.permute.xlu1 %2571 }
0x1025   :  { %v2574_v27 = vmul.f32 %v5329_v26, %v2572_v59 }
0x1026   :  { %v2544_v31 = vpop.permute.xlu0 %2543 }
0x1027   :  { %2576 = vrot.lane.b32.xlu1 %v2574_v27, %s6110_s29  ;;  %v2546_v32 = vmul.f32 %v5331_v30, %v2544_v31 }
0x1029   :  { %2548 = vrot.lane.b32.xlu0 %v2546_v32, %s6110_s29 }
0x1099   :  { %v2577_v36 = vpop.permute.xlu1 %2576 }
0x109a   :  { %v6997_v37 = vadd.f32 %v2577_v36, %v2569_v34 }
0x109b   :  { %v2549_v40 = vpop.permute.xlu0 %2548 }
0x109c   :  { %5332 = vtanh.f32 %v6997_v37  ;;  %v7001_v42 = vadd.f32 %v2549_v40, %v2541_v38  ;;  %v2706_v2 = vrot.slane %v6997_v37, 6 }
0x109e   :  { %5334 = vtanh.f32 %v7001_v42 }
0x10a9   :  { %v5333_v43 = vpop.eup %5332 }
0x10aa   :  { %2582 = vrot.lane.b32.xlu1 %v5333_v43, %s6110_s29 }
0x10ab   :  { %v5335_v44 = vpop.eup %5334 }
0x10ac   :  { %2554 = vrot.lane.b32.xlu0 %v5335_v44, %s6110_s29 }
0x111c   :  { %v2583_v39 = vpop.permute.xlu1 %2582 }
0x111d   :  { %v2585_v45 = vmul.f32 %v5329_v26, %v2583_v39 }
0x111e   :  { %v2555_v46 = vpop.permute.xlu0 %2554 }
0x111f   :  { %2587 = vrot.lane.b32.xlu0 %v2585_v45, %s6112_s12  ;;  %v2557_v47 = vmul.f32 %v5331_v30, %v2555_v46 }
0x1121   :  { %v3122_v41 = vrot.slane %v2557_v47, 5  ;;  %v3141_v29 = vrot.slane %v2557_v47, 6  ;;  %2591 = vrot.lane.b32.xlu1 %v2557_v47, %s6113_s19 }
0x1123   :  { %v7009_v48 = vsel %vm3123_vm13, %v3122_v41, %v6966_v54  ;;  %v7012_v49 = vsel %vm3123_vm13, %v3141_v29, %v6968_v55 }
0x1191   :  { %v2588_v50 = vpop.permute.xlu0 %2587 }
0x1193   :  { %v2592_v51 = vpop.permute.xlu1 %2591 }
0x1194   :  { %v2594_v52 = vsel %vm2027_vm9, %v2588_v50, %v2592_v51 }
0x1195   :  { %4865 = vmatmul.mubr.msk.f32.vlgmr.msra.gmra.mxu1 %vm2029_vm10, %v2594_v52 }
0x1196   :  { %2897 = vmatpush1.msra.mxu1 %v6774_v8  ;;  %2944 = vmatprep.mubr.f32.mxu1 %v6111_v23 }
0x1197   :  { %2898 = vmatprep.subr.mxu1 %v6776_v9 }
0x1198   :  { %2899 = vmatpush1.msra.mxu1 %v6779_v10 }
0x1199   :  { %2900 = vmatprep.subr.mxu1 %v6783_v11 }
0x119a   :  { %2901 = vmatpush1.msra.mxu1 %v6787_v57 }
0x119b   :  { %2902 = vmatprep.subr.mxu1 %v6791_v12 }
0x119c   :  { %2903 = vmatpush1.msra.mxu1 %v6795_v13 }
0x119d   :  { %2904 = vmatprep.subr.mxu1 %v6799_v14 }
0x119e   :  { %2905 = vmatpush1.msra.mxu1 %v6803_v15 }
0x119f   :  { %2906 = vmatprep.subr.mxu1 %v6807_v16 }
0x11a0   :  { %2907 = vmatpush1.msra.mxu1 %v6811_v17 }
0x11a1   :  { %2908 = vmatprep.subr.mxu1 %v6815_v19 }
0x11a2   :  { %2909 = vmatpush1.msra.mxu1 %v6820_v20 }
0x11a3   :  { %2910 = vmatprep.subr.mxu1 %v6823_v21 }
0x11a4   :  { %2911 = vmatpush1.msra.mxu1 %v6833_v22 }
0x1255   :  { %v2664_v8 = vpop.f32.mrf.mxu1 }
0x1256   :  { %v2695_v10 = vrot.slane %v2664_v8, 6 }
0x1257   :  { %v2666_v57 = vpop.f32.mrf.mxu1 }
0x1258   :  { %v2697_v13 = vadd.f32 %v2695_v10, %v6757_v56  ;;  %v2669_v35 = vadd.f32 %v6862_v28, %v2666_v57 }
0x125a   :  { %5336 = vtanh.f32 %v2697_v13  ;;  %v4867_v17 = vmul.f32 -1.442695, %v2697_v13  ;;  %v4866_v20 = vmul.f32 -1.442695, %v2669_v35 }
0x125b   :  { %5338 = vtanh.f32 %v2669_v35 }
0x125c   :  { %5340 = vpow2.f32 %v4867_v17 }
0x125d   :  { %5342 = vpow2.f32 %v4866_v20 }
0x1267   :  { %v5337_v15 = vpop.eup %5336 }
0x1268   :  { %v5339_v54 = vpop.eup %5338  ;;  %2710 = vrot.lane.b32.xlu1 %v5337_v15, %s6110_s29 }
0x1269   :  { %2679 = vrot.lane.b32.xlu0 %v5339_v54, %s6110_s29  ;;  %v5341_v22 = vpop.eup %5340 }
0x126a   :  { %v5343_v55 = vpop.eup %5342  ;;  %v2701_v58 = vadd.f32 1.0, %v5341_v22 }
0x126b   :  { %v2673_v60 = vadd.f32 1.0, %v5343_v55 }
0x126c   :  { %5344 = vrcp.f32 %v2701_v58 }
0x126d   :  { %5346 = vrcp.f32 %v2673_v60 }
0x1279   :  { %v5345_v61 = vpop.eup %5344 }
0x127a   :  { %v5347_v62 = vpop.eup %5346  ;;  %v2708_v3 = vmul.f32 %v5345_v61, %v2706_v2 }
0x127b   :  { %v2677_v5 = vmul.f32 %v5347_v62, %v7001_v42 }
0x12da   :  { %v2711_v63 = vpop.permute.xlu1 %2710 }
0x12db   :  { %v2713_v53 = vmul.f32 %v5345_v61, %v2711_v63  ;;  %v2680_v0 = vpop.permute.xlu0 %2679 }
0x12dc   :  { %v2682_v1 = vmul.f32 %v5347_v62, %v2680_v0 }
0x12dd   :  { %2715 = vrot.lane.b32.xlu1 %v2713_v53, %s6110_s29 }
0x12de   :  { %2684 = vrot.lane.b32.xlu0 %v2682_v1, %s6110_s29 }
0x134f   :  { %v2716_v4 = vpop.permute.xlu1 %2715 }
0x1350   :  { %v7040_v18 = vadd.f32 %v2716_v4, %v2708_v3  ;;  %v2685_v24 = vpop.permute.xlu0 %2684 }
0x1351   :  { %v7042_v25 = vadd.f32 %v2685_v24, %v2677_v5 }
0x1352   :  { %5348 = vtanh.f32 %v7040_v18  ;;  %v2847_v52 = vrot.slane %v7040_v18, 6 }
0x1353   :  { %5350 = vtanh.f32 %v7042_v25 }
0x135f   :  { %v5349_v7 = vpop.eup %5348 }
0x1360   :  { %v5351_v26 = vpop.eup %5350  ;;  %2721 = vrot.lane.b32.xlu1 %v5349_v7, %s6110_s29 }
0x1361   :  { %2690 = vrot.lane.b32.xlu0 %v5351_v26, %s6110_s29 }
0x13d2   :  { %v2722_v59 = vpop.permute.xlu1 %2721 }
0x13d3   :  { %v2724_v27 = vmul.f32 %v5345_v61, %v2722_v59  ;;  %v2691_v30 = vpop.permute.xlu0 %2690 }
0x13d4   :  { %v2693_v31 = vmul.f32 %v5347_v62, %v2691_v30 }
0x13d5   :  { %2726 = vrot.lane.b32.xlu0 %v2724_v27, %s6112_s12 }
0x13d6   :  { %v3125_v32 = vrot.slane %v2693_v31, 4  ;;  %v3143_v33 = vrot.slane %v2693_v31, 5  ;;  %v2730_v34 = vrot.slane %v2693_v31, 6 }
0x13d8   :  { %2731 = vrot.lane.b32.xlu1 %v2730_v34, %s6113_s19  ;;  %v7051_v36 = vsel %vm3126_vm14, %v3143_v33, %v7012_v49  ;;  %v7054_v37 = vsel %vm3126_vm14, %v3125_v32, %v7009_v48 }
0x1447   :  { %v2727_v38 = vpop.permute.xlu0 %2726 }
0x144a   :  { %v2732_v40 = vpop.permute.xlu1 %2731 }
0x144b   :  { %v2734_v42 = vsel %vm2027_vm9, %v2727_v38, %v2732_v40 }
0x144c   :  { %v2736_v43 = vrot.slane %v2734_v42, 2 }
0x144e   :  { %4868 = vmatmul.mubr.msk.f32.vlgmr.msra.gmra.mxu0 %vm2029_vm10, %v2736_v43 }
0x144f   :  { %5061 = vmatpush3.msra.mxu0 %v6772_v6  ;;  %5076 = vmatprep.mubr.msk.f32.mxu0 %vm6114_vm0, %v6111_v23 }
0x1450   :  { %5062 = vmatprep.subr.mxu0 %v6111_v23 }
0x1451   :  { %5063 = vmatpush3.msra.mxu0 %v6776_v9 }
0x1452   :  { %5064 = vmatprep.subr.mxu0 %v6111_v23 }
0x1453   :  { %5065 = vmatpush3.msra.mxu0 %v6783_v11 }
0x1454   :  { %5066 = vmatprep.subr.mxu0 %v6111_v23 }
0x1455   :  { %5067 = vmatpush3.msra.mxu0 %v6791_v12 }
0x1456   :  { %5068 = vmatprep.subr.mxu0 %v6111_v23 }
0x1457   :  { %5069 = vmatpush3.msra.mxu0 %v6799_v14 }
0x1458   :  { %5070 = vmatprep.subr.mxu0 %v6111_v23 }
0x1459   :  { %5071 = vmatpush3.msra.mxu0 %v6807_v16 }
0x145a   :  { %5072 = vmatprep.subr.mxu0 %v6111_v23 }
0x145b   :  { %5073 = vmatpush3.msra.mxu0 %v6815_v19 }
0x145c   :  { %5074 = vmatprep.subr.mxu0 %v6111_v23 }
0x145d   :  { %5075 = vmatpush3.msra.mxu0 %v6823_v21 }
0x145e   :  { %5090 = vmatprep.subr.mxu0 %v6111_v23 }
0x150e   :  { %v2805_v6 = vpop.f32.mrf.mxu0 }
0x150f   :  { %v2836_v9 = vrot.slane %v2805_v6, 4 }
0x1510   :  { %v2807_v11 = vpop.f32.mrf.mxu0 }
0x1511   :  { %v2838_v12 = vadd.f32 %v2836_v9, %v6757_v56  ;;  %v2810_v14 = vadd.f32 %v6862_v28, %v2807_v11 }
0x1513   :  { %5352 = vtanh.f32 %v2838_v12  ;;  %v4870_v19 = vmul.f32 -1.442695, %v2838_v12  ;;  %v4869_v39 = vmul.f32 -1.442695, %v2810_v14 }
0x1514   :  { %5354 = vtanh.f32 %v2810_v14 }
0x1515   :  { %5356 = vpow2.f32 %v4870_v19 }
0x1516   :  { %5358 = vpow2.f32 %v4869_v39 }
0x1520   :  { %v5353_v16 = vpop.eup %5352 }
0x1521   :  { %v5355_v44 = vpop.eup %5354  ;;  %2851 = vrot.lane.b32.xlu1 %v5353_v16, %s6110_s29 }
0x1522   :  { %2820 = vrot.lane.b32.xlu0 %v5355_v44, %s6110_s29  ;;  %v5357_v21 = vpop.eup %5356 }
0x1523   :  { %v5359_v45 = vpop.eup %5358  ;;  %v2842_v46 = vadd.f32 1.0, %v5357_v21 }
0x1524   :  { %v2814_v47 = vadd.f32 1.0, %v5359_v45 }
0x1525   :  { %5360 = vrcp.f32 %v2842_v46 }
0x1526   :  { %5362 = vrcp.f32 %v2814_v47 }
0x1532   :  { %v5361_v41 = vpop.eup %5360 }
0x1533   :  { %v5363_v48 = vpop.eup %5362  ;;  %v2849_v8 = vmul.f32 %v5361_v41, %v2847_v52 }
0x1534   :  { %v2818_v57 = vmul.f32 %v5363_v48, %v7042_v25 }
0x1593   :  { %v2852_v29 = vpop.permute.xlu1 %2851 }
0x1594   :  { %v2854_v49 = vmul.f32 %v5361_v41, %v2852_v29  ;;  %v2821_v50 = vpop.permute.xlu0 %2820 }
0x1595   :  { %v2823_v51 = vmul.f32 %v5363_v48, %v2821_v50 }
0x1596   :  { %2856 = vrot.lane.b32.xlu1 %v2854_v49, %s6110_s29 }
0x1597   :  { %2825 = vrot.lane.b32.xlu0 %v2823_v51, %s6110_s29 }
0x1608   :  { %v2857_v10 = vpop.permute.xlu1 %2856 }
0x1609   :  { %v2859_v13 = vadd.f32 %v2857_v10, %v2849_v8  ;;  %v2826_v35 = vpop.permute.xlu0 %2825 }
0x160a   :  { %v2828_v15 = vadd.f32 %v2826_v35, %v2818_v57 }
0x160b   :  { %5364 = vtanh.f32 %v2859_v13  ;;  %v2988_v40 = vrot.slane %v2859_v13, 6 }
0x160c   :  { %5366 = vtanh.f32 %v2828_v15 }
0x1618   :  { %v5365_v54 = vpop.eup %5364 }
0x1619   :  { %v5367_v17 = vpop.eup %5366  ;;  %2862 = vrot.lane.b32.xlu1 %v5365_v54, %s6110_s29 }
0x161a   :  { %2831 = vrot.lane.b32.xlu0 %v5367_v17, %s6110_s29 }
0x168b   :  { %v2863_v20 = vpop.permute.xlu1 %2862 }
0x168c   :  { %v2865_v22 = vmul.f32 %v5361_v41, %v2863_v20  ;;  %v2832_v55 = vpop.permute.xlu0 %2831 }
0x168d   :  { %v2834_v58 = vmul.f32 %v5363_v48, %v2832_v55 }
0x168e   :  { %2867 = vrot.lane.b32.xlu0 %v2865_v22, %s6112_s12 }
0x168f   :  { %v2871_v60 = vrot.slane %v2834_v58, 4  ;;  %v3128_v61 = vrot.slane %v2834_v58, 3  ;;  %v3153_v58 = vld [vmem:[#allocation32 + $0x10] sm:$0xff] }
0x1691   :  { %2872 = vrot.lane.b32.xlu1 %v2871_v60, %s6113_s19  ;;  %v3145_v63 = vsel %vm3129_vm15, %v2871_v60, %v7051_v36  ;;  %v3130_v62 = vsel %vm3129_vm15, %v3128_v61, %v7054_v37  ;;  %v3152_v60 = vld [vmem:[#allocation32 + $0x8] sm:$0xff]  ;;  %v3151_v61 = vld [vmem:[#allocation32] sm:$0xff] }
0x1700   :  { %v2868_v53 = vpop.permute.xlu0 %2867 }
0x1703   :  { %v2873_v0 = vpop.permute.xlu1 %2872 }
0x1704   :  { %v2875_v1 = vsel %vm2027_vm9, %v2868_v53, %v2873_v0 }
0x1705   :  { %v2877_v2 = vrot.slane %v2875_v1, 4 }
0x1707   :  { %4871 = vmatmul.mubr.msk.f32.vlgmr.msra.gmra.mxu1 %vm2029_vm10, %v2877_v2 }
0x17c7   :  { %v2946_v3 = vpop.f32.mrf.mxu1 }
0x17c8   :  { %v2977_v4 = vrot.slane %v2946_v3, 2 }
0x17c9   :  { %v2948_v5 = vpop.f32.mrf.mxu1 }
0x17ca   :  { %v2979_v18 = vadd.f32 %v2977_v4, %v6757_v56  ;;  %v2951_v24 = vadd.f32 %v6862_v28, %v2948_v5 }
0x17cc   :  { %5368 = vtanh.f32 %v2979_v18  ;;  %v4873_v26 = vmul.f32 -1.442695, %v2979_v18  ;;  %v4872_v59 = vmul.f32 -1.442695, %v2951_v24  ;;  %v4876_v18 = vld [vmem:[#allocation34] ss:$0 sm:$0xff] }
0x17cd   :  { %5370 = vtanh.f32 %v2951_v24 }
0x17ce   :  { %5372 = vpow2.f32 %v4873_v26 }
0x17cf   :  { %5374 = vpow2.f32 %v4872_v59 }
0x17d9   :  { %v5369_v25 = vpop.eup %5368 }
0x17da   :  { %v5371_v7 = vpop.eup %5370  ;;  %2992 = vrot.lane.b32.xlu1 %v5369_v25, %s6110_s29 }
0x17db   :  { %2961 = vrot.lane.b32.xlu0 %v5371_v7, %s6110_s29  ;;  %v5373_v27 = vpop.eup %5372 }
0x17dc   :  { %v5375_v30 = vpop.eup %5374  ;;  %v2983_v31 = vadd.f32 1.0, %v5373_v27 }
0x17dd   :  { %v2955_v32 = vadd.f32 1.0, %v5375_v30 }
0x17de   :  { %5376 = vrcp.f32 %v2983_v31  ;;  %v3248_v31 = vlaneseq }
0x17df   :  { %5378 = vrcp.f32 %v2955_v32  ;;  %v3245_v32 = vld [vmem:[#allocation16] sm:$0x1] }
0x17eb   :  { %v5377_v56 = vpop.eup %5376 }
0x17ec   :  { %v5379_v34 = vpop.eup %5378  ;;  %v2990_v42 = vmul.f32 %v5377_v56, %v2988_v40 }
0x17ed   :  { %v2959_v6 = vmul.f32 %v5379_v34, %v2828_v15 }
0x184c   :  { %v2993_v33 = vpop.permute.xlu1 %2992 }
0x184d   :  { %v2995_v36 = vmul.f32 %v5377_v56, %v2993_v33  ;;  %v2962_v37 = vpop.permute.xlu0 %2961  ;;  %v7145_v33 = vshrl.u32 %v3248_v31, 7 }
0x184e   :  { %v2964_v38 = vmul.f32 %v5379_v34, %v2962_v37 }
0x184f   :  { %2997 = vrot.lane.b32.xlu1 %v2995_v36, %s6110_s29  ;;  %v3250_v36 = vsub.s32 0, %v7145_v33 }
0x1850   :  { %2966 = vrot.lane.b32.xlu0 %v2964_v38, %s6110_s29 }
0x18c1   :  { %v2998_v43 = vpop.permute.xlu1 %2997 }
0x18c2   :  { %v3000_v9 = vadd.f32 %v2998_v43, %v2990_v42  ;;  %v2967_v11 = vpop.permute.xlu0 %2966 }
0x18c3   :  { %v2969_v12 = vadd.f32 %v2967_v11, %v2959_v6 }
0x18c4   :  { %5380 = vtanh.f32 %v3000_v9 }
0x18c5   :  { %5382 = vtanh.f32 %v2969_v12 }
0x18d1   :  { %v5381_v14 = vpop.eup %5380 }
0x18d2   :  { %v5383_v16 = vpop.eup %5382  ;;  %3003 = vrot.lane.b32.xlu1 %v5381_v14, %s6110_s29 }
0x18d3   :  { %2972 = vrot.lane.b32.xlu0 %v5383_v16, %s6110_s29 }
0x1944   :  { %v3004_v44 = vpop.permute.xlu1 %3003 }
0x1945   :  { %v3006_v19 = vmul.f32 %v5377_v56, %v3004_v44  ;;  %v2973_v39 = vpop.permute.xlu0 %2972  ;;  %v3246_v56 = vsub.f32 1.0, %v3245_v32 }
0x1946   :  { %v2975_v21 = vmul.f32 %v5379_v34, %v2973_v39 }
0x1947   :  { %3008 = vrot.lane.b32.xlu0 %v3006_v19, %s6112_s12  ;;  %v3247_v34 = vmul.f32 -10000.0, %v3246_v56 }
0x1948   :  { %v3012_v45 = vrot.slane %v2975_v21, 2  ;;  %v3146_v46 = vrot.slane %v2975_v21, 3 }
0x1949   :  { %v3251_v37 = vrot.slane %v3247_v34, %v3250_v36 }
0x194a   :  { %3013 = vrot.lane.b32.xlu1 %v3012_v45, %s6113_s19  ;;  %v3147_v47 = vsel %vm3131_vm1, %v3146_v46, %v3145_v63  ;;  %v3132_v41 = vsel %vm3131_vm1, %v3012_v45, %v3130_v62 }
0x19b9   :  { %v3009_v29 = vpop.permute.xlu0 %3008 }
0x19bc   :  { %v3014_v48 = vpop.permute.xlu1 %3013 }
0x19bd   :  { %v3016_v49 = vsel %vm2027_vm9, %v3009_v29, %v3014_v48 }
0x19be   :  { %v3018_v50 = vrot.slane %v3016_v49, 6 }
0x19c0   :  { %5077 = vmatmul.mubr.msk.f32.vlgmr.msra.gmra.mxu0 %vm2029_vm10, %v3018_v50 }
0x19c1   :  { %5092 = vmatprep.mubr.msk.f32.mxu0 %vm6114_vm0, %v6111_v23 }
0x1a80   :  { %v3087_v51 = vpop.f32.mrf.mxu0 }
0x1a81   :  { %v3088_v52 = vadd.f32 %v6862_v28, %v3087_v51  ;;  %v3154_v28 = vld [vmem:[#allocation32 + $0x18] sm:$0xff] }
0x1a82   :  { %v5078_v8 = vpop.f32.mrf.mxu0  ;;  %5079 = vmatprep.subr.mxu1 %v3154_v28 }
0x1a83   :  { %5384 = vtanh.f32 %v3088_v52  ;;  %v4875_v57 = vmul.f32 -1.442695, %v3088_v52  ;;  %5080 = vmatpush3.msra.mxu1 %v3154_v28 }
0x1a84   :  { %5081 = vmatprep.subr.mxu1 %v3153_v58 }
0x1a85   :  { %5386 = vpow2.f32 %v4875_v57  ;;  %5082 = vmatpush3.msra.mxu1 %v3153_v58  ;;  %v7167_v57 = vld [vmem:[#allocation35 + $0x8] sm:$0xff] }
0x1a86   :  { %5083 = vmatprep.subr.mxu1 %v3152_v60 }
0x1a87   :  { %5084 = vmatpush3.msra.mxu1 %v3152_v60  ;;  %v3732_v60 = vld [vmem:[#allocation16 + $0x1] sm:$0x1] }
0x1a88   :  { %5085 = vmatprep.subr.mxu1 %v3151_v61 }
0x1a89   :  { %5086 = vmatpush3.msra.mxu1 %v3151_v61  ;;  %v3733_v61 = vsub.f32 1.0, %v3732_v60 }
0x1a8a   :  { %5100 = vmatprep.subr.mxu1 %v6111_v23 }
0x1a90   :  { %v5385_v10 = vpop.eup %5384 }
0x1a91   :  { %3100 = vrot.lane.b32.xlu0 %v5385_v10, %s6110_s29 }
0x1a92   :  { %v5387_v13 = vpop.eup %5386 }
0x1a93   :  { %v3094_v35 = vadd.f32 1.0, %v5387_v13  ;;  %v7174_v13 = vld [vmem:[#allocation35] sm:$0xff] }
0x1a95   :  { %5388 = vrcp.f32 %v3094_v35  ;;  %v3585_v35 = vld [vmem:[#allocation35 + $0x18] sm:$0xff] }
0x1aa2   :  { %v5389_v15 = vpop.eup %5388 }
0x1aa3   :  { %v3098_v20 = vmul.f32 %v5389_v15, %v2969_v12 }
0x1b03   :  { %v3101_v54 = vpop.permute.xlu0 %3100 }
0x1b04   :  { %v3103_v17 = vmul.f32 %v5389_v15, %v3101_v54 }
0x1b06   :  { %3105 = vrot.lane.b32.xlu1 %v3103_v17, %s6110_s29 }
0x1b78   :  { %v3106_v22 = vpop.permute.xlu1 %3105 }
0x1b79   :  { %v3108_v55 = vadd.f32 %v3106_v22, %v3098_v20 }
0x1b7b   :  { %5390 = vtanh.f32 %v3108_v55 }
0x1b88   :  { %v5391_v63 = vpop.eup %5390 }
0x1b89   :  { %3111 = vrot.lane.b32.xlu0 %v5391_v63, %s6110_s29 }
0x1bfb   :  { %v3112_v62 = vpop.permute.xlu0 %3111 }
0x1bfc   :  { %v3114_v53 = vmul.f32 %v5389_v15, %v3112_v62  ;;  %v3584_v15 = vld [vmem:[#allocation35 + $0x10] sm:$0xff]  ;;  %v3734_v62 = vmul.f32 -10000.0, %v3733_v61 }
0x1bfe   :  { %v3133_v0 = vrot.slane %v3114_v53, 1  ;;  %v3148_v1 = vrot.slane %v3114_v53, 2 }
0x1c00   :  { %v7111_v2 = vsel %vm3134_vm2, %v3148_v1, %v3147_v47  ;;  %v7113_v3 = vsel %vm3134_vm2, %v3133_v0, %v3132_v41  ;;  %v3738_v1 = vrot.slane %v3734_v62, %v3250_v36 }
0x1c01   :  { %3164 = vrot.lane.b32.xlu0 %v7111_v2, %s6112_s12  ;;  %3162 = vrot.lane.b32.xlu1 %v7113_v3, %s6112_s12 }
0x1c73   :  { %v7119_v4 = vpop.permute.xlu0 %3164  ;;  %v7121_v5 = vpop.permute.xlu1 %3162 }
0x1c74   :  { %5087 = vmatprep.mubr.msk.f32.mxu1 %vm2027_vm9, %v7121_v5 }
0x1c75   :  { %5088 = vmatmul.mubr.msk.f32.vlgmr.msra.gmra.mxu1 %vm2027_vm9, %v7119_v4 }
0x1c76   :  { %5102 = vmatprep.mubr.msk.f32.mxu1 %vm6114_vm0, %v6111_v23 }
0x1d35   :  { %v5089_v24 = vpop.f32.mrf.mxu1 }
0x1d36   :  { %v7129_v25 = vadd.f32 %v5089_v24, %v4876_v18 }
0x1d37   :  { %v3236_v7 = vpop.f32.mrf.mxu1 }
0x1d38   :  { %v3237_v26 = vadd.f32 %v4876_v18, %v3236_v7 }
0x1d3a   :  { %3421 = vrot.lane.b32.xlu0 %v3237_v26, %s6115_s10  ;;  %3253 = vrot.lane.b32.xlu1 %v3237_v26, %s6113_s19 }
0x1d3e   :  { %3419 = vrot.lane.b32.xlu1 %v3237_v26, %s6116_s14 }
0x1dac   :  { %v3422_v59 = vpop.permute.xlu0 %3421  ;;  %v3254_v27 = vpop.permute.xlu1 %3253 }
0x1dad   :  { %5091 = vmatpush3.xpose.msk.msra.mxu0 %vm703_vm7, %v3254_v27  ;;  %5101 = vmatpush3.xpose.msk.msra.mxu1 %vm703_vm7, %v3422_v59 }
0x1dae   :  { %5095 = vmatprep.subr.mxu0 %v6111_v23  ;;  %5110 = vmatprep.subr.mxu1 %v6111_v23 }
0x1db0   :  { %5093 = vmatmul.mubr.msk.f32.vlgmr.msra.gmra.mxu0 %vm703_vm7, %v3237_v26  ;;  %v3420_v30 = vpop.permute.xlu1 %3419 }
0x1db1   :  { %5103 = vmatmul.mubr.msk.f32.vlgmr.msra.gmra.mxu1 %vm703_vm7, %v3420_v30  ;;  %5097 = vmatprep.mubr.msk.f32.mxu0 %vm6114_vm0, %v6111_v23 }
0x1db2   :  { %5114 = vmatprep.mubr.msk.f32.mxu1 %vm6114_vm0, %v6111_v23  ;;  %5111 = vmatpush3.msra.mxu1 %v3585_v35 }
0x1db3   :  { %5112 = vmatprep.subr.mxu1 %v6111_v23 }
0x1db4   :  { %5113 = vmatpush3.msra.mxu1 %v3584_v15 }
0x1db5   :  { %5124 = vmatprep.subr.mxu1 %v6111_v23 }
0x1e70   :  { %v3325_v38 = vpop.f32.mrf.mxu0 }
0x1e71   :  { %v3326_v40 = vadd.f32 %v3325_v38, %v3251_v37  ;;  %v3493_v42 = vpop.f32.mrf.mxu1 }
0x1e72   :  { %v3494_v43 = vadd.f32 %v3493_v42, %v3251_v37  ;;  %v5094_v6 = vpop.f32.mrf.mxu0  ;;  %v7204_v37 = vld [vmem:[#allocation37] ss:$0 sm:$0xff] }
0x1e73   :  { %v5104_v9 = vpop.f32.mrf.mxu1  ;;  %v3330_v11 = vsel %vm3329_vm3, %v3326_v40, -inf }
0x1e74   :  { %3331 = vmax.xlane.f32.xlu0 %v3330_v11  ;;  %v3497_v12 = vsel %vm3329_vm3, %v3494_v43, -inf }
0x1e75   :  { %3498 = vmax.xlane.f32.xlu1 %v3497_v12 }
0x1e86   :  { %3508 = vrot.lane.b32.xlu1 %v3237_v26, %s6117_s28 }
0x1e8a   :  { %3740 = vrot.lane.b32.xlu1 %v7129_v25, %s6113_s19 }
0x1e8e   :  { %3905 = vrot.lane.b32.xlu1 %v7129_v25, %s6115_s10 }
0x1efd   :  { %v3332_v14 = vpop.xlane.xlu0 %3331 }
0x1efe   :  { %v3333_v16 = vsub.f32 %v3326_v40, %v3332_v14  ;;  %v3499_v44 = vpop.xlane.xlu1 %3498 }
0x1eff   :  { %v3500_v19 = vsub.f32 %v3494_v43, %v3499_v44 }
0x1f00   :  { %v3334_v39 = vmul.f32 1.442695, %v3333_v16 }
0x1f01   :  { %v3501_v21 = vmul.f32 1.442695, %v3500_v19 }
0x1f02   :  { %5392 = vpow2.f32 %v3334_v39  ;;  %v3509_v52 = vpop.permute.xlu1 %3508 }
0x1f03   :  { %5394 = vpow2.f32 %v3501_v21 }
0x1f06   :  { %v3741_v20 = vpop.permute.xlu1 %3740 }
0x1f0a   :  { %v3906_v28 = vpop.permute.xlu1 %3905 }
0x1f0f   :  { %v5393_v45 = vpop.eup %5392 }
0x1f10   :  { %v3336_v46 = vsel %vm3329_vm3, %v5393_v45, 0.0  ;;  %v5395_v47 = vpop.eup %5394 }
0x1f11   :  { %3337 = vadd.xlane.f32.xlu0 %v3336_v46  ;;  %v3503_v41 = vsel %vm3329_vm3, %v5395_v47, 0.0 }
0x1f15   :  { %3504 = vadd.xlane.f32.xlu0 %v3503_v41 }
0x1f2b   :  { %3341 = vrot.lane.b32.xlu0 %v3237_v26, %s6112_s12 }
0x1f2f   :  { %3903 = vrot.lane.b32.xlu0 %v7129_v25, %s6116_s14 }
0x1f9a   :  { %v3338_v29 = vpop.xlane.xlu0 %3337 }
0x1f9b   :  { %5396 = vrcp.f32 %v3338_v29 }
0x1f9e   :  { %v3505_v48 = vpop.xlane.xlu0 %3504 }
0x1f9f   :  { %5398 = vrcp.f32 %v3505_v48 }
0x1fa2   :  { %v3342_v49 = vpop.permute.xlu0 %3341 }
0x1fa3   :  { %5096 = vmatpush3.msra.mxu0 %v3342_v49 }
0x1fa4   :  { %5105 = vmatprep.subr.mxu0 %v6111_v23 }
0x1fa6   :  { %v3904_v58 = vpop.permute.xlu0 %3903 }
0x1fa8   :  { %v5397_v50 = vpop.eup %5396 }
0x1fa9   :  { %v3340_v51 = vmul.f32 %v5397_v50, %v5393_v45 }
0x1fab   :  { %5098 = vmatmul.mubr.msk.f32.vlgmr.msra.gmra.mxu0 %vm3329_vm3, %v3340_v51 }
0x1fac   :  { %v5399_v8 = vpop.eup %5398  ;;  %5106 = vmatpush3.msra.mxu0 %v3509_v52  ;;  %5107 = vmatprep.mubr.msk.f32.mxu0 %vm6114_vm0, %v6111_v23 }
0x1fad   :  { %v3507_v10 = vmul.f32 %v5399_v8, %v5395_v47  ;;  %5117 = vmatprep.subr.mxu0 %v6111_v23 }
0x1faf   :  { %5108 = vmatmul.mubr.msk.f32.vlgmr.msra.gmra.mxu0 %vm3329_vm3, %v3507_v10 }
0x1fb0   :  { %5118 = vmatpush3.msra.mxu0 %v7167_v57  ;;  %5121 = vmatprep.mubr.msk.f32.mxu0 %vm6114_vm0, %v6111_v23 }
0x1fb1   :  { %5119 = vmatprep.subr.mxu0 %v6111_v23 }
0x1fb2   :  { %5120 = vmatpush3.msra.mxu0 %v7174_v13 }
0x1fb3   :  { %5129 = vmatprep.subr.mxu0 %v6111_v23 }
0x206b   :  { %v3413_v54 = vpop.f32.mrf.mxu0 }
0x206c   :  { %5122 = vmatmul.mubr.msk.f32.vlgmr.msra.gmra.mxu0 %vm703_vm7, %v3413_v54  ;;  %v4896_v54 = vld [vmem:[#allocation38] ss:$0 sm:$0xff] }
0x206d   :  { %v5099_v17 = vpop.f32.mrf.mxu0  ;;  %5131 = vmatprep.mubr.msk.f32.mxu0 %vm6114_vm0, %v6111_v23 }
0x206f   :  { %v3580_v22 = vpop.f32.mrf.mxu0 }
0x2070   :  { %5115 = vmatmul.mubr.msk.f32.vlgmr.msra.gmra.mxu1 %vm703_vm7, %v3580_v22  ;;  %v4897_v22 = vld [vmem:[#allocation38 + $0x1] ss:$0 sm:$0xff] }
0x2071   :  { %5125 = vmatpush3.xpose.msk.msra.mxu1 %vm703_vm7, %v3741_v20  ;;  %v5109_v55 = vpop.f32.mrf.mxu0  ;;  %5126 = vmatprep.mubr.msk.f32.mxu1 %vm6114_vm0, %v6111_v23 }
0x2072   :  { %5134 = vmatprep.subr.mxu1 %v6111_v23 }
0x2074   :  { %5127 = vmatmul.mubr.msk.f32.vlgmr.msra.gmra.mxu1 %vm703_vm7, %v7129_v25 }
0x2075   :  { %5135 = vmatpush3.xpose.msk.msra.mxu1 %vm703_vm7, %v3906_v28  ;;  %5136 = vmatprep.mubr.msk.f32.mxu1 %vm6114_vm0, %v6111_v23 }
0x2076   :  { %5144 = vmatprep.subr.mxu1 %v6111_v23 }
0x2078   :  { %5137 = vmatmul.mubr.msk.f32.vlgmr.msra.gmra.mxu1 %vm703_vm7, %v3904_v58 }
0x2079   :  { %5145 = vmatpush3.msra.mxu1 %v3585_v35  ;;  %5148 = vmatprep.mubr.msk.f32.mxu1 %vm6114_vm0, %v6111_v23 }
0x207a   :  { %5146 = vmatprep.subr.mxu1 %v6111_v23 }
0x207b   :  { %5147 = vmatpush3.msra.mxu1 %v3584_v15 }
0x212c   :  { %v3728_v63 = vpop.f32.mrf.mxu0 }
0x212e   :  { %v5123_v53 = vpop.f32.mrf.mxu0 }
0x2130   :  { %v3655_v0 = vpop.f32.mrf.mxu1 }
0x2131   :  { %v3729_v34 = vadd.f32 %v3728_v63, %v3655_v0 }
0x2132   :  { %v5116_v18 = vpop.f32.mrf.mxu1 }
0x2133   :  { %v4221_v36 = vadd.f32 %v7204_v37, %v3729_v34 }
0x2134   :  { %v3812_v24 = vpop.f32.mrf.mxu1 }
0x2135   :  { %v3813_v7 = vadd.f32 %v3812_v24, %v3738_v1  ;;  %v4225_v38 = vadd.f32 %v4221_v36, %v7121_v5 }
0x2136   :  { %v5128_v26 = vpop.f32.mrf.mxu1 }
0x2137   :  { %v3816_v59 = vsel %vm3329_vm3, %v3813_v7, -inf  ;;  %v4229_v40 = vsel %vm2027_vm9, %v4225_v38, 0.0 }
0x2138   :  { %3817 = vmax.xlane.f32.xlu1 %v3816_v59  ;;  %v3977_v27 = vpop.f32.mrf.mxu1  ;;  %v4271_v59 = vld [vmem:[#allocation40 + $0x18] sm:$0xff] }
0x2139   :  { %v3978_v30 = vadd.f32 %v3977_v27, %v3738_v1  ;;  %5158 = vmatprep.subr.mxu1 %v4271_v59  ;;  %v4270_v27 = vld [vmem:[#allocation40 + $0x10] sm:$0xff] }
0x213a   :  { %v5138_v32 = vpop.f32.mrf.mxu1 }
0x213b   :  { %v3981_v56 = vsel %vm3329_vm3, %v3978_v30, -inf  ;;  %v4268_v32 = vld [vmem:[#allocation40] sm:$0xff] }
0x213c   :  { %3982 = vmax.xlane.f32.xlu0 %v3981_v56 }
0x2149   :  { %3827 = vrot.lane.b32.xlu1 %v7129_v25, %s6112_s12 }
0x216d   :  { %4230 = vadd.xlane.f32.xlu1 %v4229_v40 }
0x21c1   :  { %v3818_v42 = vpop.xlane.xlu1 %3817 }
0x21c2   :  { %v3819_v43 = vsub.f32 %v3813_v7, %v3818_v42  ;;  %v4381_v42 = vld [vmem:[#allocation43 + $0x18] sm:$0xff] }
0x21c4   :  { %v3820_v6 = vmul.f32 1.442695, %v3819_v43  ;;  %v4380_v43 = vld [vmem:[#allocation43 + $0x10] sm:$0xff] }
0x21c5   :  { %v3828_v9 = vpop.permute.xlu1 %3827  ;;  %v3983_v11 = vpop.xlane.xlu0 %3982 }
0x21c6   :  { %5400 = vpow2.f32 %v3820_v6  ;;  %v3984_v12 = vsub.f32 %v3978_v30, %v3983_v11  ;;  %5130 = vmatpush3.msra.mxu0 %v3828_v9  ;;  %v4269_v30 = vld [vmem:[#allocation40 + $0x8] sm:$0xff]  ;;  %v4898_v11 = vld [vmem:[#allocation41] ss:$0 sm:$0xff] }
0x21c7   :  { %5139 = vmatprep.subr.mxu0 %v6111_v23  ;;  %v4379_v6 = vld [vmem:[#allocation43 + $0x8] sm:$0xff]  ;;  %v4378_v9 = vld [vmem:[#allocation43] sm:$0xff] }
0x21c8   :  { %v3985_v14 = vmul.f32 1.442695, %v3984_v12 }
0x21ca   :  { %5402 = vpow2.f32 %v3985_v14 }
0x21d3   :  { %v5401_v16 = vpop.eup %5400 }
0x21d4   :  { %v3822_v44 = vsel %vm3329_vm3, %v5401_v16, 0.0 }
0x21d5   :  { %3823 = vadd.xlane.f32.xlu0 %v3822_v44 }
0x21d7   :  { %v5403_v5 = vpop.eup %5402 }
0x21d8   :  { %v3987_v19 = vsel %vm3329_vm3, %v5403_v5, 0.0 }
0x21d9   :  { %3988 = vadd.xlane.f32.xlu0 %v3987_v19 }
0x21ef   :  { %3992 = vrot.lane.b32.xlu0 %v7129_v25, %s6117_s28 }
0x21f6   :  { %v4231_v39 = vpop.xlane.xlu1 %4230 }
0x21f7   :  { %v4236_v21 = vmul.f32 0.03125, %v4231_v39 }
0x21f9   :  { %v4238_v45 = vsub.f32 %v4225_v38, %v4236_v21 }
0x21fb   :  { %v4240_v46 = vmul.f32 %v4238_v45, %v4238_v45 }
0x21fd   :  { %v4242_v47 = vsel %vm2027_vm9, %v4240_v46, 0.0 }
0x21fe   :  { %4243 = vadd.xlane.f32.xlu1 %v4242_v47 }
0x225e   :  { %v3824_v41 = vpop.xlane.xlu0 %3823 }
0x225f   :  { %5404 = vrcp.f32 %v3824_v41 }
0x2262   :  { %v3989_v29 = vpop.xlane.xlu0 %3988 }
0x2263   :  { %5406 = vrcp.f32 %v3989_v29 }
0x2266   :  { %v3993_v50 = vpop.permute.xlu0 %3992 }
0x226c   :  { %v5405_v48 = vpop.eup %5404 }
0x226d   :  { %v3826_v49 = vmul.f32 %v5405_v48, %v5401_v16 }
0x226f   :  { %5132 = vmatmul.mubr.msk.f32.vlgmr.msra.gmra.mxu0 %vm3329_vm3, %v3826_v49 }
0x2270   :  { %v5407_v51 = vpop.eup %5406  ;;  %5140 = vmatpush3.msra.mxu0 %v3993_v50  ;;  %5141 = vmatprep.mubr.msk.f32.mxu0 %vm6114_vm0, %v6111_v23 }
0x2271   :  { %v3991_v25 = vmul.f32 %v5407_v51, %v5403_v5  ;;  %5151 = vmatprep.subr.mxu0 %v6111_v23 }
0x2273   :  { %5142 = vmatmul.mubr.msk.f32.vlgmr.msra.gmra.mxu0 %vm3329_vm3, %v3991_v25 }
0x2274   :  { %5152 = vmatpush3.msra.mxu0 %v7167_v57  ;;  %5155 = vmatprep.mubr.msk.f32.mxu0 %vm6114_vm0, %v6111_v23 }
0x2275   :  { %5153 = vmatprep.subr.mxu0 %v6111_v23 }
0x2276   :  { %5154 = vmatpush3.msra.mxu0 %v7174_v13 }
0x2277   :  { %5169 = vmatprep.subr.mxu0 %v4381_v42 }
0x2287   :  { %v4244_v52 = vpop.xlane.xlu1 %4243 }
0x2288   :  { %v4248_v8 = vmul.f32 0.03125, %v4244_v52 }
0x228a   :  { %v4250_v10 = vadd.f32 1e-12, %v4248_v8 }
0x228c   :  { %5408 = vrsqrt.f32 %v4250_v10 }
0x2299   :  { %v5409_v35 = vpop.eup %5408 }
0x229a   :  { %v4254_v15 = vmul.f32 %v5409_v35, %v4238_v45 }
0x229c   :  { %v4260_v20 = vmul.f32 %v4896_v54, %v4254_v15  ;;  %v4901_v15 = vld [vmem:[#allocation44] ss:$0 sm:$0xff] }
0x229e   :  { %v7226_v28 = vadd.f32 %v4897_v22, %v4260_v20 }
0x232f   :  { %v3899_v17 = vpop.f32.mrf.mxu0 }
0x2330   :  { %5156 = vmatmul.mubr.msk.f32.vlgmr.msra.gmra.mxu0 %vm703_vm7, %v3899_v17 }
0x2331   :  { %v5133_v57 = vpop.f32.mrf.mxu0  ;;  %5170 = vmatpush3.msra.mxu0 %v4381_v42 }
0x2332   :  { %5171 = vmatprep.subr.mxu0 %v4380_v43 }
0x2333   :  { %v4064_v55 = vpop.f32.mrf.mxu0  ;;  %5172 = vmatpush3.msra.mxu0 %v4380_v43 }
0x2334   :  { %5149 = vmatmul.mubr.msk.f32.vlgmr.msra.gmra.mxu1 %vm703_vm7, %v4064_v55  ;;  %5173 = vmatprep.subr.mxu0 %v4379_v6 }
0x2335   :  { %v5143_v23 = vpop.f32.mrf.mxu0  ;;  %5166 = vmatprep.mubr.msk.f32.mxu1 %vm2027_vm9, %v7226_v28  ;;  %5159 = vmatpush3.msra.mxu1 %v4271_v59 }
0x2336   :  { %5160 = vmatprep.subr.mxu1 %v4270_v27  ;;  %5174 = vmatpush3.msra.mxu0 %v4379_v6 }
0x2337   :  { %5161 = vmatpush3.msra.mxu1 %v4270_v27  ;;  %5175 = vmatprep.subr.mxu0 %v4378_v9  ;;  %v6118_v27 = vmov 0  }
0x2338   :  { %5162 = vmatprep.subr.mxu1 %v4269_v30  ;;  %5176 = vmatpush3.msra.mxu0 %v4378_v9 }
0x2339   :  { %5163 = vmatpush3.msra.mxu1 %v4269_v30  ;;  %5254 = vset.pattern.permute.xlu1 %v6118_v27 }
0x233a   :  { %5164 = vmatprep.subr.mxu1 %v4268_v32  ;;  %5255 = vset.pattern.permute.xlu0 %v6118_v27 }
0x233b   :  { %5165 = vmatpush3.msra.mxu1 %v4268_v32 }
0x23f0   :  { %v4210_v13 = vpop.f32.mrf.mxu0 }
0x23f2   :  { %v5157_v58 = vpop.f32.mrf.mxu0 }
0x23f3   :  { %v4907_v58 = vld [vmem:[#allocation47 + $0x1] ss:$0 sm:$0xff] }
0x23f4   :  { %v4137_v60 = vpop.f32.mrf.mxu1 }
0x23f5   :  { %v4211_v61 = vadd.f32 %v4210_v13, %v4137_v60 }
0x23f6   :  { %v5150_v63 = vpop.f32.mrf.mxu1 }
0x23f7   :  { %v4222_v62 = vadd.f32 %v7204_v37, %v4211_v61 }
0x23f9   :  { %v4226_v53 = vadd.f32 %v4222_v62, %v7119_v4 }
0x23fb   :  { %v4232_v0 = vsel %vm2027_vm9, %v4226_v53, 0.0 }
0x23fc   :  { %4233 = vadd.xlane.f32.xlu0 %v4232_v0 }
0x2485   :  { %v4234_v1 = vpop.xlane.xlu0 %4233 }
0x2486   :  { %v4237_v18 = vmul.f32 0.03125, %v4234_v1 }
0x2488   :  { %v4239_v24 = vsub.f32 %v4226_v53, %v4237_v18 }
0x248a   :  { %v4241_v7 = vmul.f32 %v4239_v24, %v4239_v24 }
0x248c   :  { %v4245_v26 = vsel %vm2027_vm9, %v4241_v7, 0.0 }
0x248d   :  { %4246 = vadd.xlane.f32.xlu0 %v4245_v26 }
0x2516   :  { %v4247_v4 = vpop.xlane.xlu0 %4246 }
0x2517   :  { %v4249_v56 = vmul.f32 0.03125, %v4247_v4 }
0x2519   :  { %v4251_v34 = vadd.f32 1e-12, %v4249_v56 }
0x251b   :  { %5410 = vrsqrt.f32 %v4251_v34 }
0x2528   :  { %v5411_v37 = vpop.eup %5410 }
0x2529   :  { %v4255_v36 = vmul.f32 %v5411_v37, %v4239_v24 }
0x252b   :  { %v4261_v38 = vmul.f32 %v4896_v54, %v4255_v36  ;;  %v4904_v36 = vld [vmem:[#allocation46] ss:$0 sm:$0xff] }
0x252d   :  { %v4267_v40 = vadd.f32 %v4897_v22, %v4261_v38 }
0x252f   :  { %5167 = vmatmul.mubr.msk.f32.vlgmr.msra.gmra.mxu1 %vm2027_vm9, %v4267_v40 }
0x25ef   :  { %v5168_v12 = vpop.f32.mrf.mxu1 }
0x25f0   :  { %v4357_v14 = vadd.f32 %v5168_v12, %v4898_v11 }
0x25f1   :  { %v4351_v16 = vpop.f32.mrf.mxu1 }
0x25f2   :  { %v4363_v44 = vmul.f32 0.044715, %v4357_v14  ;;  %v4352_v5 = vadd.f32 %v4898_v11, %v4351_v16  ;;  %v4361_v8 = vmul.f32 0.5, %v4357_v14 }
0x25f4   :  { %v4365_v19 = vmul.f32 %v4363_v44, %v4357_v14  ;;  %v4362_v39 = vmul.f32 0.044715, %v4352_v5  ;;  %v4360_v25 = vmul.f32 0.5, %v4352_v5 }
0x25f6   :  { %v4367_v21 = vmul.f32 %v4365_v19, %v4357_v14  ;;  %v4364_v45 = vmul.f32 %v4362_v39, %v4352_v5 }
0x25f8   :  { %v4369_v46 = vadd.f32 %v4367_v21, %v4357_v14  ;;  %v4366_v47 = vmul.f32 %v4364_v45, %v4352_v5 }
0x25fa   :  { %v4371_v41 = vmul.f32 0.7978846, %v4369_v46  ;;  %v4368_v29 = vadd.f32 %v4366_v47, %v4352_v5  ;;  %v4908_v46 = vld [vmem:[#allocation4] ss:$0 sm:$0xff]  ;;  %v4561_v47 = vand.u32 127, %v3248_v31 }
0x25fc   :  { %5412 = vtanh.f32 %v4371_v41  ;;  %v4370_v48 = vmul.f32 0.7978846, %v4368_v29  ;;  %v4564_v29 = vsub.s32 %v4561_v47, %v7145_v33 }
0x25fe   :  { %5414 = vtanh.f32 %v4370_v48 }
0x2609   :  { %v5413_v49 = vpop.eup %5412 }
0x260a   :  { %v4375_v51 = vadd.f32 1.0, %v5413_v49 }
0x260b   :  { %v5415_v50 = vpop.eup %5414 }
0x260c   :  { %v4374_v52 = vadd.f32 1.0, %v5415_v50  ;;  %v4377_v35 = vmul.f32 %v4375_v51, %v4361_v8 }
0x260e   :  { %v4376_v10 = vmul.f32 %v4374_v52, %v4360_v25 }
0x2610   :  { %5177 = vmatprep.mubr.msk.f32.mxu0 %vm2027_vm9, %v4376_v10 }
0x2611   :  { %5178 = vmatmul.mubr.msk.f32.vlgmr.msra.gmra.mxu0 %vm2027_vm9, %v4377_v35 }
0x26d1   :  { %v5179_v54 = vpop.f32.mrf.mxu0 }
0x26d2   :  { %v4467_v17 = vadd.f32 %v5179_v54, %v4901_v15 }
0x26d3   :  { %v4461_v20 = vpop.f32.mrf.mxu0 }
0x26d4   :  { %v4462_v22 = vadd.f32 %v4901_v15, %v4461_v20  ;;  %v4471_v57 = vadd.f32 %v4467_v17, %v4267_v40  ;;  %v4905_v40 = vld [vmem:[#allocation46 + $0x1] ss:$0 sm:$0xff] }
0x26d6   :  { %v4477_v55 = vsel %vm2027_vm9, %v4471_v57, 0.0  ;;  %v4470_v23 = vadd.f32 %v4462_v22, %v7226_v28 }
0x26d7   :  { %4478 = vadd.xlane.f32.xlu0 %v4477_v55 }
0x26d8   :  { %v4474_v13 = vsel %vm2027_vm9, %v4470_v23, 0.0 }
0x26d9   :  { %4475 = vadd.xlane.f32.xlu1 %v4474_v13 }
0x26ea   :  { %4525 = vrot.lane.b32.xlu1 %v4907_v58, %s6112_s12 }
0x2760   :  { %v4479_v60 = vpop.xlane.xlu0 %4478 }
0x2761   :  { %v4481_v61 = vmul.f32 0.03125, %v4479_v60 }
0x2762   :  { %v4476_v63 = vpop.xlane.xlu1 %4475 }
0x2763   :  { %v4480_v62 = vmul.f32 0.03125, %v4476_v63  ;;  %v4483_v53 = vsub.f32 %v4471_v57, %v4481_v61 }
0x2765   :  { %v4482_v0 = vsub.f32 %v4470_v23, %v4480_v62  ;;  %v4485_v7 = vmul.f32 %v4483_v53, %v4483_v53 }
0x2766   :  { %v4526_v1 = vpop.permute.xlu1 %4525 }
0x2767   :  { %v4529_v18 = vmul.f32 %v4526_v1, %v7111_v2  ;;  %v4484_v24 = vmul.f32 %v4482_v0, %v4482_v0  ;;  %v4489_v26 = vsel %vm2027_vm9, %v4485_v7, 0.0  ;;  %v4528_v59 = vmul.f32 %v4526_v1, %v7113_v3  ;;  %v4906_v3 = vld [vmem:[#allocation47] ss:$0 sm:$0xff] }
0x2769   :  { %4534 = vrot.lane.b32.xlu1 %v4529_v18, %s6112_s12  ;;  %v4486_v28 = vsel %vm2027_vm9, %v4484_v24, 0.0 }
0x276a   :  { %4487 = vadd.xlane.f32.xlu0 %v4486_v28 }
0x276e   :  { %4490 = vadd.xlane.f32.xlu0 %v4489_v26 }
0x2784   :  { %4532 = vrot.lane.b32.xlu0 %v4528_v59, %s6112_s12 }
0x27db   :  { %v4535_v39 = vpop.permute.xlu1 %4534 }
0x27f3   :  { %v4488_v30 = vpop.xlane.xlu0 %4487 }
0x27f4   :  { %v4492_v32 = vmul.f32 0.03125, %v4488_v30 }
0x27f6   :  { %v4494_v2 = vadd.f32 1e-12, %v4492_v32 }
0x27f7   :  { %v4491_v4 = vpop.xlane.xlu0 %4490 }
0x27f8   :  { %5416 = vrsqrt.f32 %v4494_v2  ;;  %v4493_v56 = vmul.f32 0.03125, %v4491_v4 }
0x27fa   :  { %v4495_v34 = vadd.f32 1e-12, %v4493_v56 }
0x27fb   :  { %v4533_v14 = vpop.permute.xlu0 %4532 }
0x27fc   :  { %5418 = vrsqrt.f32 %v4495_v34 }
0x2805   :  { %v5417_v37 = vpop.eup %5416 }
0x2806   :  { %v4498_v38 = vmul.f32 %v5417_v37, %v4482_v0 }
0x2808   :  { %v4504_v42 = vmul.f32 %v4904_v36, %v4498_v38 }
0x2809   :  { %v5419_v43 = vpop.eup %5418 }
0x280a   :  { %v4499_v6 = vmul.f32 %v5419_v43, %v4483_v53  ;;  %v4510_v9 = vadd.f32 %v4905_v40, %v4504_v42 }
0x280c   :  { %v4505_v11 = vmul.f32 %v4904_v36, %v4499_v6  ;;  %v4517_v12 = vmul.f32 %v4906_v3, %v4510_v9 }
0x280e   :  { %v4511_v16 = vadd.f32 %v4905_v40, %v4505_v11  ;;  %v4538_v44 = vadd.f32 %v4533_v14, %v4517_v12 }
0x2810   :  { %v4518_v5 = vmul.f32 %v4906_v3, %v4511_v16  ;;  %v4540_v19 = vsel %vm2027_vm9, %v4538_v44, 0.0 }
0x2811   :  { %4541 = vadd.xlane.f32.xlu1 %v4540_v19 }
0x2812   :  { %v4539_v21 = vadd.f32 %v4535_v39, %v4518_v5 }
0x2814   :  { %v4543_v45 = vsel %vm2027_vm9, %v4539_v21, 0.0 }
0x2815   :  { %4544 = vadd.xlane.f32.xlu0 %v4543_v45 }
0x2822   :  { %4553 = vperm.xlu1 %5254, %v4908_v46  }
0x289a   :  { %v4542_v41 = vpop.xlane.xlu1 %4541 }
0x289e   :  { %v4554_v48 = vpop.permute.xlu1 %4553  ;;  %v4545_v49 = vpop.xlane.xlu0 %4544 }
0x289f   :  { %v4556_v50 = vadd.f32 %v4554_v48, %v4542_v41  ;;  %v4557_v51 = vadd.f32 %v4554_v48, %v4545_v49 }
0x28a1   :  { %v4565_v25 = vrot.slane %v4556_v50, %v4564_v29  ;;  %v4569_v52 = vrot.slane %v4557_v51, %v4564_v29 }
0x28a3   :  { %v4570_v8 = vsel %vm3117_vm11, %v4569_v52, %v4565_v25 }
0x28a4   :  { %4573 = vst.msk [vmem:[#allocation49] sm:$0x3] %vm4572_vm4, %v4570_v8 }
0x28a5   :  { %6003 = shalt.err (!%p6000_p9)
}
0x28a6   :  { %4583 = dma.vmem_to_hbm [thread:$0]  %s4581_s15, 32, %s6279_s30, [#allocation7]  }
0x28a7   :  { %6044 = dma.done.wait [#allocation7], 32  }
0x28a8   :  { %6045 = vsyncadd [#allocation7], 4294967264 }
0x28a9   :  { %4587 = vsyncpa [#allocation6], 1 }
0x28aa   :  { %4588 = vsyncpa [#allocation9], 1 }
0x28ab   :  { %4589 = vsyncpa [#allocation12], 1 }
0x28ac   :  { %4590 = vsyncpa [#allocation15], 1 }
0x28ad   :  { %4591 = vsyncpa [#allocation18], 1 }
0x28ae   :  { %4592 = vsyncpa [#allocation21], 1 }
0x28af   :  { %4593 = vsyncpa [#allocation24], 1 }
0x28b0   :  { %4594 = vsyncpa [#allocation27], 1 }
0x28b1   :  { %4595 = vsyncpa [#allocation30], 1 }
0x28b2   :  { %4596 = vsyncpa [#allocation33], 1 }
0x28b3   :  { %4597 = vsyncpa [#allocation36], 1 }
0x28b4   :  { %4598 = vsyncpa [#allocation39], 1 }
0x28b5   :  { %4599 = vsyncpa [#allocation42], 1 }
0x28b6   :  { %4600 = vsyncpa [#allocation45], 1 }
0x28b7   :  { %4601 = vsyncpa [#allocation48], 1 }
0x28b8   :  { %4602 = vsyncpa [#allocation7], 1 }

</bundles_post_ra>
